<compile_context>
chip_gen: v7x
topology: tpu7x:2x2x1
jax: 0.10.0
libtpu: 0.0.40
codegen_flags: <defaults>
</compile_context>

<pallas_src>
import functools

import jax
import jax.numpy as jnp
from jax.experimental import pallas as pl
from jax.experimental.pallas import tpu as pltpu

_OUT_PAD = 128          # lane-dense padded width of the final [B, 1] output
_MLP_ROWS = 7           # bias-pack rows per 3-layer MLP block
_LAYER_ROWS = 8         # bias-pack rows per encoder layer
_QMLP_ROW0 = 0
_LAYER_ROW0 = _MLP_ROWS


def _round_up(x, m):
    return ((x + m - 1) // m) * m


# ---------------------------------------------------------------------------
# In-kernel helpers (operate on VMEM refs / values)
# ---------------------------------------------------------------------------
def _layernorm(x, gamma, beta, eps=1e-5):
    """torch.nn.LayerNorm over the last dim (biased variance, eps=1e-5)."""
    mu = jnp.mean(x, axis=-1, keepdims=True)
    var = jnp.mean((x - mu) ** 2, axis=-1, keepdims=True)
    return (x - mu) * jax.lax.rsqrt(var + eps) * gamma + beta


def _bias_row(bias_ref, row, width):
    """[1, width] f32 view of one packed bias/LayerNorm row (static slice)."""
    return bias_ref[row:row + 1, :width]


def _mlp_block(x, w1_ref, w2_ref, w3_ref, bias_ref, row0, mm_dtype):
    """Linear -> LN -> ReLU -> Linear -> LN -> ReLU -> Linear (weights [in,out])."""
    n1 = w1_ref.shape[1]
    n2 = w2_ref.shape[1]
    n3 = w3_ref.shape[1]
    b = lambda i, n: _bias_row(bias_ref, row0 + i, n)
    h = jnp.dot(x.astype(mm_dtype), w1_ref[...],
                preferred_element_type=jnp.float32) + b(0, n1)
    h = jnp.maximum(_layernorm(h, b(1, n1), b(2, n1)), 0.0)
    h = jnp.dot(h.astype(mm_dtype), w2_ref[...],
                preferred_element_type=jnp.float32) + b(3, n2)
    h = jnp.maximum(_layernorm(h, b(4, n2), b(5, n2)), 0.0)
    return jnp.dot(h.astype(mm_dtype), w3_ref[...],
                   preferred_element_type=jnp.float32) + b(6, n3)


def _encoder_layer(x2d, kbias_full, B, S, H, layer, row0,
                   wqkv_ref, wo_ref, ffw1_ref, ffw2_ref, bias_ref,
                   mm_dtype, approx_recip):
    """One nn.TransformerEncoderLayer (post-norm, ReLU, dropout=0).

    x2d:        [B*S, D] f32 activations
    kbias_full: [B, S, S] additive key-padding bias (0 / -1e30), hoisted
    wqkv_ref:   [L, D, qkvp] (q block pre-scaled by hd^-0.5, zero-padded cols)
    wo_ref:     [L, D, D]     ffw1_ref: [L, D, dff]   ffw2_ref: [L, dff, D]
    """
    BS, D = x2d.shape
    hd = D // H
    qkvp = wqkv_ref.shape[-1]
    dff = ffw1_ref.shape[-1]
    b = lambda i, n: _bias_row(bias_ref, row0 + i, n)

    # Fused QKV projection (single MXU op; padded lanes [3D:qkvp] are unused).
    qkv = jnp.dot(x2d.astype(mm_dtype), wqkv_ref[layer],
                  preferred_element_type=jnp.float32) + b(0, qkvp)
    qkv3 = qkv.reshape(B, S, qkvp)                  # leading-dim split (free)

    heads = []
    for h in range(H):                              # static unroll (H is small)
        q = qkv3[:, :, h * hd:(h + 1) * hd]
        k = qkv3[:, :, D + h * hd:D + (h + 1) * hd]
        v = qkv3[:, :, 2 * D + h * hd:2 * D + (h + 1) * hd]
        s = jnp.einsum('bqf,bkf->bqk', q.astype(mm_dtype), k.astype(mm_dtype),
                       preferred_element_type=jnp.float32) + kbias_full
        m = jnp.max(s, axis=-1, keepdims=True)
        e = jnp.exp(s - m)
        denom = jnp.sum(e, axis=-1, keepdims=True)
        if approx_recip:
            p = e * pl.reciprocal(denom, approx=True)
        else:
            p = e / denom
        heads.append(jnp.einsum('bqk,bkf->bqf', p.astype(mm_dtype),
                                v.astype(mm_dtype),
                                preferred_element_type=jnp.float32))

    # Head-major concat (matches torch MHA) then ONE output projection.
    attn = jnp.concatenate(heads, axis=-1).reshape(BS, D)
    attn2d = jnp.dot(attn.astype(mm_dtype), wo_ref[layer],
                     preferred_element_type=jnp.float32) + b(1, D)

    y = _layernorm(x2d + attn2d, b(2, D), b(3, D))
    ff = jnp.maximum(jnp.dot(y.astype(mm_dtype), ffw1_ref[layer],
                             preferred_element_type=jnp.float32) + b(4, dff), 0.0)
    ff = jnp.dot(ff.astype(mm_dtype), ffw2_ref[layer],
                 preferred_element_type=jnp.float32) + b(5, D)
    return _layernorm(y + ff, b(6, D), b(7, D))


# ---------------------------------------------------------------------------
# Fused forward kernel: query_mlp -> add pos/plan -> L encoder layers -> out_mlp
# ---------------------------------------------------------------------------
def _fused_forward_kernel(num_layers, num_heads, mm_dtype, approx_recip,
                          qf_ref, base_ref, kbias_ref,
                          qw1_ref, qw2_ref, qw3_ref,
                          ow1_ref, ow2_ref, ow3_ref,
                          wqkv_ref, wo_ref, ffw1_ref, ffw2_ref, bias_ref,
                          out_ref):
    B, S, D = base_ref.shape

    # query_mlp on [B, d_query_feat] -> [B, D]; real outputs live in lanes
    # dm:D (qw3/b3 are zero-padded on the left), so the concat with the plan
    # embeddings becomes a plain add.
    q_emb = _mlp_block(qf_ref[...], qw1_ref, qw2_ref, qw3_ref, bias_ref,
                       _QMLP_ROW0, mm_dtype)
    x = base_ref[...] + jnp.broadcast_to(q_emb[:, None, :], (B, S, D))
    x2d = x.reshape(B * S, D)

    # Hoisted key-padding bias, materialized once for all layers/heads.
    kbias_full = jnp.broadcast_to(kbias_ref[...][:, None, :], (B, S, S))

    for l in range(num_layers):
        x2d = _encoder_layer(x2d, kbias_full, B, S, num_heads, l,
                             _LAYER_ROW0 + l * _LAYER_ROWS,
                             wqkv_ref, wo_ref, ffw1_ref, ffw2_ref, bias_ref,
                             mm_dtype, approx_recip)

    root = x2d.reshape(B, S, D)[:, 0, :]                        # [B, D]
    out_ref[...] = _mlp_block(root, ow1_ref, ow2_ref, ow3_ref, bias_ref,
                              _LAYER_ROW0 + num_layers * _LAYER_ROWS, mm_dtype)


def _mm_dtype_from_cfg(cfg):
    return (jnp.bfloat16
            if cfg.get("matmul_dtype", "bfloat16") == "bfloat16"
            else jnp.float32)


def transformer_v2_forward(params, query_feats, src, parent_pos, cfg):
    B, S = src.shape
    dm = cfg["d_model"]
    D = 2 * dm
    kp = params["kernel"]
    mm_dtype = _mm_dtype_from_cfg(cfg)
    approx_recip = bool(cfg.get("softmax_approx_recip", True))

    # Embedding gathers + pos add stay in plain JAX.  embeds_padded occupies
    # lanes [0:dm] of D, so the kernel only has to add the query embedding.
    base = jnp.take(params["embeds_padded"], src, axis=0)            # [B, S, D]
    if cfg["use_pos_embs"]:
        base = base + jnp.take(params["pos_embeds"], parent_pos, axis=0)

    # src_key_padding_mask -> additive bias (-1e30 instead of -inf so a fully
    # masked row stays finite; identical softmax for normal rows).
    kbias = jnp.where(src == cfg["plan_pad_idx"], -1e30, 0.0).astype(jnp.float32)

    # Batch tiling: 8-row blocks satisfy the sublane constraint, let v7x's two
    # TensorCores split the (parallel) batch axis, and bound per-step VMEM.
    # TODO(synk): for large B/S derive block_b from per-generation VMEM
    # (v7x: 64 MiB physical) instead of this fixed small-block policy.
    block_b = cfg.get("block_b")
    if block_b is None:
        block_b = 8 if B % 8 == 0 else B
    if B % block_b != 0:
        block_b = B
    grid = (B // block_b,)

    def _batch_spec(shape):
        nd = len(shape)
        return pl.BlockSpec((block_b,) + tuple(shape[1:]),
                            lambda b, nd=nd: (b,) + (0,) * (nd - 1))

    def _const_spec(w):                       # whole array, VMEM-resident
        nd = w.ndim
        return pl.BlockSpec(w.shape, lambda b, nd=nd: (0,) * nd)

    weights = (kp["qw1"], kp["qw2"], kp["qw3"],
               kp["ow1"], kp["ow2"], kp["ow3"],
               kp["wqkv"], kp["wo"], kp["ffw1"], kp["ffw2"], kp["biases"])

    kernel = functools.partial(_fused_forward_kernel, cfg["num_layers"],
                               cfg["num_heads"], mm_dtype, approx_recip)
    out = pl.pallas_call(
        kernel,
        out_shape=jax.ShapeDtypeStruct((B, _OUT_PAD), jnp.float32),
        grid_spec=pltpu.PrefetchScalarGridSpec(
            num_scalar_prefetch=0,
            grid=grid,
            in_specs=[_batch_spec(query_feats.shape),
                      _batch_spec(base.shape),
                      _batch_spec(kbias.shape)]
                     + [_const_spec(w) for w in weights],
            out_specs=pl.BlockSpec((block_b, _OUT_PAD), lambda b: (b, 0)),
        ),
        compiler_params=pltpu.CompilerParams(
            dimension_semantics=("parallel",)),
    )(query_feats, base, kbias, *weights)
    return out[:, :1]                                             # [B, 1]


# ---------------------------------------------------------------------------
# Parameter init (mirrors TransformerV2.reset_weights) + kernel-layout prep.
#   dim>1 weights ~ N(0, 0.02); embedding tables ~ N(0, d^-0.5) with last row
#   zeroed; biases = 0; LayerNorm weights = 1.
# ---------------------------------------------------------------------------
def _dense(key, out_dim, in_dim):
    return 0.02 * jax.random.normal(key, (out_dim, in_dim), jnp.float32)


def _mlp_torch_params(key, in_dim, out_dim):
    k1, k2, k3 = jax.random.split(key, 3)
    z = lambda n: jnp.zeros((n,), jnp.float32)
    o = lambda n: jnp.ones((n,), jnp.float32)
    return dict(w1=_dense(k1, 128, in_dim), b1=z(128), g1=o(128), be1=z(128),
                w2=_dense(k2, 64, 128), b2=z(64), g2=o(64), be2=z(64),
                w3=_dense(k3, out_dim, 64), b3=z(out_dim))


def _layer_torch_params(key, D, dff):
    k1, k2, k3, k4 = jax.random.split(key, 4)
    z = lambda n: jnp.zeros((n,), jnp.float32)
    o = lambda n: jnp.ones((n,), jnp.float32)
    return dict(wqkv=_dense(k1, 3 * D, D), bqkv=z(3 * D),
                wo=_dense(k2, D, D), bo=z(D),
                n1w=o(D), n1b=z(D),
                w1=_dense(k3, dff, D), b1=z(dff),
                w2=_dense(k4, D, dff), b2=z(D),
                n2w=o(D), n2b=z(D))


def init_params(key, cfg):
    dm = cfg["d_model"]
    D = 2 * dm                   # d_model + d_query_mlp (d_query_mlp == d_model)
    H = cfg["num_heads"]
    L = cfg["num_layers"]
    dff = cfg["d_ff"]
    dq = cfg["d_query_feat"]
    hd = D // H
    qkvp = _round_up(3 * D, 128)
    bw = _round_up(max(128, D, dff, qkvp, _OUT_PAD), 128)
    mm_dtype = _mm_dtype_from_cfg(cfg)

    keys = jax.random.split(key, 4 + L)

    embeds = (dm ** -0.5) * jax.random.normal(
        keys[0], (cfg["plan_vocab_size"], dm), jnp.float32)
    embeds = embeds.at[-1].set(0.0)
    pos_embeds = (D ** -0.5) * jax.random.normal(
        keys[1], (cfg["parent_pos_vocab_size"], D), jnp.float32)
    pos_embeds = pos_embeds.at[-1].set(0.0)

    qmlp_t = _mlp_torch_params(keys[2], dq, dm)
    omlp_t = _mlp_torch_params(keys[3], D, 1)        # cross_entropy=False -> 1
    layers_t = [_layer_torch_params(keys[4 + i], D, dff) for i in range(L)]

    rows = []                                         # packed f32 bias/LN rows

    def add_row(v):
        rows.append(jnp.pad(v.astype(jnp.float32), (0, bw - v.shape[0])))

    def prep_mlp(p, pad_left=0, pad_out_to=None):
        """[in,out] weights (mm_dtype) + append its 7 bias-pack rows."""
        w1, w2, w3 = p["w1"].T, p["w2"].T, p["w3"].T
        b3 = p["b3"]
        if pad_left:
            w3 = jnp.pad(w3, ((0, 0), (pad_left, 0)))
            b3 = jnp.pad(b3, (pad_left, 0))
        if pad_out_to is not None and w3.shape[1] < pad_out_to:
            extra = pad_out_to - w3.shape[1]
            w3 = jnp.pad(w3, ((0, 0), (0, extra)))
            b3 = jnp.pad(b3, (0, extra))
        add_row(p["b1"]); add_row(p["g1"]); add_row(p["be1"])
        add_row(p["b2"]); add_row(p["g2"]); add_row(p["be2"])
        add_row(b3)
        return w1.astype(mm_dtype), w2.astype(mm_dtype), w3.astype(mm_dtype)

    # Bias-pack row order must match the kernel: qmlp, layers, out_mlp.
    qw1, qw2, qw3 = prep_mlp(qmlp_t, pad_left=dm)     # query occupies lanes dm:D

    scale = float(hd) ** -0.5
    wqkv_l, wo_l, ffw1_l, ffw2_l = [], [], [], []
    for lt in layers_t:
        w = lt["wqkv"].T                              # [D, 3D]: cols = (q | k | v)
        w = jnp.concatenate([w[:, :D] * scale, w[:, D:]], axis=1)
        bqkv = jnp.concatenate([lt["bqkv"][:D] * scale, lt["bqkv"][D:]])
        wqkv_l.append(jnp.pad(w, ((0, 0), (0, qkvp - 3 * D))).astype(mm_dtype))
        wo_l.append(lt["wo"].T.astype(mm_dtype))
        ffw1_l.append(lt["w1"].T.astype(mm_dtype))
        ffw2_l.append(lt["w2"].T.astype(mm_dtype))
        add_row(bqkv); add_row(lt["bo"])
        add_row(lt["n1w"]); add_row(lt["n1b"])
        add_row(lt["b1"]); add_row(lt["b2"])
        add_row(lt["n2w"]); add_row(lt["n2b"])

    ow1, ow2, ow3 = prep_mlp(omlp_t, pad_out_to=_OUT_PAD)

    kernel = dict(qw1=qw1, qw2=qw2, qw3=qw3, ow1=ow1, ow2=ow2, ow3=ow3,
                  wqkv=jnp.stack(wqkv_l), wo=jnp.stack(wo_l),
                  ffw1=jnp.stack(ffw1_l), ffw2=jnp.stack(ffw2_l),
                  biases=jnp.stack(rows))
    return dict(embeds_padded=jnp.pad(embeds, ((0, 0), (0, D - dm))),
                pos_embeds=pos_embeds, kernel=kernel)


# ---------------------------------------------------------------------------
if __name__ == "__main__":
    cfg = dict(
        plan_vocab_size=12,
        parent_pos_vocab_size=10,
        d_model=32,
        num_heads=2,
        d_ff=64,
        num_layers=2,
        d_query_feat=16,
        plan_pad_idx=11,            # == plan_vocab_size - 1 (matches zeroed row)
        parent_pos_pad_idx=9,
        use_pos_embs=True,
        matmul_dtype="bfloat16",    # MXU operands bf16; f32 accumulate/elementwise
        softmax_approx_recip=True,  # set False for exact-parity verification
    )
    B, S = 16, 8                    # B=16 -> two parallel 8-row grid steps

    key = jax.random.PRNGKey(0)
    kq, ks, kp, kparams = jax.random.split(key, 4)
    query_feats = jax.random.normal(kq, (B, cfg["d_query_feat"]), jnp.float32)
    src = jax.random.randint(ks, (B, S), 0, cfg["plan_vocab_size"] - 1, jnp.int32)
    src = src.at[:, -2:].set(cfg["plan_pad_idx"])   # pad the tail of each plan
    parent_pos = jax.random.randint(
        kp, (B, S), 0, cfg["parent_pos_vocab_size"] - 1, jnp.int32)

    params = init_params(kparams, cfg)
    out = transformer_v2_forward(params, query_feats, src, parent_pos, cfg)
    out = jax.block_until_ready(out)
    assert out.shape == (B, 1) and out.dtype == jnp.float32
    print("KERNEL_OK")
</pallas_src>

<mosaic_0001>
module attributes {stable_mosaic.version = 11 : i64} {
  func.func @_fused_forward_kernel(%arg0: i32, %arg1: memref<8x16xf32, #tpu.memory_space<vmem>>, %arg2: memref<8x8x64xf32, #tpu.memory_space<vmem>>, %arg3: memref<8x8xf32, #tpu.memory_space<vmem>>, %arg4: memref<16x128xbf16, #tpu.memory_space<vmem>>, %arg5: memref<128x64xbf16, #tpu.memory_space<vmem>>, %arg6: memref<64x64xbf16, #tpu.memory_space<vmem>>, %arg7: memref<64x128xbf16, #tpu.memory_space<vmem>>, %arg8: memref<128x64xbf16, #tpu.memory_space<vmem>>, %arg9: memref<64x128xbf16, #tpu.memory_space<vmem>>, %arg10: memref<2x64x256xbf16, #tpu.memory_space<vmem>>, %arg11: memref<2x64x64xbf16, #tpu.memory_space<vmem>>, %arg12: memref<2x64x64xbf16, #tpu.memory_space<vmem>>, %arg13: memref<2x64x64xbf16, #tpu.memory_space<vmem>>, %arg14: memref<30x256xf32, #tpu.memory_space<vmem>>, %arg15: memref<8x128xf32, #tpu.memory_space<vmem>>) attributes {dimension_semantics = [#tpu.dimension_semantics<parallel>], iteration_bounds = array<i64: 2>, scalar_prefetch = 0 : i64, scratch_operands = 0 : i64, tpu.core_type = #tpu.core_type<tc>, window_params = [{transform_indices = @transform_0, window_bounds = array<i64: 8, 16>}, {transform_indices = @transform_1, window_bounds = array<i64: 8, 8, 64>}, {transform_indices = @transform_2, window_bounds = array<i64: 8, 8>}, {pipeline_mode = #tpu.pipeline_mode<synchronous>, transform_indices = @transform_3, window_bounds = array<i64: 16, 128>}, {pipeline_mode = #tpu.pipeline_mode<synchronous>, transform_indices = @transform_4, window_bounds = array<i64: 128, 64>}, {pipeline_mode = #tpu.pipeline_mode<synchronous>, transform_indices = @transform_5, window_bounds = array<i64: 64, 64>}, {pipeline_mode = #tpu.pipeline_mode<synchronous>, transform_indices = @transform_6, window_bounds = array<i64: 64, 128>}, {pipeline_mode = #tpu.pipeline_mode<synchronous>, transform_indices = @transform_7, window_bounds = array<i64: 128, 64>}, {pipeline_mode = #tpu.pipeline_mode<synchronous>, transform_indices = @transform_8, window_bounds = array<i64: 64, 128>}, {pipeline_mode = #tpu.pipeline_mode<synchronous>, transform_indices = @transform_9, window_bounds = array<i64: 2, 64, 256>}, {pipeline_mode = #tpu.pipeline_mode<synchronous>, transform_indices = @transform_10, window_bounds = array<i64: 2, 64, 64>}, {pipeline_mode = #tpu.pipeline_mode<synchronous>, transform_indices = @transform_11, window_bounds = array<i64: 2, 64, 64>}, {pipeline_mode = #tpu.pipeline_mode<synchronous>, transform_indices = @transform_12, window_bounds = array<i64: 2, 64, 64>}, {pipeline_mode = #tpu.pipeline_mode<synchronous>, transform_indices = @transform_13, window_bounds = array<i64: 30, 256>}, {transform_indices = @transform_14, window_bounds = array<i64: 8, 128>}]} {
    %c0 = arith.constant 0 : index
    %c0_0 = arith.constant 0 : index
    %0 = vector.load %arg1[%c0, %c0_0] : memref<8x16xf32, #tpu.memory_space<vmem>>, vector<8x16xf32>
    %1 = arith.truncf %0 : vector<8x16xf32> to vector<8x16xbf16>
    %c0_1 = arith.constant 0 : index
    %c0_2 = arith.constant 0 : index
    %2 = vector.load %arg4[%c0_1, %c0_2] : memref<16x128xbf16, #tpu.memory_space<vmem>>, vector<16x128xbf16>
    %cst = arith.constant dense<0.000000e+00> : vector<8x128xf32>
    %3 = tpu.matmul %1, %2, %cst {dimension_numbers = #tpu.dot_dimension_numbers<[1], [0], [0], [1], [0, 0, 1, 1], [], []>} : vector<8x16xbf16>, vector<16x128xbf16>, vector<8x128xf32> -> vector<8x128xf32>
    %c0_3 = arith.constant 0 : index
    %c0_4 = arith.constant 0 : index
    %4 = vector.load %arg14[%c0_3, %c0_4] : memref<30x256xf32, #tpu.memory_space<vmem>>, vector<1x128xf32>
    %5 = vector.broadcast %4 : vector<1x128xf32> to vector<8x128xf32>
    %6 = arith.addf %3, %5 : vector<8x128xf32>
    %c1 = arith.constant 1 : index
    %c0_5 = arith.constant 0 : index
    %7 = vector.load %arg14[%c1, %c0_5] : memref<30x256xf32, #tpu.memory_space<vmem>>, vector<1x128xf32>
    %c2 = arith.constant 2 : index
    %c0_6 = arith.constant 0 : index
    %8 = vector.load %arg14[%c2, %c0_6] : memref<30x256xf32, #tpu.memory_space<vmem>>, vector<1x128xf32>
    %cst_7 = arith.constant dense<0.000000e+00> : vector<8xf32>
    %9 = vector.multi_reduction <add>, %6, %cst_7 [1] : vector<8x128xf32> to vector<8xf32>
    %10 = vector.shape_cast %9 : vector<8xf32> to vector<8x1xf32>
    %cst_8 = arith.constant 1.280000e+02 : f32
    %11 = vector.broadcast %cst_8 : f32 to vector<8x1xf32>
    %12 = arith.divf %10, %11 : vector<8x1xf32>
    %13 = vector.broadcast %12 : vector<8x1xf32> to vector<8x128xf32>
    %14 = arith.subf %6, %13 : vector<8x128xf32>
    %15 = arith.mulf %14, %14 : vector<8x128xf32>
    %cst_9 = arith.constant dense<0.000000e+00> : vector<8xf32>
    %16 = vector.multi_reduction <add>, %15, %cst_9 [1] : vector<8x128xf32> to vector<8xf32>
    %17 = vector.shape_cast %16 : vector<8xf32> to vector<8x1xf32>
    %cst_10 = arith.constant 1.280000e+02 : f32
    %18 = vector.broadcast %cst_10 : f32 to vector<8x1xf32>
    %19 = arith.divf %17, %18 : vector<8x1xf32>
    %20 = vector.broadcast %12 : vector<8x1xf32> to vector<8x128xf32>
    %21 = arith.subf %6, %20 : vector<8x128xf32>
    %cst_11 = arith.constant 9.99999974E-6 : f32
    %22 = vector.broadcast %cst_11 : f32 to vector<8x1xf32>
    %23 = arith.addf %19, %22 : vector<8x1xf32>
    %24 = math.rsqrt %23 : vector<8x1xf32>
    %25 = vector.broadcast %24 : vector<8x1xf32> to vector<8x128xf32>
    %26 = arith.mulf %21, %25 : vector<8x128xf32>
    %27 = vector.broadcast %7 : vector<1x128xf32> to vector<8x128xf32>
    %28 = arith.mulf %26, %27 : vector<8x128xf32>
    %29 = vector.broadcast %8 : vector<1x128xf32> to vector<8x128xf32>
    %30 = arith.addf %28, %29 : vector<8x128xf32>
    %cst_12 = arith.constant 0.000000e+00 : f32
    %31 = vector.broadcast %cst_12 : f32 to vector<8x128xf32>
    %32 = arith.maximumf %30, %31 : vector<8x128xf32>
    %33 = arith.truncf %32 : vector<8x128xf32> to vector<8x128xbf16>
    %c0_13 = arith.constant 0 : index
    %c0_14 = arith.constant 0 : index
    %34 = vector.load %arg5[%c0_13, %c0_14] : memref<128x64xbf16, #tpu.memory_space<vmem>>, vector<128x64xbf16>
    %cst_15 = arith.constant dense<0.000000e+00> : vector<8x64xf32>
    %35 = tpu.matmul %33, %34, %cst_15 {dimension_numbers = #tpu.dot_dimension_numbers<[1], [0], [0], [1], [0, 0, 1, 1], [], []>} : vector<8x128xbf16>, vector<128x64xbf16>, vector<8x64xf32> -> vector<8x64xf32>
    %c3 = arith.constant 3 : index
    %c0_16 = arith.constant 0 : index
    %36 = vector.load %arg14[%c3, %c0_16] : memref<30x256xf32, #tpu.memory_space<vmem>>, vector<1x64xf32>
    %37 = vector.broadcast %36 : vector<1x64xf32> to vector<8x64xf32>
    %38 = arith.addf %35, %37 : vector<8x64xf32>
    %c4 = arith.constant 4 : index
    %c0_17 = arith.constant 0 : index
    %39 = vector.load %arg14[%c4, %c0_17] : memref<30x256xf32, #tpu.memory_space<vmem>>, vector<1x64xf32>
    %c5 = arith.constant 5 : index
    %c0_18 = arith.constant 0 : index
    %40 = vector.load %arg14[%c5, %c0_18] : memref<30x256xf32, #tpu.memory_space<vmem>>, vector<1x64xf32>
    %cst_19 = arith.constant dense<0.000000e+00> : vector<8xf32>
    %41 = vector.multi_reduction <add>, %38, %cst_19 [1] : vector<8x64xf32> to vector<8xf32>
    %42 = vector.shape_cast %41 : vector<8xf32> to vector<8x1xf32>
    %cst_20 = arith.constant 6.400000e+01 : f32
    %43 = vector.broadcast %cst_20 : f32 to vector<8x1xf32>
    %44 = arith.divf %42, %43 : vector<8x1xf32>
    %45 = vector.broadcast %44 : vector<8x1xf32> to vector<8x64xf32>
    %46 = arith.subf %38, %45 : vector<8x64xf32>
    %47 = arith.mulf %46, %46 : vector<8x64xf32>
    %cst_21 = arith.constant dense<0.000000e+00> : vector<8xf32>
    %48 = vector.multi_reduction <add>, %47, %cst_21 [1] : vector<8x64xf32> to vector<8xf32>
    %49 = vector.shape_cast %48 : vector<8xf32> to vector<8x1xf32>
    %cst_22 = arith.constant 6.400000e+01 : f32
    %50 = vector.broadcast %cst_22 : f32 to vector<8x1xf32>
    %51 = arith.divf %49, %50 : vector<8x1xf32>
    %52 = vector.broadcast %44 : vector<8x1xf32> to vector<8x64xf32>
    %53 = arith.subf %38, %52 : vector<8x64xf32>
    %cst_23 = arith.constant 9.99999974E-6 : f32
    %54 = vector.broadcast %cst_23 : f32 to vector<8x1xf32>
    %55 = arith.addf %51, %54 : vector<8x1xf32>
    %56 = math.rsqrt %55 : vector<8x1xf32>
    %57 = vector.broadcast %56 : vector<8x1xf32> to vector<8x64xf32>
    %58 = arith.mulf %53, %57 : vector<8x64xf32>
    %59 = vector.broadcast %39 : vector<1x64xf32> to vector<8x64xf32>
    %60 = arith.mulf %58, %59 : vector<8x64xf32>
    %61 = vector.broadcast %40 : vector<1x64xf32> to vector<8x64xf32>
    %62 = arith.addf %60, %61 : vector<8x64xf32>
    %cst_24 = arith.constant 0.000000e+00 : f32
    %63 = vector.broadcast %cst_24 : f32 to vector<8x64xf32>
    %64 = arith.maximumf %62, %63 : vector<8x64xf32>
    %65 = arith.truncf %64 : vector<8x64xf32> to vector<8x64xbf16>
    %c0_25 = arith.constant 0 : index
    %c0_26 = arith.constant 0 : index
    %66 = vector.load %arg6[%c0_25, %c0_26] : memref<64x64xbf16, #tpu.memory_space<vmem>>, vector<64x64xbf16>
    %cst_27 = arith.constant dense<0.000000e+00> : vector<8x64xf32>
    %67 = tpu.matmul %65, %66, %cst_27 {dimension_numbers = #tpu.dot_dimension_numbers<[1], [0], [0], [1], [0, 0, 1, 1], [], []>} : vector<8x64xbf16>, vector<64x64xbf16>, vector<8x64xf32> -> vector<8x64xf32>
    %c6 = arith.constant 6 : index
    %c0_28 = arith.constant 0 : index
    %68 = vector.load %arg14[%c6, %c0_28] : memref<30x256xf32, #tpu.memory_space<vmem>>, vector<1x64xf32>
    %69 = vector.broadcast %68 : vector<1x64xf32> to vector<8x64xf32>
    %70 = arith.addf %67, %69 : vector<8x64xf32>
    %c0_29 = arith.constant 0 : index
    %c0_30 = arith.constant 0 : index
    %c0_31 = arith.constant 0 : index
    %71 = vector.load %arg2[%c0_29, %c0_30, %c0_31] : memref<8x8x64xf32, #tpu.memory_space<vmem>>, vector<8x8x64xf32>
    %72 = vector.shape_cast %70 : vector<8x64xf32> to vector<8x1x64xf32>
    %73 = vector.shape_cast %72 : vector<8x1x64xf32> to vector<8x1x64xf32>
    %74 = vector.broadcast %73 : vector<8x1x64xf32> to vector<8x8x64xf32>
    %75 = arith.addf %71, %74 : vector<8x8x64xf32>
    %76 = vector.shape_cast %75 : vector<8x8x64xf32> to vector<64x64xf32>
    %c0_32 = arith.constant 0 : index
    %c0_33 = arith.constant 0 : index
    %77 = vector.load %arg3[%c0_32, %c0_33] : memref<8x8xf32, #tpu.memory_space<vmem>>, vector<8x8xf32>
    %78 = vector.shape_cast %77 : vector<8x8xf32> to vector<8x1x8xf32>
    %79 = vector.shape_cast %78 : vector<8x1x8xf32> to vector<8x1x8xf32>
    %80 = vector.broadcast %79 : vector<8x1x8xf32> to vector<8x8x8xf32>
    %81 = arith.truncf %76 : vector<64x64xf32> to vector<64x64xbf16>
    %c0_34 = arith.constant 0 : index
    %c0_35 = arith.constant 0 : index
    %c0_36 = arith.constant 0 : index
    %82 = vector.load %arg10[%c0_34, %c0_35, %c0_36] : memref<2x64x256xbf16, #tpu.memory_space<vmem>>, vector<1x64x256xbf16>
    %83 = vector.shape_cast %82 : vector<1x64x256xbf16> to vector<64x256xbf16>
    %cst_37 = arith.constant dense<0.000000e+00> : vector<64x256xf32>
    %84 = tpu.matmul %81, %83, %cst_37 {dimension_numbers = #tpu.dot_dimension_numbers<[1], [0], [0], [1], [0, 0, 1, 1], [], []>} : vector<64x64xbf16>, vector<64x256xbf16>, vector<64x256xf32> -> vector<64x256xf32>
    %c7 = arith.constant 7 : index
    %c0_38 = arith.constant 0 : index
    %85 = vector.load %arg14[%c7, %c0_38] : memref<30x256xf32, #tpu.memory_space<vmem>>, vector<1x256xf32>
    %86 = vector.broadcast %85 : vector<1x256xf32> to vector<64x256xf32>
    %87 = arith.addf %84, %86 : vector<64x256xf32>
    %88 = vector.shape_cast %87 : vector<64x256xf32> to vector<8x8x256xf32>
    %89 = vector.extract_strided_slice %88 {offsets = [0, 0, 0], sizes = [8, 8, 32], strides = [1, 1, 1]} : vector<8x8x256xf32> to vector<8x8x32xf32>
    %90 = vector.extract_strided_slice %88 {offsets = [0, 0, 64], sizes = [8, 8, 32], strides = [1, 1, 1]} : vector<8x8x256xf32> to vector<8x8x32xf32>
    %91 = vector.extract_strided_slice %88 {offsets = [0, 0, 128], sizes = [8, 8, 32], strides = [1, 1, 1]} : vector<8x8x256xf32> to vector<8x8x32xf32>
    %92 = arith.truncf %89 : vector<8x8x32xf32> to vector<8x8x32xbf16>
    %93 = arith.truncf %90 : vector<8x8x32xf32> to vector<8x8x32xbf16>
    "tpu.trace_start"() <{level = 10 : i32, message = "bqf,bkf->bqk"}> : () -> ()
    %cst_39 = arith.constant dense<0.000000e+00> : vector<8x8x8xf32>
    %94 = tpu.matmul %92, %93, %cst_39 {dimension_numbers = #tpu.dot_dimension_numbers<[2], [2], [1], [1], [0, 0, 0, 1, 1, 1], [0], [0]>} : vector<8x8x32xbf16>, vector<8x8x32xbf16>, vector<8x8x8xf32> -> vector<8x8x8xf32>
    "tpu.trace_stop"() : () -> ()
    %95 = arith.addf %94, %80 : vector<8x8x8xf32>
    %cst_40 = arith.constant dense<0xFF800000> : vector<8x8xf32>
    %96 = vector.multi_reduction <maximumf>, %95, %cst_40 [2] : vector<8x8x8xf32> to vector<8x8xf32>
    %97 = vector.shape_cast %96 : vector<8x8xf32> to vector<8x8x1xf32>
    %98 = vector.broadcast %97 : vector<8x8x1xf32> to vector<8x8x8xf32>
    %99 = arith.subf %95, %98 : vector<8x8x8xf32>
    %100 = math.exp %99 : vector<8x8x8xf32>
    %cst_41 = arith.constant dense<0.000000e+00> : vector<8x8xf32>
    %101 = vector.multi_reduction <add>, %100, %cst_41 [2] : vector<8x8x8xf32> to vector<8x8xf32>
    %102 = vector.shape_cast %101 : vector<8x8xf32> to vector<8x8x1xf32>
    %103 = tpu.reciprocal %102 {approx = true} : vector<8x8x1xf32> -> vector<8x8x1xf32>
    %104 = vector.broadcast %103 : vector<8x8x1xf32> to vector<8x8x8xf32>
    %105 = arith.mulf %100, %104 : vector<8x8x8xf32>
    %106 = arith.truncf %105 : vector<8x8x8xf32> to vector<8x8x8xbf16>
    %107 = arith.truncf %91 : vector<8x8x32xf32> to vector<8x8x32xbf16>
    "tpu.trace_start"() <{level = 10 : i32, message = "bqk,bkf->bqf"}> : () -> ()
    %cst_42 = arith.constant dense<0.000000e+00> : vector<8x8x32xf32>
    %108 = tpu.matmul %106, %107, %cst_42 {dimension_numbers = #tpu.dot_dimension_numbers<[2], [1], [1], [2], [0, 0, 0, 1, 1, 2], [0], [0]>} : vector<8x8x8xbf16>, vector<8x8x32xbf16>, vector<8x8x32xf32> -> vector<8x8x32xf32>
    "tpu.trace_stop"() : () -> ()
    %109 = vector.extract_strided_slice %88 {offsets = [0, 0, 32], sizes = [8, 8, 32], strides = [1, 1, 1]} : vector<8x8x256xf32> to vector<8x8x32xf32>
    %110 = vector.extract_strided_slice %88 {offsets = [0, 0, 96], sizes = [8, 8, 32], strides = [1, 1, 1]} : vector<8x8x256xf32> to vector<8x8x32xf32>
    %111 = vector.extract_strided_slice %88 {offsets = [0, 0, 160], sizes = [8, 8, 32], strides = [1, 1, 1]} : vector<8x8x256xf32> to vector<8x8x32xf32>
    %112 = arith.truncf %109 : vector<8x8x32xf32> to vector<8x8x32xbf16>
    %113 = arith.truncf %110 : vector<8x8x32xf32> to vector<8x8x32xbf16>
    "tpu.trace_start"() <{level = 10 : i32, message = "bqf,bkf->bqk"}> : () -> ()
    %cst_43 = arith.constant dense<0.000000e+00> : vector<8x8x8xf32>
    %114 = tpu.matmul %112, %113, %cst_43 {dimension_numbers = #tpu.dot_dimension_numbers<[2], [2], [1], [1], [0, 0, 0, 1, 1, 1], [0], [0]>} : vector<8x8x32xbf16>, vector<8x8x32xbf16>, vector<8x8x8xf32> -> vector<8x8x8xf32>
    "tpu.trace_stop"() : () -> ()
    %115 = arith.addf %114, %80 : vector<8x8x8xf32>
    %cst_44 = arith.constant dense<0xFF800000> : vector<8x8xf32>
    %116 = vector.multi_reduction <maximumf>, %115, %cst_44 [2] : vector<8x8x8xf32> to vector<8x8xf32>
    %117 = vector.shape_cast %116 : vector<8x8xf32> to vector<8x8x1xf32>
    %118 = vector.broadcast %117 : vector<8x8x1xf32> to vector<8x8x8xf32>
    %119 = arith.subf %115, %118 : vector<8x8x8xf32>
    %120 = math.exp %119 : vector<8x8x8xf32>
    %cst_45 = arith.constant dense<0.000000e+00> : vector<8x8xf32>
    %121 = vector.multi_reduction <add>, %120, %cst_45 [2] : vector<8x8x8xf32> to vector<8x8xf32>
    %122 = vector.shape_cast %121 : vector<8x8xf32> to vector<8x8x1xf32>
    %123 = tpu.reciprocal %122 {approx = true} : vector<8x8x1xf32> -> vector<8x8x1xf32>
    %124 = vector.broadcast %123 : vector<8x8x1xf32> to vector<8x8x8xf32>
    %125 = arith.mulf %120, %124 : vector<8x8x8xf32>
    %126 = arith.truncf %125 : vector<8x8x8xf32> to vector<8x8x8xbf16>
    %127 = arith.truncf %111 : vector<8x8x32xf32> to vector<8x8x32xbf16>
    "tpu.trace_start"() <{level = 10 : i32, message = "bqk,bkf->bqf"}> : () -> ()
    %cst_46 = arith.constant dense<0.000000e+00> : vector<8x8x32xf32>
    %128 = tpu.matmul %126, %127, %cst_46 {dimension_numbers = #tpu.dot_dimension_numbers<[2], [1], [1], [2], [0, 0, 0, 1, 1, 2], [0], [0]>} : vector<8x8x8xbf16>, vector<8x8x32xbf16>, vector<8x8x32xf32> -> vector<8x8x32xf32>
    "tpu.trace_stop"() : () -> ()
    %129 = tpu.concatenate %108, %128 in 2 : vector<8x8x32xf32>, vector<8x8x32xf32> -> vector<8x8x64xf32>
    %130 = vector.shape_cast %129 : vector<8x8x64xf32> to vector<64x64xf32>
    %131 = arith.truncf %130 : vector<64x64xf32> to vector<64x64xbf16>
    %c0_47 = arith.constant 0 : index
    %c0_48 = arith.constant 0 : index
    %c0_49 = arith.constant 0 : index
    %132 = vector.load %arg11[%c0_47, %c0_48, %c0_49] : memref<2x64x64xbf16, #tpu.memory_space<vmem>>, vector<1x64x64xbf16>
    %133 = vector.shape_cast %132 : vector<1x64x64xbf16> to vector<64x64xbf16>
    %cst_50 = arith.constant dense<0.000000e+00> : vector<64x64xf32>
    %134 = tpu.matmul %131, %133, %cst_50 {dimension_numbers = #tpu.dot_dimension_numbers<[1], [0], [0], [1], [0, 0, 1, 1], [], []>} : vector<64x64xbf16>, vector<64x64xbf16>, vector<64x64xf32> -> vector<64x64xf32>
    %c8 = arith.constant 8 : index
    %c0_51 = arith.constant 0 : index
    %135 = vector.load %arg14[%c8, %c0_51] : memref<30x256xf32, #tpu.memory_space<vmem>>, vector<1x64xf32>
    %136 = vector.broadcast %135 : vector<1x64xf32> to vector<64x64xf32>
    %137 = arith.addf %134, %136 : vector<64x64xf32>
    %138 = arith.addf %76, %137 : vector<64x64xf32>
    %c9 = arith.constant 9 : index
    %c0_52 = arith.constant 0 : index
    %139 = vector.load %arg14[%c9, %c0_52] : memref<30x256xf32, #tpu.memory_space<vmem>>, vector<1x64xf32>
    %c10 = arith.constant 10 : index
    %c0_53 = arith.constant 0 : index
    %140 = vector.load %arg14[%c10, %c0_53] : memref<30x256xf32, #tpu.memory_space<vmem>>, vector<1x64xf32>
    %cst_54 = arith.constant dense<0.000000e+00> : vector<64xf32>
    %141 = vector.multi_reduction <add>, %138, %cst_54 [1] : vector<64x64xf32> to vector<64xf32>
    %142 = vector.shape_cast %141 : vector<64xf32> to vector<64x1xf32>
    %cst_55 = arith.constant 6.400000e+01 : f32
    %143 = vector.broadcast %cst_55 : f32 to vector<64x1xf32>
    %144 = arith.divf %142, %143 : vector<64x1xf32>
    %145 = vector.broadcast %144 : vector<64x1xf32> to vector<64x64xf32>
    %146 = arith.subf %138, %145 : vector<64x64xf32>
    %147 = arith.mulf %146, %146 : vector<64x64xf32>
    %cst_56 = arith.constant dense<0.000000e+00> : vector<64xf32>
    %148 = vector.multi_reduction <add>, %147, %cst_56 [1] : vector<64x64xf32> to vector<64xf32>
    %149 = vector.shape_cast %148 : vector<64xf32> to vector<64x1xf32>
    %cst_57 = arith.constant 6.400000e+01 : f32
    %150 = vector.broadcast %cst_57 : f32 to vector<64x1xf32>
    %151 = arith.divf %149, %150 : vector<64x1xf32>
    %152 = vector.broadcast %144 : vector<64x1xf32> to vector<64x64xf32>
    %153 = arith.subf %138, %152 : vector<64x64xf32>
    %cst_58 = arith.constant 9.99999974E-6 : f32
    %154 = vector.broadcast %cst_58 : f32 to vector<64x1xf32>
    %155 = arith.addf %151, %154 : vector<64x1xf32>
    %156 = math.rsqrt %155 : vector<64x1xf32>
    %157 = vector.broadcast %156 : vector<64x1xf32> to vector<64x64xf32>
    %158 = arith.mulf %153, %157 : vector<64x64xf32>
    %159 = vector.broadcast %139 : vector<1x64xf32> to vector<64x64xf32>
    %160 = arith.mulf %158, %159 : vector<64x64xf32>
    %161 = vector.broadcast %140 : vector<1x64xf32> to vector<64x64xf32>
    %162 = arith.addf %160, %161 : vector<64x64xf32>
    %163 = arith.truncf %162 : vector<64x64xf32> to vector<64x64xbf16>
    %c0_59 = arith.constant 0 : index
    %c0_60 = arith.constant 0 : index
    %c0_61 = arith.constant 0 : index
    %164 = vector.load %arg12[%c0_59, %c0_60, %c0_61] : memref<2x64x64xbf16, #tpu.memory_space<vmem>>, vector<1x64x64xbf16>
    %165 = vector.shape_cast %164 : vector<1x64x64xbf16> to vector<64x64xbf16>
    %cst_62 = arith.constant dense<0.000000e+00> : vector<64x64xf32>
    %166 = tpu.matmul %163, %165, %cst_62 {dimension_numbers = #tpu.dot_dimension_numbers<[1], [0], [0], [1], [0, 0, 1, 1], [], []>} : vector<64x64xbf16>, vector<64x64xbf16>, vector<64x64xf32> -> vector<64x64xf32>
    %c11 = arith.constant 11 : index
    %c0_63 = arith.constant 0 : index
    %167 = vector.load %arg14[%c11, %c0_63] : memref<30x256xf32, #tpu.memory_space<vmem>>, vector<1x64xf32>
    %168 = vector.broadcast %167 : vector<1x64xf32> to vector<64x64xf32>
    %169 = arith.addf %166, %168 : vector<64x64xf32>
    %cst_64 = arith.constant 0.000000e+00 : f32
    %170 = vector.broadcast %cst_64 : f32 to vector<64x64xf32>
    %171 = arith.maximumf %169, %170 : vector<64x64xf32>
    %172 = arith.truncf %171 : vector<64x64xf32> to vector<64x64xbf16>
    %c0_65 = arith.constant 0 : index
    %c0_66 = arith.constant 0 : index
    %c0_67 = arith.constant 0 : index
    %173 = vector.load %arg13[%c0_65, %c0_66, %c0_67] : memref<2x64x64xbf16, #tpu.memory_space<vmem>>, vector<1x64x64xbf16>
    %174 = vector.shape_cast %173 : vector<1x64x64xbf16> to vector<64x64xbf16>
    %cst_68 = arith.constant dense<0.000000e+00> : vector<64x64xf32>
    %175 = tpu.matmul %172, %174, %cst_68 {dimension_numbers = #tpu.dot_dimension_numbers<[1], [0], [0], [1], [0, 0, 1, 1], [], []>} : vector<64x64xbf16>, vector<64x64xbf16>, vector<64x64xf32> -> vector<64x64xf32>
    %c12 = arith.constant 12 : index
    %c0_69 = arith.constant 0 : index
    %176 = vector.load %arg14[%c12, %c0_69] : memref<30x256xf32, #tpu.memory_space<vmem>>, vector<1x64xf32>
    %177 = vector.broadcast %176 : vector<1x64xf32> to vector<64x64xf32>
    %178 = arith.addf %175, %177 : vector<64x64xf32>
    %179 = arith.addf %162, %178 : vector<64x64xf32>
    %c13 = arith.constant 13 : index
    %c0_70 = arith.constant 0 : index
    %180 = vector.load %arg14[%c13, %c0_70] : memref<30x256xf32, #tpu.memory_space<vmem>>, vector<1x64xf32>
    %c14 = arith.constant 14 : index
    %c0_71 = arith.constant 0 : index
    %181 = vector.load %arg14[%c14, %c0_71] : memref<30x256xf32, #tpu.memory_space<vmem>>, vector<1x64xf32>
    %cst_72 = arith.constant dense<0.000000e+00> : vector<64xf32>
    %182 = vector.multi_reduction <add>, %179, %cst_72 [1] : vector<64x64xf32> to vector<64xf32>
    %183 = vector.shape_cast %182 : vector<64xf32> to vector<64x1xf32>
    %cst_73 = arith.constant 6.400000e+01 : f32
    %184 = vector.broadcast %cst_73 : f32 to vector<64x1xf32>
    %185 = arith.divf %183, %184 : vector<64x1xf32>
    %186 = vector.broadcast %185 : vector<64x1xf32> to vector<64x64xf32>
    %187 = arith.subf %179, %186 : vector<64x64xf32>
    %188 = arith.mulf %187, %187 : vector<64x64xf32>
    %cst_74 = arith.constant dense<0.000000e+00> : vector<64xf32>
    %189 = vector.multi_reduction <add>, %188, %cst_74 [1] : vector<64x64xf32> to vector<64xf32>
    %190 = vector.shape_cast %189 : vector<64xf32> to vector<64x1xf32>
    %cst_75 = arith.constant 6.400000e+01 : f32
    %191 = vector.broadcast %cst_75 : f32 to vector<64x1xf32>
    %192 = arith.divf %190, %191 : vector<64x1xf32>
    %193 = vector.broadcast %185 : vector<64x1xf32> to vector<64x64xf32>
    %194 = arith.subf %179, %193 : vector<64x64xf32>
    %cst_76 = arith.constant 9.99999974E-6 : f32
    %195 = vector.broadcast %cst_76 : f32 to vector<64x1xf32>
    %196 = arith.addf %192, %195 : vector<64x1xf32>
    %197 = math.rsqrt %196 : vector<64x1xf32>
    %198 = vector.broadcast %197 : vector<64x1xf32> to vector<64x64xf32>
    %199 = arith.mulf %194, %198 : vector<64x64xf32>
    %200 = vector.broadcast %180 : vector<1x64xf32> to vector<64x64xf32>
    %201 = arith.mulf %199, %200 : vector<64x64xf32>
    %202 = vector.broadcast %181 : vector<1x64xf32> to vector<64x64xf32>
    %203 = arith.addf %201, %202 : vector<64x64xf32>
    %204 = arith.truncf %203 : vector<64x64xf32> to vector<64x64xbf16>
    %c1_77 = arith.constant 1 : index
    %c0_78 = arith.constant 0 : index
    %c0_79 = arith.constant 0 : index
    %205 = vector.load %arg10[%c1_77, %c0_78, %c0_79] : memref<2x64x256xbf16, #tpu.memory_space<vmem>>, vector<1x64x256xbf16>
    %206 = vector.shape_cast %205 : vector<1x64x256xbf16> to vector<64x256xbf16>
    %cst_80 = arith.constant dense<0.000000e+00> : vector<64x256xf32>
    %207 = tpu.matmul %204, %206, %cst_80 {dimension_numbers = #tpu.dot_dimension_numbers<[1], [0], [0], [1], [0, 0, 1, 1], [], []>} : vector<64x64xbf16>, vector<64x256xbf16>, vector<64x256xf32> -> vector<64x256xf32>
    %c15 = arith.constant 15 : index
    %c0_81 = arith.constant 0 : index
    %208 = vector.load %arg14[%c15, %c0_81] : memref<30x256xf32, #tpu.memory_space<vmem>>, vector<1x256xf32>
    %209 = vector.broadcast %208 : vector<1x256xf32> to vector<64x256xf32>
    %210 = arith.addf %207, %209 : vector<64x256xf32>
    %211 = vector.shape_cast %210 : vector<64x256xf32> to vector<8x8x256xf32>
    %212 = vector.extract_strided_slice %211 {offsets = [0, 0, 0], sizes = [8, 8, 32], strides = [1, 1, 1]} : vector<8x8x256xf32> to vector<8x8x32xf32>
    %213 = vector.extract_strided_slice %211 {offsets = [0, 0, 64], sizes = [8, 8, 32], strides = [1, 1, 1]} : vector<8x8x256xf32> to vector<8x8x32xf32>
    %214 = vector.extract_strided_slice %211 {offsets = [0, 0, 128], sizes = [8, 8, 32], strides = [1, 1, 1]} : vector<8x8x256xf32> to vector<8x8x32xf32>
    %215 = arith.truncf %212 : vector<8x8x32xf32> to vector<8x8x32xbf16>
    %216 = arith.truncf %213 : vector<8x8x32xf32> to vector<8x8x32xbf16>
    "tpu.trace_start"() <{level = 10 : i32, message = "bqf,bkf->bqk"}> : () -> ()
    %cst_82 = arith.constant dense<0.000000e+00> : vector<8x8x8xf32>
    %217 = tpu.matmul %215, %216, %cst_82 {dimension_numbers = #tpu.dot_dimension_numbers<[2], [2], [1], [1], [0, 0, 0, 1, 1, 1], [0], [0]>} : vector<8x8x32xbf16>, vector<8x8x32xbf16>, vector<8x8x8xf32> -> vector<8x8x8xf32>
    "tpu.trace_stop"() : () -> ()
    %218 = arith.addf %217, %80 : vector<8x8x8xf32>
    %cst_83 = arith.constant dense<0xFF800000> : vector<8x8xf32>
    %219 = vector.multi_reduction <maximumf>, %218, %cst_83 [2] : vector<8x8x8xf32> to vector<8x8xf32>
    %220 = vector.shape_cast %219 : vector<8x8xf32> to vector<8x8x1xf32>
    %221 = vector.broadcast %220 : vector<8x8x1xf32> to vector<8x8x8xf32>
    %222 = arith.subf %218, %221 : vector<8x8x8xf32>
    %223 = math.exp %222 : vector<8x8x8xf32>
    %cst_84 = arith.constant dense<0.000000e+00> : vector<8x8xf32>
    %224 = vector.multi_reduction <add>, %223, %cst_84 [2] : vector<8x8x8xf32> to vector<8x8xf32>
    %225 = vector.shape_cast %224 : vector<8x8xf32> to vector<8x8x1xf32>
    %226 = tpu.reciprocal %225 {approx = true} : vector<8x8x1xf32> -> vector<8x8x1xf32>
    %227 = vector.broadcast %226 : vector<8x8x1xf32> to vector<8x8x8xf32>
    %228 = arith.mulf %223, %227 : vector<8x8x8xf32>
    %229 = arith.truncf %228 : vector<8x8x8xf32> to vector<8x8x8xbf16>
    %230 = arith.truncf %214 : vector<8x8x32xf32> to vector<8x8x32xbf16>
    "tpu.trace_start"() <{level = 10 : i32, message = "bqk,bkf->bqf"}> : () -> ()
    %cst_85 = arith.constant dense<0.000000e+00> : vector<8x8x32xf32>
    %231 = tpu.matmul %229, %230, %cst_85 {dimension_numbers = #tpu.dot_dimension_numbers<[2], [1], [1], [2], [0, 0, 0, 1, 1, 2], [0], [0]>} : vector<8x8x8xbf16>, vector<8x8x32xbf16>, vector<8x8x32xf32> -> vector<8x8x32xf32>
    "tpu.trace_stop"() : () -> ()
    %232 = vector.extract_strided_slice %211 {offsets = [0, 0, 32], sizes = [8, 8, 32], strides = [1, 1, 1]} : vector<8x8x256xf32> to vector<8x8x32xf32>
    %233 = vector.extract_strided_slice %211 {offsets = [0, 0, 96], sizes = [8, 8, 32], strides = [1, 1, 1]} : vector<8x8x256xf32> to vector<8x8x32xf32>
    %234 = vector.extract_strided_slice %211 {offsets = [0, 0, 160], sizes = [8, 8, 32], strides = [1, 1, 1]} : vector<8x8x256xf32> to vector<8x8x32xf32>
    %235 = arith.truncf %232 : vector<8x8x32xf32> to vector<8x8x32xbf16>
    %236 = arith.truncf %233 : vector<8x8x32xf32> to vector<8x8x32xbf16>
    "tpu.trace_start"() <{level = 10 : i32, message = "bqf,bkf->bqk"}> : () -> ()
    %cst_86 = arith.constant dense<0.000000e+00> : vector<8x8x8xf32>
    %237 = tpu.matmul %235, %236, %cst_86 {dimension_numbers = #tpu.dot_dimension_numbers<[2], [2], [1], [1], [0, 0, 0, 1, 1, 1], [0], [0]>} : vector<8x8x32xbf16>, vector<8x8x32xbf16>, vector<8x8x8xf32> -> vector<8x8x8xf32>
    "tpu.trace_stop"() : () -> ()
    %238 = arith.addf %237, %80 : vector<8x8x8xf32>
    %cst_87 = arith.constant dense<0xFF800000> : vector<8x8xf32>
    %239 = vector.multi_reduction <maximumf>, %238, %cst_87 [2] : vector<8x8x8xf32> to vector<8x8xf32>
    %240 = vector.shape_cast %239 : vector<8x8xf32> to vector<8x8x1xf32>
    %241 = vector.broadcast %240 : vector<8x8x1xf32> to vector<8x8x8xf32>
    %242 = arith.subf %238, %241 : vector<8x8x8xf32>
    %243 = math.exp %242 : vector<8x8x8xf32>
    %cst_88 = arith.constant dense<0.000000e+00> : vector<8x8xf32>
    %244 = vector.multi_reduction <add>, %243, %cst_88 [2] : vector<8x8x8xf32> to vector<8x8xf32>
    %245 = vector.shape_cast %244 : vector<8x8xf32> to vector<8x8x1xf32>
    %246 = tpu.reciprocal %245 {approx = true} : vector<8x8x1xf32> -> vector<8x8x1xf32>
    %247 = vector.broadcast %246 : vector<8x8x1xf32> to vector<8x8x8xf32>
    %248 = arith.mulf %243, %247 : vector<8x8x8xf32>
    %249 = arith.truncf %248 : vector<8x8x8xf32> to vector<8x8x8xbf16>
    %250 = arith.truncf %234 : vector<8x8x32xf32> to vector<8x8x32xbf16>
    "tpu.trace_start"() <{level = 10 : i32, message = "bqk,bkf->bqf"}> : () -> ()
    %cst_89 = arith.constant dense<0.000000e+00> : vector<8x8x32xf32>
    %251 = tpu.matmul %249, %250, %cst_89 {dimension_numbers = #tpu.dot_dimension_numbers<[2], [1], [1], [2], [0, 0, 0, 1, 1, 2], [0], [0]>} : vector<8x8x8xbf16>, vector<8x8x32xbf16>, vector<8x8x32xf32> -> vector<8x8x32xf32>
    "tpu.trace_stop"() : () -> ()
    %252 = tpu.concatenate %231, %251 in 2 : vector<8x8x32xf32>, vector<8x8x32xf32> -> vector<8x8x64xf32>
    %253 = vector.shape_cast %252 : vector<8x8x64xf32> to vector<64x64xf32>
    %254 = arith.truncf %253 : vector<64x64xf32> to vector<64x64xbf16>
    %c1_90 = arith.constant 1 : index
    %c0_91 = arith.constant 0 : index
    %c0_92 = arith.constant 0 : index
    %255 = vector.load %arg11[%c1_90, %c0_91, %c0_92] : memref<2x64x64xbf16, #tpu.memory_space<vmem>>, vector<1x64x64xbf16>
    %256 = vector.shape_cast %255 : vector<1x64x64xbf16> to vector<64x64xbf16>
    %cst_93 = arith.constant dense<0.000000e+00> : vector<64x64xf32>
    %257 = tpu.matmul %254, %256, %cst_93 {dimension_numbers = #tpu.dot_dimension_numbers<[1], [0], [0], [1], [0, 0, 1, 1], [], []>} : vector<64x64xbf16>, vector<64x64xbf16>, vector<64x64xf32> -> vector<64x64xf32>
    %c16 = arith.constant 16 : index
    %c0_94 = arith.constant 0 : index
    %258 = vector.load %arg14[%c16, %c0_94] : memref<30x256xf32, #tpu.memory_space<vmem>>, vector<1x64xf32>
    %259 = vector.broadcast %258 : vector<1x64xf32> to vector<64x64xf32>
    %260 = arith.addf %257, %259 : vector<64x64xf32>
    %261 = arith.addf %203, %260 : vector<64x64xf32>
    %c17 = arith.constant 17 : index
    %c0_95 = arith.constant 0 : index
    %262 = vector.load %arg14[%c17, %c0_95] : memref<30x256xf32, #tpu.memory_space<vmem>>, vector<1x64xf32>
    %c18 = arith.constant 18 : index
    %c0_96 = arith.constant 0 : index
    %263 = vector.load %arg14[%c18, %c0_96] : memref<30x256xf32, #tpu.memory_space<vmem>>, vector<1x64xf32>
    %cst_97 = arith.constant dense<0.000000e+00> : vector<64xf32>
    %264 = vector.multi_reduction <add>, %261, %cst_97 [1] : vector<64x64xf32> to vector<64xf32>
    %265 = vector.shape_cast %264 : vector<64xf32> to vector<64x1xf32>
    %cst_98 = arith.constant 6.400000e+01 : f32
    %266 = vector.broadcast %cst_98 : f32 to vector<64x1xf32>
    %267 = arith.divf %265, %266 : vector<64x1xf32>
    %268 = vector.broadcast %267 : vector<64x1xf32> to vector<64x64xf32>
    %269 = arith.subf %261, %268 : vector<64x64xf32>
    %270 = arith.mulf %269, %269 : vector<64x64xf32>
    %cst_99 = arith.constant dense<0.000000e+00> : vector<64xf32>
    %271 = vector.multi_reduction <add>, %270, %cst_99 [1] : vector<64x64xf32> to vector<64xf32>
    %272 = vector.shape_cast %271 : vector<64xf32> to vector<64x1xf32>
    %cst_100 = arith.constant 6.400000e+01 : f32
    %273 = vector.broadcast %cst_100 : f32 to vector<64x1xf32>
    %274 = arith.divf %272, %273 : vector<64x1xf32>
    %275 = vector.broadcast %267 : vector<64x1xf32> to vector<64x64xf32>
    %276 = arith.subf %261, %275 : vector<64x64xf32>
    %cst_101 = arith.constant 9.99999974E-6 : f32
    %277 = vector.broadcast %cst_101 : f32 to vector<64x1xf32>
    %278 = arith.addf %274, %277 : vector<64x1xf32>
    %279 = math.rsqrt %278 : vector<64x1xf32>
    %280 = vector.broadcast %279 : vector<64x1xf32> to vector<64x64xf32>
    %281 = arith.mulf %276, %280 : vector<64x64xf32>
    %282 = vector.broadcast %262 : vector<1x64xf32> to vector<64x64xf32>
    %283 = arith.mulf %281, %282 : vector<64x64xf32>
    %284 = vector.broadcast %263 : vector<1x64xf32> to vector<64x64xf32>
    %285 = arith.addf %283, %284 : vector<64x64xf32>
    %286 = arith.truncf %285 : vector<64x64xf32> to vector<64x64xbf16>
    %c1_102 = arith.constant 1 : index
    %c0_103 = arith.constant 0 : index
    %c0_104 = arith.constant 0 : index
    %287 = vector.load %arg12[%c1_102, %c0_103, %c0_104] : memref<2x64x64xbf16, #tpu.memory_space<vmem>>, vector<1x64x64xbf16>
    %288 = vector.shape_cast %287 : vector<1x64x64xbf16> to vector<64x64xbf16>
    %cst_105 = arith.constant dense<0.000000e+00> : vector<64x64xf32>
    %289 = tpu.matmul %286, %288, %cst_105 {dimension_numbers = #tpu.dot_dimension_numbers<[1], [0], [0], [1], [0, 0, 1, 1], [], []>} : vector<64x64xbf16>, vector<64x64xbf16>, vector<64x64xf32> -> vector<64x64xf32>
    %c19 = arith.constant 19 : index
    %c0_106 = arith.constant 0 : index
    %290 = vector.load %arg14[%c19, %c0_106] : memref<30x256xf32, #tpu.memory_space<vmem>>, vector<1x64xf32>
    %291 = vector.broadcast %290 : vector<1x64xf32> to vector<64x64xf32>
    %292 = arith.addf %289, %291 : vector<64x64xf32>
    %cst_107 = arith.constant 0.000000e+00 : f32
    %293 = vector.broadcast %cst_107 : f32 to vector<64x64xf32>
    %294 = arith.maximumf %292, %293 : vector<64x64xf32>
    %295 = arith.truncf %294 : vector<64x64xf32> to vector<64x64xbf16>
    %c1_108 = arith.constant 1 : index
    %c0_109 = arith.constant 0 : index
    %c0_110 = arith.constant 0 : index
    %296 = vector.load %arg13[%c1_108, %c0_109, %c0_110] : memref<2x64x64xbf16, #tpu.memory_space<vmem>>, vector<1x64x64xbf16>
    %297 = vector.shape_cast %296 : vector<1x64x64xbf16> to vector<64x64xbf16>
    %cst_111 = arith.constant dense<0.000000e+00> : vector<64x64xf32>
    %298 = tpu.matmul %295, %297, %cst_111 {dimension_numbers = #tpu.dot_dimension_numbers<[1], [0], [0], [1], [0, 0, 1, 1], [], []>} : vector<64x64xbf16>, vector<64x64xbf16>, vector<64x64xf32> -> vector<64x64xf32>
    %c20 = arith.constant 20 : index
    %c0_112 = arith.constant 0 : index
    %299 = vector.load %arg14[%c20, %c0_112] : memref<30x256xf32, #tpu.memory_space<vmem>>, vector<1x64xf32>
    %300 = vector.broadcast %299 : vector<1x64xf32> to vector<64x64xf32>
    %301 = arith.addf %298, %300 : vector<64x64xf32>
    %302 = arith.addf %285, %301 : vector<64x64xf32>
    %c21 = arith.constant 21 : index
    %c0_113 = arith.constant 0 : index
    %303 = vector.load %arg14[%c21, %c0_113] : memref<30x256xf32, #tpu.memory_space<vmem>>, vector<1x64xf32>
    %c22 = arith.constant 22 : index
    %c0_114 = arith.constant 0 : index
    %304 = vector.load %arg14[%c22, %c0_114] : memref<30x256xf32, #tpu.memory_space<vmem>>, vector<1x64xf32>
    %cst_115 = arith.constant dense<0.000000e+00> : vector<64xf32>
    %305 = vector.multi_reduction <add>, %302, %cst_115 [1] : vector<64x64xf32> to vector<64xf32>
    %306 = vector.shape_cast %305 : vector<64xf32> to vector<64x1xf32>
    %cst_116 = arith.constant 6.400000e+01 : f32
    %307 = vector.broadcast %cst_116 : f32 to vector<64x1xf32>
    %308 = arith.divf %306, %307 : vector<64x1xf32>
    %309 = vector.broadcast %308 : vector<64x1xf32> to vector<64x64xf32>
    %310 = arith.subf %302, %309 : vector<64x64xf32>
    %311 = arith.mulf %310, %310 : vector<64x64xf32>
    %cst_117 = arith.constant dense<0.000000e+00> : vector<64xf32>
    %312 = vector.multi_reduction <add>, %311, %cst_117 [1] : vector<64x64xf32> to vector<64xf32>
    %313 = vector.shape_cast %312 : vector<64xf32> to vector<64x1xf32>
    %cst_118 = arith.constant 6.400000e+01 : f32
    %314 = vector.broadcast %cst_118 : f32 to vector<64x1xf32>
    %315 = arith.divf %313, %314 : vector<64x1xf32>
    %316 = vector.broadcast %308 : vector<64x1xf32> to vector<64x64xf32>
    %317 = arith.subf %302, %316 : vector<64x64xf32>
    %cst_119 = arith.constant 9.99999974E-6 : f32
    %318 = vector.broadcast %cst_119 : f32 to vector<64x1xf32>
    %319 = arith.addf %315, %318 : vector<64x1xf32>
    %320 = math.rsqrt %319 : vector<64x1xf32>
    %321 = vector.broadcast %320 : vector<64x1xf32> to vector<64x64xf32>
    %322 = arith.mulf %317, %321 : vector<64x64xf32>
    %323 = vector.broadcast %303 : vector<1x64xf32> to vector<64x64xf32>
    %324 = arith.mulf %322, %323 : vector<64x64xf32>
    %325 = vector.broadcast %304 : vector<1x64xf32> to vector<64x64xf32>
    %326 = arith.addf %324, %325 : vector<64x64xf32>
    %327 = vector.shape_cast %326 : vector<64x64xf32> to vector<8x8x64xf32>
    %328 = vector.extract_strided_slice %327 {offsets = [0, 0, 0], sizes = [8, 1, 64], strides = [1, 1, 1]} : vector<8x8x64xf32> to vector<8x1x64xf32>
    %329 = vector.shape_cast %328 : vector<8x1x64xf32> to vector<8x64xf32>
    %330 = arith.truncf %329 : vector<8x64xf32> to vector<8x64xbf16>
    %c0_120 = arith.constant 0 : index
    %c0_121 = arith.constant 0 : index
    %331 = vector.load %arg7[%c0_120, %c0_121] : memref<64x128xbf16, #tpu.memory_space<vmem>>, vector<64x128xbf16>
    %cst_122 = arith.constant dense<0.000000e+00> : vector<8x128xf32>
    %332 = tpu.matmul %330, %331, %cst_122 {dimension_numbers = #tpu.dot_dimension_numbers<[1], [0], [0], [1], [0, 0, 1, 1], [], []>} : vector<8x64xbf16>, vector<64x128xbf16>, vector<8x128xf32> -> vector<8x128xf32>
    %c23 = arith.constant 23 : index
    %c0_123 = arith.constant 0 : index
    %333 = vector.load %arg14[%c23, %c0_123] : memref<30x256xf32, #tpu.memory_space<vmem>>, vector<1x128xf32>
    %334 = vector.broadcast %333 : vector<1x128xf32> to vector<8x128xf32>
    %335 = arith.addf %332, %334 : vector<8x128xf32>
    %c24 = arith.constant 24 : index
    %c0_124 = arith.constant 0 : index
    %336 = vector.load %arg14[%c24, %c0_124] : memref<30x256xf32, #tpu.memory_space<vmem>>, vector<1x128xf32>
    %c25 = arith.constant 25 : index
    %c0_125 = arith.constant 0 : index
    %337 = vector.load %arg14[%c25, %c0_125] : memref<30x256xf32, #tpu.memory_space<vmem>>, vector<1x128xf32>
    %cst_126 = arith.constant dense<0.000000e+00> : vector<8xf32>
    %338 = vector.multi_reduction <add>, %335, %cst_126 [1] : vector<8x128xf32> to vector<8xf32>
    %339 = vector.shape_cast %338 : vector<8xf32> to vector<8x1xf32>
    %cst_127 = arith.constant 1.280000e+02 : f32
    %340 = vector.broadcast %cst_127 : f32 to vector<8x1xf32>
    %341 = arith.divf %339, %340 : vector<8x1xf32>
    %342 = vector.broadcast %341 : vector<8x1xf32> to vector<8x128xf32>
    %343 = arith.subf %335, %342 : vector<8x128xf32>
    %344 = arith.mulf %343, %343 : vector<8x128xf32>
    %cst_128 = arith.constant dense<0.000000e+00> : vector<8xf32>
    %345 = vector.multi_reduction <add>, %344, %cst_128 [1] : vector<8x128xf32> to vector<8xf32>
    %346 = vector.shape_cast %345 : vector<8xf32> to vector<8x1xf32>
    %cst_129 = arith.constant 1.280000e+02 : f32
    %347 = vector.broadcast %cst_129 : f32 to vector<8x1xf32>
    %348 = arith.divf %346, %347 : vector<8x1xf32>
    %349 = vector.broadcast %341 : vector<8x1xf32> to vector<8x128xf32>
    %350 = arith.subf %335, %349 : vector<8x128xf32>
    %cst_130 = arith.constant 9.99999974E-6 : f32
    %351 = vector.broadcast %cst_130 : f32 to vector<8x1xf32>
    %352 = arith.addf %348, %351 : vector<8x1xf32>
    %353 = math.rsqrt %352 : vector<8x1xf32>
    %354 = vector.broadcast %353 : vector<8x1xf32> to vector<8x128xf32>
    %355 = arith.mulf %350, %354 : vector<8x128xf32>
    %356 = vector.broadcast %336 : vector<1x128xf32> to vector<8x128xf32>
    %357 = arith.mulf %355, %356 : vector<8x128xf32>
    %358 = vector.broadcast %337 : vector<1x128xf32> to vector<8x128xf32>
    %359 = arith.addf %357, %358 : vector<8x128xf32>
    %cst_131 = arith.constant 0.000000e+00 : f32
    %360 = vector.broadcast %cst_131 : f32 to vector<8x128xf32>
    %361 = arith.maximumf %359, %360 : vector<8x128xf32>
    %362 = arith.truncf %361 : vector<8x128xf32> to vector<8x128xbf16>
    %c0_132 = arith.constant 0 : index
    %c0_133 = arith.constant 0 : index
    %363 = vector.load %arg8[%c0_132, %c0_133] : memref<128x64xbf16, #tpu.memory_space<vmem>>, vector<128x64xbf16>
    %cst_134 = arith.constant dense<0.000000e+00> : vector<8x64xf32>
    %364 = tpu.matmul %362, %363, %cst_134 {dimension_numbers = #tpu.dot_dimension_numbers<[1], [0], [0], [1], [0, 0, 1, 1], [], []>} : vector<8x128xbf16>, vector<128x64xbf16>, vector<8x64xf32> -> vector<8x64xf32>
    %c26 = arith.constant 26 : index
    %c0_135 = arith.constant 0 : index
    %365 = vector.load %arg14[%c26, %c0_135] : memref<30x256xf32, #tpu.memory_space<vmem>>, vector<1x64xf32>
    %366 = vector.broadcast %365 : vector<1x64xf32> to vector<8x64xf32>
    %367 = arith.addf %364, %366 : vector<8x64xf32>
    %c27 = arith.constant 27 : index
    %c0_136 = arith.constant 0 : index
    %368 = vector.load %arg14[%c27, %c0_136] : memref<30x256xf32, #tpu.memory_space<vmem>>, vector<1x64xf32>
    %c28 = arith.constant 28 : index
    %c0_137 = arith.constant 0 : index
    %369 = vector.load %arg14[%c28, %c0_137] : memref<30x256xf32, #tpu.memory_space<vmem>>, vector<1x64xf32>
    %cst_138 = arith.constant dense<0.000000e+00> : vector<8xf32>
    %370 = vector.multi_reduction <add>, %367, %cst_138 [1] : vector<8x64xf32> to vector<8xf32>
    %371 = vector.shape_cast %370 : vector<8xf32> to vector<8x1xf32>
    %cst_139 = arith.constant 6.400000e+01 : f32
    %372 = vector.broadcast %cst_139 : f32 to vector<8x1xf32>
    %373 = arith.divf %371, %372 : vector<8x1xf32>
    %374 = vector.broadcast %373 : vector<8x1xf32> to vector<8x64xf32>
    %375 = arith.subf %367, %374 : vector<8x64xf32>
    %376 = arith.mulf %375, %375 : vector<8x64xf32>
    %cst_140 = arith.constant dense<0.000000e+00> : vector<8xf32>
    %377 = vector.multi_reduction <add>, %376, %cst_140 [1] : vector<8x64xf32> to vector<8xf32>
    %378 = vector.shape_cast %377 : vector<8xf32> to vector<8x1xf32>
    %cst_141 = arith.constant 6.400000e+01 : f32
    %379 = vector.broadcast %cst_141 : f32 to vector<8x1xf32>
    %380 = arith.divf %378, %379 : vector<8x1xf32>
    %381 = vector.broadcast %373 : vector<8x1xf32> to vector<8x64xf32>
    %382 = arith.subf %367, %381 : vector<8x64xf32>
    %cst_142 = arith.constant 9.99999974E-6 : f32
    %383 = vector.broadcast %cst_142 : f32 to vector<8x1xf32>
    %384 = arith.addf %380, %383 : vector<8x1xf32>
    %385 = math.rsqrt %384 : vector<8x1xf32>
    %386 = vector.broadcast %385 : vector<8x1xf32> to vector<8x64xf32>
    %387 = arith.mulf %382, %386 : vector<8x64xf32>
    %388 = vector.broadcast %368 : vector<1x64xf32> to vector<8x64xf32>
    %389 = arith.mulf %387, %388 : vector<8x64xf32>
    %390 = vector.broadcast %369 : vector<1x64xf32> to vector<8x64xf32>
    %391 = arith.addf %389, %390 : vector<8x64xf32>
    %cst_143 = arith.constant 0.000000e+00 : f32
    %392 = vector.broadcast %cst_143 : f32 to vector<8x64xf32>
    %393 = arith.maximumf %391, %392 : vector<8x64xf32>
    %394 = arith.truncf %393 : vector<8x64xf32> to vector<8x64xbf16>
    %c0_144 = arith.constant 0 : index
    %c0_145 = arith.constant 0 : index
    %395 = vector.load %arg9[%c0_144, %c0_145] : memref<64x128xbf16, #tpu.memory_space<vmem>>, vector<64x128xbf16>
    %cst_146 = arith.constant dense<0.000000e+00> : vector<8x128xf32>
    %396 = tpu.matmul %394, %395, %cst_146 {dimension_numbers = #tpu.dot_dimension_numbers<[1], [0], [0], [1], [0, 0, 1, 1], [], []>} : vector<8x64xbf16>, vector<64x128xbf16>, vector<8x128xf32> -> vector<8x128xf32>
    %c29 = arith.constant 29 : index
    %c0_147 = arith.constant 0 : index
    %397 = vector.load %arg14[%c29, %c0_147] : memref<30x256xf32, #tpu.memory_space<vmem>>, vector<1x128xf32>
    %398 = vector.broadcast %397 : vector<1x128xf32> to vector<8x128xf32>
    %399 = arith.addf %396, %398 : vector<8x128xf32>
    %c0_148 = arith.constant 0 : index
    %c0_149 = arith.constant 0 : index
    %400 = vector.load %arg15[%c0_148, %c0_149] : memref<8x128xf32, #tpu.memory_space<vmem>>, vector<8x128xf32>
    tpu.vector_store %arg15[%c0_148, %c0_149], %399 {strides = array<i32>} : memref<8x128xf32, #tpu.memory_space<vmem>>, vector<8x128xf32>,
    return
  }
  func.func @transform_0(%arg0: i32) -> (i32, i32) {
    %c0_i32 = arith.constant 0 : i32
    %c0_i32_0 = arith.constant 0 : i32
    return %arg0, %c0_i32 : i32, i32
  }
  func.func @transform_1(%arg0: i32) -> (i32, i32, i32) {
    %c0_i32 = arith.constant 0 : i32
    %c0_i32_0 = arith.constant 0 : i32
    %c0_i32_1 = arith.constant 0 : i32
    return %arg0, %c0_i32, %c0_i32_0 : i32, i32, i32
  }
  func.func @transform_2(%arg0: i32) -> (i32, i32) {
    %c0_i32 = arith.constant 0 : i32
    %c0_i32_0 = arith.constant 0 : i32
    return %arg0, %c0_i32 : i32, i32
  }
  func.func @transform_3(%arg0: i32) -> (i32, i32) {
    %c0_i32 = arith.constant 0 : i32
    %c0_i32_0 = arith.constant 0 : i32
    %c0_i32_1 = arith.constant 0 : i32
    return %c0_i32, %c0_i32_0 : i32, i32
  }
  func.func @transform_4(%arg0: i32) -> (i32, i32) {
    %c0_i32 = arith.constant 0 : i32
    %c0_i32_0 = arith.constant 0 : i32
    %c0_i32_1 = arith.constant 0 : i32
    return %c0_i32, %c0_i32_0 : i32, i32
  }
  func.func @transform_5(%arg0: i32) -> (i32, i32) {
    %c0_i32 = arith.constant 0 : i32
    %c0_i32_0 = arith.constant 0 : i32
    %c0_i32_1 = arith.constant 0 : i32
    return %c0_i32, %c0_i32_0 : i32, i32
  }
  func.func @transform_6(%arg0: i32) -> (i32, i32) {
    %c0_i32 = arith.constant 0 : i32
    %c0_i32_0 = arith.constant 0 : i32
    %c0_i32_1 = arith.constant 0 : i32
    return %c0_i32, %c0_i32_0 : i32, i32
  }
  func.func @transform_7(%arg0: i32) -> (i32, i32) {
    %c0_i32 = arith.constant 0 : i32
    %c0_i32_0 = arith.constant 0 : i32
    %c0_i32_1 = arith.constant 0 : i32
    return %c0_i32, %c0_i32_0 : i32, i32
  }
  func.func @transform_8(%arg0: i32) -> (i32, i32) {
    %c0_i32 = arith.constant 0 : i32
    %c0_i32_0 = arith.constant 0 : i32
    %c0_i32_1 = arith.constant 0 : i32
    return %c0_i32, %c0_i32_0 : i32, i32
  }
  func.func @transform_9(%arg0: i32) -> (i32, i32, i32) {
    %c0_i32 = arith.constant 0 : i32
    %c0_i32_0 = arith.constant 0 : i32
    %c0_i32_1 = arith.constant 0 : i32
    %c0_i32_2 = arith.constant 0 : i32
    return %c0_i32, %c0_i32_0, %c0_i32_1 : i32, i32, i32
  }
  func.func @transform_10(%arg0: i32) -> (i32, i32, i32) {
    %c0_i32 = arith.constant 0 : i32
    %c0_i32_0 = arith.constant 0 : i32
    %c0_i32_1 = arith.constant 0 : i32
    %c0_i32_2 = arith.constant 0 : i32
    return %c0_i32, %c0_i32_0, %c0_i32_1 : i32, i32, i32
  }
  func.func @transform_11(%arg0: i32) -> (i32, i32, i32) {
    %c0_i32 = arith.constant 0 : i32
    %c0_i32_0 = arith.constant 0 : i32
    %c0_i32_1 = arith.constant 0 : i32
    %c0_i32_2 = arith.constant 0 : i32
    return %c0_i32, %c0_i32_0, %c0_i32_1 : i32, i32, i32
  }
  func.func @transform_12(%arg0: i32) -> (i32, i32, i32) {
    %c0_i32 = arith.constant 0 : i32
    %c0_i32_0 = arith.constant 0 : i32
    %c0_i32_1 = arith.constant 0 : i32
    %c0_i32_2 = arith.constant 0 : i32
    return %c0_i32, %c0_i32_0, %c0_i32_1 : i32, i32, i32
  }
  func.func @transform_13(%arg0: i32) -> (i32, i32) {
    %c0_i32 = arith.constant 0 : i32
    %c0_i32_0 = arith.constant 0 : i32
    %c0_i32_1 = arith.constant 0 : i32
    return %c0_i32, %c0_i32_0 : i32, i32
  }
  func.func @transform_14(%arg0: i32) -> (i32, i32) {
    %c0_i32 = arith.constant 0 : i32
    %c0_i32_0 = arith.constant 0 : i32
    return %arg0, %c0_i32 : i32, i32
  }
}

</mosaic_0001>

<bundles_post_ra>
// kernel: tpu_custom_call.1
= control target key start
LH: loop header
LB: loop body
LE: loop exit
PB: predicated region body
PF: predicated region fallthrough
CT: control target
= control target key end

     0   :  { %s10508_s0 = inlined_call_operand.hbm [shape: f32[16,16], index: 0, kind: input, shape index: {}]   ;;  %s10509_s1 = inlined_call_operand.vmem [shape: f32[16,8,64], index: 1, kind: input, shape index: {}]   ;;  %s10510_s2 = inlined_call_operand.vmem [shape: f32[16,8], index: 2, kind: input, shape index: {}]   ;;  %s10511_s3 = inlined_call_operand.hbm [shape: bf16[16,128], index: 3, kind: input, shape index: {}]   ;;  %s10512_s4 = inlined_call_operand.vmem [shape: bf16[128,64], index: 4, kind: input, shape index: {}]   ;;  %s10513_s5 = inlined_call_operand.hbm [shape: bf16[64,64], index: 5, kind: input, shape index: {}]   ;;  %s10514_s6 = inlined_call_operand.hbm [shape: bf16[64,128], index: 6, kind: input, shape index: {}]   ;;  %s10515_s7 = inlined_call_operand.vmem [shape: bf16[128,64], index: 7, kind: input, shape index: {}]   ;;  %s10516_s8 = inlined_call_operand.hbm [shape: bf16[64,128], index: 8, kind: input, shape index: {}]   ;;  %s10517_s9 = inlined_call_operand.hbm [shape: bf16[2,64,256], index: 9, kind: input, shape index: {}]   ;;  %s10518_s10 = inlined_call_operand.vmem [shape: bf16[2,64,64], index: 10, kind: input, shape index: {}]   ;;  %s10519_s11 = inlined_call_operand.vmem [shape: bf16[2,64,64], index: 11, kind: input, shape index: {}]   ;;  %s10520_s12 = inlined_call_operand.hbm [shape: bf16[2,64,64], index: 12, kind: input, shape index: {}]   ;;  %s10521_s13 = inlined_call_operand.hbm [shape: f32[30,256], index: 13, kind: input, shape index: {}]   ;;  %s10522_s14 = inlined_call_operand.hbm [shape: f32[16,128], index: 14, kind: output, shape index: {}]  }
   0x1   :  { %10534 = sst [smem:[#allocation23_spill]] %s10509_s1 }
   0x2   :  { %10535 = sst [smem:[#allocation24_spill]] %s10510_s2 }
   0x3   :  { %10536 = sst [smem:[#allocation25_spill]] %s10511_s3 }
   0x4   :  { %10537 = sst [smem:[#allocation26_spill]] %s10514_s6 }
   0x5   :  { %10538 = sst [smem:[#allocation27_spill]] %s10515_s7 }
   0x6   :  { %10539 = sst [smem:[#allocation28_spill]] %s10518_s10 }
   0x7   :  { %10540 = sst [smem:[#allocation29_spill]] %s10519_s11 }
   0x8   :  { %10541 = sst [smem:[#allocation30_spill]] %s10522_s14 }
   0x9   :  { %19 = vsyncpa [#allocation3], 0 }
   0xa   :  { %21 = vsyncpa [#allocation3 + $0x1], 0 }
   0xb   :  { %22 = vsyncpa [#allocation6], 0 }
   0xc   :  { %23 = vsyncpa [#allocation9], 0 }
   0xd   :  { %24 = vsyncpa [#allocation12], 0 }
   0xe   :  { %25 = vsyncpa [#allocation15], 0 }
   0xf   :  { %26 = vsyncpa [#allocation4], 0 }
  0x10   :  { %28 = vsyncpa [#allocation4 + $0x1], 0  ;;  %s8581_s29 = smov 0   ;;  %s8583_s30 = smov 0  }
  0x11   :  { %s8585_s15 = smov 0   ;;  %s8587_s16 = smov 0  }
  0x12 LB: > { %s8484_s17 = smov [#allocation5]   ;;  %s8602_s19 = sadd.s32 4294967295, %s8482_s16   ;;  %s8482_s16 = sphi %s8587_s16, %s10575_s16   ;;  %s8478_s15 = sphi %s8585_s15, %s10574_s15   ;;  %s8474_s30 = sphi %s8583_s30, %s10573_s30   ;;  %s8470_s29 = sphi %s8581_s29, %s10572_s29  }
  0x13   : > { %s386_s18 = sshll.u32 %s8484_s17, 4  ;;  %p6740_p0 = scmp.ge.s32.totalorder %s8482_s16, 1  ;;  %s8607_s18 = int_to_ptr.vmem [resolvable:$true] %s386_s18 }
  0x14   : > { %p10531_p1 = scmp.eq.s32.totalorder %s8602_s19, 0  ;;  %p374_p2 = scmp.lt.s32.totalorder %s8482_s16, 3 }
  0x15   : > { %s8485_s21 = smov [#allocation8]   ;;  %s8486_s24 = smov [#allocation11]  }
  0x16   : > { %p8609_p3 = pnand %p6740_p0, %p374_p2  ;;  %s415_s22 = sshll.u32 %s8485_s21, 4  ;;  %s8622_s22 = int_to_ptr.vmem [resolvable:$true] %s415_s22 }
  0x17   : > { %s444_s25 = sshll.u32 %s8486_s24, 4  ;;  %s10544_s3 = sld [smem:[#allocation25_spill]]  ;;  %s8624_s25 = int_to_ptr.vmem [resolvable:$true] %s444_s25 }
  0x18   : > { %s10542_s20 = scalar_select %p8609_p3, 1, 0 }
  0x19   : > { %p7758_p5 = pneg %p8609_p3 }
  0x1b   : > { %p8618_p6 = pnand %p7758_p5, %p10531_p1 }
  0x1d   : > { %s8174_s28 = scalar_lea.hbm %s10544_s3, 128  ;;  %p8634_p8 = pneg %p8618_p6 }
  0x1e   : > { %p8175_p7 = scmp.ne.s32.totalorder %s10544_s3, %s8174_s28  ;;  %p8181_p11 = scmp.lt.u32.totalorder %s8174_s28, %s10544_s3 }
  0x20   : > { %p8177_p9 = pnand %p8634_p8, %p8175_p7 }
  0x22   : > { %p8178_p10 = pneg %p8177_p9 }
  0x24   : > { %p8183_p12 = pnand %p8181_p11, %p8178_p10 }
  0x26   : > { %8186 = shalt.err (!%p8183_p12)
}
  0x27   : > { %s8187_s14 = scalar_lea.vmem %s8607_s18, 128  ;;  %p8195_p5 = scmp.lt.s32.totalorder %s8607_s18, %s8607_s18 }
  0x28   : > { %p8188_p13 = scmp.ne.s32.totalorder %s8607_s18, %s8187_s14  ;;  %p8196_p4 = scmp.lt.s32.totalorder %s8187_s14, %s8187_s14 }
  0x2a   : > { %p8190_p0 = pnand %p8188_p13, %p8634_p8  ;;  %p8197_p7 = por %p8196_p4, %p8195_p5 }
  0x2c   : > { %p8191_p2 = pneg %p8190_p0 }
  0x2e   : > { %p8198_p9 = pnand %p8197_p7, %p8191_p2 }
  0x30   : > { %8201 = shalt.err (!%p8198_p9)
}
  0x31   : > { %s10527_s26 = smov 64   ;;  %s10529_s7 = smov 4  }
  0x32   : > { %7761 = dma.hbm_to_vmem [thread:$0]  (!%p8618_p6), %s10544_s3, 128, %s8607_s18, [#allocation6], %s10527_s26, %s10527_s26, %s10529_s7  }
  0x33   : > { %s10546_s6 = sld [smem:[#allocation26_spill]] }
  0x39   : > { %s8202_s14 = scalar_lea.hbm %s10546_s6, 512 }
  0x3a   : > { %p8203_p4 = scmp.ne.s32.totalorder %s10546_s6, %s8202_s14  ;;  %p8209_p12 = scmp.lt.u32.totalorder %s8202_s14, %s10546_s6 }
  0x3c   : > { %p8205_p10 = pnand %p8203_p4, %p8634_p8 }
  0x3e   : > { %p8206_p11 = pneg %p8205_p10 }
  0x40   : > { %p8211_p13 = pnand %p8209_p12, %p8206_p11 }
  0x42   : > { %8214 = shalt.err (!%p8211_p13)
}
  0x43   : > { %s8215_s18 = scalar_lea.vmem %s8622_s22, 512  ;;  %p8223_p7 = scmp.lt.s32.totalorder %s8622_s22, %s8622_s22 }
  0x44   : > { %p8216_p0 = scmp.ne.s32.totalorder %s8622_s22, %s8215_s18  ;;  %p8224_p9 = scmp.lt.s32.totalorder %s8215_s18, %s8215_s18 }
  0x46   : > { %p8218_p2 = pnand %p8216_p0, %p8634_p8  ;;  %p8225_p4 = por %p8224_p9, %p8223_p7 }
  0x48   : > { %p8219_p5 = pneg %p8218_p2 }
  0x4a   : > { %p8226_p10 = pnand %p8225_p4, %p8219_p5 }
  0x4c   : > { %8229 = shalt.err (!%p8226_p10)
}
  0x4d   : > { %7767 = dma.hbm_to_vmem [thread:$0]  (!%p8618_p6), %s10546_s6, 512, %s8622_s22, [#allocation9], %s10527_s26, %s10527_s26, %s10529_s7  }
  0x4e   : > { %s8230_s27 = scalar_lea.hbm %s10517_s9, 2048 }
  0x4f   : > { %p8231_p11 = scmp.ne.s32.totalorder %s10517_s9, %s8230_s27  ;;  %p8237_p0 = scmp.lt.u32.totalorder %s8230_s27, %s10517_s9 }
  0x51   : > { %p8233_p12 = pnand %p8231_p11, %p8634_p8 }
  0x53   : > { %p8234_p13 = pneg %p8233_p12 }
  0x55   : > { %p8239_p2 = pnand %p8237_p0, %p8234_p13 }
  0x57   : > { %8242 = shalt.err (!%p8239_p2)
}
  0x58   : > { %s8243_s22 = scalar_lea.vmem %s8624_s25, 2048  ;;  %p8251_p4 = scmp.lt.s32.totalorder %s8624_s25, %s8624_s25 }
  0x59   : > { %p8244_p5 = scmp.ne.s32.totalorder %s8624_s25, %s8243_s22  ;;  %p8252_p10 = scmp.lt.s32.totalorder %s8243_s22, %s8243_s22 }
  0x5b   : > { %p8246_p7 = pnand %p8244_p5, %p8634_p8  ;;  %p8253_p11 = por %p8252_p10, %p8251_p4 }
  0x5d   : > { %p8247_p9 = pneg %p8246_p7 }
  0x5f   : > { %p8254_p12 = pnand %p8253_p11, %p8247_p9 }
  0x61   : > { %8257 = shalt.err (!%p8254_p12)
}
  0x62   : > { %s8489_s18 = smov 128   ;;  %s8490_s1 = smov 8  }
  0x63   : > { %7773 = dma.hbm_to_vmem [thread:$0]  (!%p8618_p6), %s10517_s9, 2048, %s8624_s25, [#allocation12], %s8489_s18, %s8489_s18, %s8490_s1  }
  0x64   : > { %s8491_s11 = smov [#allocation7]   ;;  %s8492_s28 = smov [#allocation10]  }
  0x65   : > { %s402_s27 = sshll.u32 %s8491_s11, 4  ;;  %s431_s17 = sshll.u32 %s8492_s28, 4  ;;  %s403_s27 = int_to_ptr.vmem [resolvable:$true] %s402_s27  ;;  %s432_s17 = int_to_ptr.vmem [resolvable:$true] %s431_s17 }
  0x66   : > { %s8258_s22 = scalar_lea.hbm %s10513_s5, 512 }
  0x67   : > { %p8259_p13 = scmp.ne.s32.totalorder %s10513_s5, %s8258_s22  ;;  %p8265_p5 = scmp.lt.u32.totalorder %s8258_s22, %s10513_s5 }
  0x69   : > { %p8261_p0 = pnand %p8259_p13, %p8634_p8 }
  0x6b   : > { %p8262_p2 = pneg %p8261_p0 }
  0x6d   : > { %p8267_p7 = pnand %p8265_p5, %p8262_p2 }
  0x6f   : > { %8270 = shalt.err (!%p8267_p7)
}
  0x70   : > { %s8271_s25 = scalar_lea.vmem %s403_s27, 512  ;;  %p8279_p11 = scmp.lt.s32.totalorder %s403_s27, %s403_s27 }
  0x71   : > { %p8272_p9 = scmp.ne.s32.totalorder %s403_s27, %s8271_s25  ;;  %p8280_p12 = scmp.lt.s32.totalorder %s8271_s25, %s8271_s25 }
  0x73   : > { %p8274_p4 = pnand %p8272_p9, %p8634_p8  ;;  %p8281_p1 = por %p8280_p12, %p8279_p11 }
  0x75   : > { %p8275_p10 = pneg %p8274_p4 }
  0x77   : > { %p8282_p3 = pnand %p8281_p1, %p8275_p10 }
  0x79   : > { %8285 = shalt.err (!%p8282_p3)
}
  0x7a   : > { %s10547_s26 = smov 4   ;;  %s10548_s7 = smov 64  }
  0x7b   : > { %7764 = dma.hbm_to_vmem [thread:$0]  (!%p8618_p6), %s10513_s5, 512, %s403_s27, [#allocation6], %s10548_s7, %s10548_s7, %s10547_s26  }
  0x7c   : > { %s8286_s2 = scalar_lea.hbm %s10516_s8, 512 }
  0x7d   : > { %p8287_p1 = scmp.ne.s32.totalorder %s10516_s8, %s8286_s2  ;;  %p8293_p0 = scmp.lt.u32.totalorder %s8286_s2, %s10516_s8 }
  0x7f   : > { %p8289_p3 = pnand %p8287_p1, %p8634_p8 }
  0x81   : > { %p8290_p13 = pneg %p8289_p3 }
  0x83   : > { %p8295_p2 = pnand %p8293_p0, %p8290_p13 }
  0x85   : > { %8298 = shalt.err (!%p8295_p2)
}
  0x86   : > { %s8299_s14 = scalar_lea.vmem %s432_s17, 512  ;;  %p8307_p4 = scmp.lt.s32.totalorder %s432_s17, %s432_s17 }
  0x87   : > { %p8300_p5 = scmp.ne.s32.totalorder %s432_s17, %s8299_s14  ;;  %p8308_p10 = scmp.lt.s32.totalorder %s8299_s14, %s8299_s14 }
  0x89   : > { %p8302_p7 = pnand %p8300_p5, %p8634_p8  ;;  %p8309_p11 = por %p8308_p10, %p8307_p4 }
  0x8b   : > { %p8303_p9 = pneg %p8302_p7 }
  0x8d   : > { %p8310_p12 = pnand %p8309_p11, %p8303_p9 }
  0x8f   : > { %8313 = shalt.err (!%p8310_p12)
}
  0x90   : > { %7770 = dma.hbm_to_vmem [thread:$0]  (!%p8618_p6), %s10516_s8, 512, %s432_s17, [#allocation9], %s10548_s7, %s10548_s7, %s10547_s26  }
  0x91   : > { %s8493_s25 = smov [#allocation13]   ;;  %s8494_s6 = smov [#allocation14]  }
  0x92   : > { %s463_s3 = sshll.u32 %s8493_s25, 4  ;;  %s476_s18 = sshll.u32 %s8494_s6, 4  ;;  %s464_s3 = int_to_ptr.vmem [resolvable:$true] %s463_s3  ;;  %s477_s18 = int_to_ptr.vmem [resolvable:$true] %s476_s18 }
  0x93   : > { %s8314_s10 = scalar_lea.hbm %s10520_s12, 1024 }
  0x94   : > { %p8315_p1 = scmp.ne.s32.totalorder %s10520_s12, %s8314_s10  ;;  %p8321_p0 = scmp.lt.u32.totalorder %s8314_s10, %s10520_s12 }
  0x96   : > { %p8317_p3 = pnand %p8315_p1, %p8634_p8 }
  0x98   : > { %p8318_p13 = pneg %p8317_p3 }
  0x9a   : > { %p8323_p2 = pnand %p8321_p0, %p8318_p13 }
  0x9c   : > { %8326 = shalt.err (!%p8323_p2)
}
  0x9d   : > { %s8327_s17 = scalar_lea.vmem %s464_s3, 1024  ;;  %p8335_p4 = scmp.lt.s32.totalorder %s464_s3, %s464_s3 }
  0x9e   : > { %p8328_p5 = scmp.ne.s32.totalorder %s464_s3, %s8327_s17  ;;  %p8336_p10 = scmp.lt.s32.totalorder %s8327_s17, %s8327_s17 }
  0xa0   : > { %p8330_p7 = pnand %p8328_p5, %p8634_p8  ;;  %p8337_p11 = por %p8336_p10, %p8335_p4 }
  0xa2   : > { %p8331_p9 = pneg %p8330_p7 }
  0xa4   : > { %p8338_p12 = pnand %p8337_p11, %p8331_p9 }
  0xa6   : > { %8341 = shalt.err (!%p8338_p12)
}
  0xa7   : > { %7776 = dma.hbm_to_vmem [thread:$0]  (!%p8618_p6), %s10520_s12, 1024, %s464_s3, [#allocation12], %s10548_s7, %s10548_s7, %s10547_s26  }
  0xa8   : > { %s8342_s1 = scalar_lea.hbm %s10521_s13, 1024 }
  0xa9   : > { %p8343_p1 = scmp.ne.s32.totalorder %s10521_s13, %s8342_s1  ;;  %p8349_p0 = scmp.lt.u32.totalorder %s8342_s1, %s10521_s13 }
  0xab   : > { %p8345_p3 = pnand %p8343_p1, %p8634_p8 }
  0xad   : > { %p8346_p13 = pneg %p8345_p3 }
  0xaf   : > { %p8351_p2 = pnand %p8349_p0, %p8346_p13 }
  0xb1   : > { %8354 = shalt.err (!%p8351_p2)
}
  0xb2   : > { %s8355_s24 = scalar_lea.vmem %s477_s18, 1024  ;;  %p8363_p4 = scmp.lt.s32.totalorder %s477_s18, %s477_s18 }
  0xb3   : > { %p8356_p5 = scmp.ne.s32.totalorder %s477_s18, %s8355_s24  ;;  %p8364_p10 = scmp.lt.s32.totalorder %s8355_s24, %s8355_s24 }
  0xb5   : > { %p8358_p7 = pnand %p8356_p5, %p8634_p8  ;;  %p8365_p11 = por %p8364_p10, %p8363_p4 }
  0xb7   : > { %p8359_p9 = pneg %p8358_p7 }
  0xb9   : > { %p8366_p12 = pnand %p8365_p11, %p8359_p9 }
  0xbb   : > { %8369 = shalt.err (!%p8366_p12)
}
  0xbc   : > { %s8495_s26 = smov 256   ;;  %s8496_s21 = smov 16  }
  0xbd   : > { %7779 = dma.hbm_to_vmem [thread:$0]  (!%p8618_p6), %s10521_s13, 1024, %s477_s18, [#allocation15], %s8495_s26, %s8495_s26, %s8496_s21  }
  0xbe   : > { %s6739_s14 = sadd.s32 4294967294, %s8482_s16   ;;  %s8790_s17 = sadd.s32 1, %s8482_s16  }
  0xbf   : > { %s41_s27 = sadd.s32 1, %s8478_s15  ;;  %s38_s22 = ssub.s32 %s8482_s16, %s8790_s17 }
  0xc0   : > { %p48_p8 = scmp.ne.s32.totalorder %s8478_s15, %s8474_s30  ;;  %p39_p1 = scmp.eq.s32.totalorder %s38_s22, 0 }
  0xc1   : > { %p49_p3 = scmp.eq.s32.totalorder %s8482_s16, 0  ;;  %p54_p13 = scmp.ne.s32.totalorder %s8474_s30, %s8470_s29 }
  0xc2   : > { %p361_p0 = scmp.eq.s32.totalorder %s8602_s19, 1  ;;  %p10549_p5 = scmp.eq.s32.totalorder %s8602_s19, 0 }
  0xc3   : > { %s8802_s25 = scalar_select %p39_p1, %s8478_s15, %s41_s27  }
  0xc4   : > { %p50_p2 = por %p49_p3, %p48_p8  ;;  %p8806_p7 = por %p10549_p5, %p54_p13 }
  0xc5   : > { %p8810_p6 = por %p361_p0, %p48_p8  ;;  %p367_p9 = scmp.eq.s32.totalorder %s6739_s14, 1 }
  0xc6   : > { %p7795_p4 = scmp.lt.s32.totalorder %s8482_s16, 2  ;;  %s490_s6 = sand.u32 1, %s8478_s15  }
  0xc7   : > { %s10551_s18 = scalar_select %p8810_p6, 1, 0 }
  0xc8   : > { %p8816_p10 = por %p367_p9, %p54_p13  ;;  %s6749_s2 = sshll.u32 %s490_s6, 3 }
  0xc9   : > { %s6750_s10 = sshll.u32 %s8482_s16, 7  ;;  %s494_s26 = scalar_lea.vmem [#allocation2], %s6749_s2 }
  0xca   : > { %s10552_s1 = scalar_select %p8816_p10, 1, 0 }
  0xcb   : > { %s8824_s24 = scalar_lea.hbm %s10508_s0, %s6750_s10  ;;  %s501_s21 = sshll.u32 %s494_s26, 4  ;;  %s8830_s21 = int_to_ptr.vmem [resolvable:$true] %s501_s21 }
  0xcc   : > { %p8826_p11 = pnand %p7795_p4, %p50_p2  ;;  %s491_s3 = scalar_lea.sflag [#allocation3], %s490_s6 }
  0xcd   : > { %s8370_s14 = scalar_lea.hbm %s8824_s24, 128  ;;  %s8375_s2 = scalar_lea.hbm %s10508_s0, 256 }
  0xce   : > { %p8371_p12 = scmp.ne.s32.totalorder %s8824_s24, %s8370_s14  ;;  %p8372_p8 = pneg %p8826_p11 }
  0xcf   : > { %p8376_p13 = scmp.lt.u32.totalorder %s8824_s24, %s10508_s0  ;;  %p8377_p0 = scmp.lt.u32.totalorder %s8375_s2, %s8370_s14 }
  0xd0   : > { %p8373_p1 = pnand %p8372_p8, %p8371_p12  ;;  %p8379_p5 = scmp.lt.u32.totalorder %s8370_s14, %s8824_s24 }
  0xd1   : > { %p8378_p2 = por %p8377_p0, %p8376_p13 }
  0xd2   : > { %p8374_p3 = pneg %p8373_p1 }
  0xd3   : > { %p8380_p9 = por %p8379_p5, %p8378_p2 }
  0xd5   : > { %p8381_p4 = pnand %p8380_p9, %p8374_p3 }
  0xd7   : > { %8384 = shalt.err (!%p8381_p4)
}
  0xd8   : > { %s8385_s6 = scalar_lea.vmem %s8830_s21, 128  ;;  %s8497_s28 = smov [#allocation2]  }
  0xd9   : > { %p8386_p12 = scmp.ne.s32.totalorder %s8830_s21, %s8385_s6  ;;  %s8390_s26 = sshll.u32 %s8497_s28, 4  ;;  %s8391_s26 = int_to_ptr.vmem [resolvable:$false] %s8390_s26 }
  0xda   : > { %s8392_s27 = scalar_lea.vmem %s8391_s26, 256  ;;  %p8393_p6 = scmp.lt.s32.totalorder %s8830_s21, %s8391_s26 }
  0xdb   : > { %p8388_p1 = pnand %p8386_p12, %p8372_p8  ;;  %p8394_p13 = scmp.lt.s32.totalorder %s8392_s27, %s8385_s6 }
  0xdd   : > { %p8389_p10 = pneg %p8388_p1  ;;  %p8395_p0 = por %p8394_p13, %p8393_p6 }
  0xdf   : > { %p8396_p2 = pnand %p8395_p0, %p8389_p10 }
  0xe1   : > { %8399 = shalt.err (!%p8396_p2)
}
  0xe2   : > { %7783 = dma.hbm_to_vmem [thread:$0]  (!%p8826_p11), %s8824_s24, 128, %s8830_s21, %s491_s3  }
  0xe3   : > { %p10554_p3 = scmp.ne.s32.totalorder %s10542_s20, 0 }
  0xe4   : > { %s8860_s14 = sand.u32 (!%p10554_p3), 1, %s8474_s30  }
  0xe5   : > { %526 = sbr.rel (%p10554_p3) target bundleno = 9242 (0x241a), region = 76  ;;  %s6752_s22 = sshll.u32 (!%p10554_p3), %s8860_s14, 3 }
  0xe6   : > { %s529_s2 = scalar_lea.sflag (!%p10554_p3), [#allocation3], %s8860_s14  ;;  %s532_s10 = scalar_lea.vmem (!%p10554_p3), [#allocation2], %s6752_s22 }
  0xec   : > { %8445 = dma.done.wait (%p8806_p7), %s529_s2, 128  }
  0xed   : > { %8447 = vsyncadd (%p8806_p7), %s529_s2, 4294967168  ;;  %p10555_p6 = scmp.eq.s32.totalorder %s8602_s19, 0 }
  0xef   : > { %8449 = dma.done.wait (%p10555_p6), [#allocation6], 640   ;;  %p10556_p10 = pmov %p10555_p6 }
  0xf0   : > { %p10557_p11 = pmov %p10555_p6 }
  0xf1   : > { %8451 = vsyncadd (%p10556_p10), [#allocation6], 4294966656 }
  0xf2   : > { %8453 = dma.done.wait (%p10557_p11), [#allocation9], 1024   ;;  %p10558_p8 = pmov %p10555_p6 }
  0xf3   : > { %p10559_p5 = pmov %p10555_p6 }
  0xf4   : > { %8455 = vsyncadd (%p10558_p8), [#allocation9], 4294966272 }
  0xf5   : > { %8457 = dma.done.wait (%p10559_p5), [#allocation12], 3072   ;;  %p10560_p9 = pmov %p10559_p5 }
  0xf6   : > { %p10561_p7 = pmov %p10559_p5 }
  0xf7   : > { %8459 = vsyncadd (%p10560_p9), [#allocation12], 4294964224 }
  0xf8   : > { %8461 = dma.done.wait (%p10561_p7), [#allocation15], 1024   ;;  %p10562_p4 = pmov %p10559_p5 }
  0xf9   : > { %v8498_v0 = vmov 0.0   ;;  %vm8499_vm0 = vmmov 0   ;;  %v7896_v1 = vld [vmem:[#allocation5] sm:$0xff]   ;;  %v625_v2 = vld [vmem:[%s532_s10] sm:$0xff]  ;;  %vm636_vm1 = vcmask 130048   ;;  %v7900_v17 = vld [vmem:[%s10512_s4 + $0x18] sm:$0xff]  }
  0xfa   : > { %8463 = vsyncadd (%p10562_p4), [#allocation15], 4294966272  ;;  %7164 = vmatprep.subr.bf16.mxu1 %v8498_v0  ;;  %7166 = vmatprep.mubr.msk.bf16.mxu1 %vm8499_vm0, %v8498_v0  ;;  %v626_v3 = vpack.c.bf16 %v625_v2, %v625_v2  ;;  %v629_v4 = vld [vmem:[#allocation14] ss:$0 sm:$0xff]  ;;  %v7897_v10 = vld [vmem:[%s10512_s4] sm:$0xff]   ;;  %vm805_vm2 = vcmask 523264  }
  0xfb   : > { %7190 = vmatprep.subr.bf16.mxu0 %v8498_v0  ;;  %7198 = vmatprep.mubr.msk.bf16.mxu0 %vm8499_vm0, %v8498_v0  ;;  %v7898_v11 = vld [vmem:[%s10512_s4 + $0x8] sm:$0xff]   ;;  %v7899_v16 = vld [vmem:[%s10512_s4 + $0x10] sm:$0xff]   ;;  %v7901_v18 = vld [vmem:[%s10512_s4 + $0x20] sm:$0xff]   ;;  %s6761_s21 = sshll.u32 %s8602_s19, 3  ;;  %s10563_s6 = sld [smem:[#allocation23_spill]]  ;;  %vm1258_vm3 = vcmask 261120  }
  0xfc   : > { %7165 = vmatpush3.bf16.msra.mxu1 %v7896_v1  ;;  %v7902_v19 = vld [vmem:[%s10512_s4 + $0x28] sm:$0xff]   ;;  %v7903_v20 = vld [vmem:[%s10512_s4 + $0x30] sm:$0xff]   ;;  %v7904_v21 = vld [vmem:[%s10512_s4 + $0x38] sm:$0xff]   ;;  %p615_p12 = scmp.lt.s32.totalorder %s6761_s21, 15  ;;  %s8502_s26 = smov 64   ;;  %vm1756_vm4 = vcmask 1043456  }
  0xfd   : > { %7170 = vmatprep.subr.bf16.mxu1 %v8498_v0  ;;  %v680_v26 = vld [vmem:[#allocation14 + $0x1] ss:$0 sm:$0xff]  ;;  %v681_v28 = vld [vmem:[#allocation14 + $0x2] ss:$0 sm:$0xff]  ;;  %v714_v33 = vld [vmem:[#allocation14 + $0x3] ss:$0 sm:$0xff] }
  0xfe   : > { %v7905_v45 = vld [vmem:[#allocation7] sm:$0xff]   ;;  %v7906_v46 = vld [vmem:[#allocation7 + $0x8] sm:$0xff]   ;;  %v7907_v47 = vld [vmem:[#allocation7 + $0x10] sm:$0xff]   ;;  %s10577_s21 = smov (!%p615_p12, %s6761_s21), 15  ;;  %p620_p1 = scmp.lt.s32.totalorder %s8602_s19, 1  ;;  %vm1648_vm5 = vcmask 64512  }
  0xff   : > { %7167 = vmatmul.mubr.msk.bf16.vlgmr.msra.gmra.mrb[0].mxu1 %vm636_vm1, %v626_v3  ;;  %7191 = vmatpush3.bf16.msra.mxu0 %v7905_v45  ;;  %v7908_v48 = vld [vmem:[#allocation7 + $0x18] sm:$0xff]   ;;  %v7911_v49 = vld [vmem:[#allocation11 + $0x4] ss:$8 sps:$4 sm:$0xff]   ;;  %v7909_v60 = vld [vmem:[#allocation11] ss:$8 sps:$4 sm:$0xff]   ;;  %s6762_s7 = sshll.u32 %s10577_s21, 3 }
 0x100   : > { %7186 = vmatprep.mubr.msk.bf16.mxu1 %vm8499_vm0, %v8498_v0  ;;  %7171 = vmatpush3.bf16.msra.mxu1 %v7897_v10  ;;  %v803_v54 = vld [vmem:[#allocation14 + $0x4] ss:$0 sm:$0xff]  ;;  %v804_v56 = vld [vmem:[#allocation14 + $0x5] ss:$0 sm:$0xff]  ;;  %v7914_v62 = vld [vmem:[#allocation11 + $0x14] ss:$8 sps:$4 sm:$0xff]  }
 0x101   : > { %7172 = vmatprep.subr.bf16.mxu1 %v8498_v0  ;;  %7192 = vmatprep.subr.bf16.mxu0 %v8498_v0  ;;  %v7912_v63 = vld [vmem:[#allocation11 + $0x10] ss:$8 sps:$4 sm:$0xff]   ;;  %v7917_v1 = vld [vmem:[#allocation11 + $0x24] ss:$8 sps:$4 sm:$0xff]   ;;  %v7915_v2 = vld [vmem:[#allocation11 + $0x20] ss:$8 sps:$4 sm:$0xff]   ;;  %s8951_s28 = scalar_lea.vmem %s10563_s6, %s6762_s7 }
 0x102   : > { %v7920_v3 = vld [vmem:[#allocation11 + $0x34] ss:$8 sps:$4 sm:$0xff]   ;;  %s621_s27 = scalar_select %p620_p1, %s8602_s19, 1  ;;  %vm6258_vm6 = vcmask 1041409   ;;  %vm6261_vm7 = vcmask 1042434   ;;  %vm6264_vm8 = vcmask 1043459  }
 0x103   : > { %7193 = vmatpush3.bf16.msra.mxu0 %v7906_v46  ;;  %v905_v45 = vld [vmem:[%s8951_s28 + $0x28] sm:$0xff]  ;;  %s10564_s23 = sld [smem:[#allocation24_spill]]  ;;  %s8503_s21 = smov 32   ;;  %vm6267_vm9 = vcmask 1044484   ;;  %vm6270_vm10 = vcmask 1045509   ;;  %vm6273_vm11 = vcmask 1046534  }
 0x104   : > { %7173 = vmatpush3.bf16.msra.mxu1 %v7898_v11  ;;  %7194 = vmatprep.subr.bf16.mxu0 %v8498_v0  ;;  %v832_v11 = vld [vmem:[#allocation14 + $0x6] ss:$0 sm:$0xff]  ;;  %s6763_s2 = sshll.u32 %s621_s27, 3  ;;  %s8504_s7 = smov 96   ;;  %vm6276_vm12 = vcmask 1047559  }
 0x105   : > { %7174 = vmatprep.subr.bf16.mxu1 %v8498_v0  ;;  %s10565_s6 = sld [smem:[#allocation28_spill]]  ;;  %s10566_s11 = sld [smem:[#allocation29_spill]] }
 0x106   : > { %s10567_s10 = sld [smem:[#allocation27_spill]]  ;;  %p10569_p0 = scmp.ne.s32.totalorder %s10551_s18, 0 }
 0x107   : > { %7195 = vmatpush3.bf16.msra.mxu0 %v7907_v47  ;;  %v904_v47 = vld [vmem:[%s8951_s28 + $0x20] sm:$0xff] }
 0x108   : > { %7175 = vmatpush3.bf16.msra.mxu1 %v7899_v16  ;;  %7196 = vmatprep.subr.bf16.mxu0 %v8498_v0 }
 0x109   : > { %7176 = vmatprep.subr.bf16.mxu1 %v8498_v0  ;;  %s623_s24 = scalar_lea.vmem %s10564_s23, %s6763_s2  ;;  %s10568_s2 = sld [smem:[#allocation30_spill]] }
 0x10b   : > { %7197 = vmatpush3.bf16.msra.mxu0 %v7908_v48 }
 0x10c   : > { %7177 = vmatpush3.bf16.msra.mxu1 %v7900_v17  ;;  %1174 = vmatprep.subr.bf16.mxu0 %v7911_v49 }
 0x10d   : > { %7178 = vmatprep.subr.bf16.mxu1 %v8498_v0 }
 0x110   : > { %7179 = vmatpush3.bf16.msra.mxu1 %v7901_v18 }
 0x111   : > { %7180 = vmatprep.subr.bf16.mxu1 %v8498_v0 }
 0x114   : > { %7181 = vmatpush3.bf16.msra.mxu1 %v7902_v19 }
 0x115   : > { %7182 = vmatprep.subr.bf16.mxu1 %v8498_v0 }
 0x118   : > { %7183 = vmatpush3.bf16.msra.mxu1 %v7903_v20 }
 0x119   : > { %7184 = vmatprep.subr.bf16.mxu1 %v8498_v0 }
 0x11c   : > { %7185 = vmatpush3.bf16.msra.mxu1 %v7904_v21 }
 0x11d   : > { %7202 = vmatprep.subr.bf16.mxu1 %v8498_v0 }
 0x1d2   : > { %v674_v5 = vpop.f32.mrb[0].mxu1 }
 0x1d3   : > { %v675_v6 = vadd.f32 %v674_v5, %v629_v4  ;;  %v7168_v7 = vpop.f32.mrb[1].mxu1  ;;  %v7918_v4 = vld [vmem:[#allocation11 + $0x30] ss:$8 sps:$4 sm:$0xff]   ;;  %v8500_v5 = vmov 0  }
 0x1d4   : > { %v677_v8 = vpop.f32.mrb[2].mxu1 }
 0x1d5   : > { %682 = vadd.xlane.f32.xlu0 %v675_v6  ;;  %v7169_v9 = vpop.f32.mrb[3].mxu1  ;;  %v913_v8 = vlaneseq }
 0x1d7   : > { %v8938_v10 = vshrl.u32 %v913_v8, 7 }
 0x1d9   : > { %v8945_v19 = vsub.s32 0, %v8938_v10 }
 0x262   : > { %v683_v12 = vpop.xlane.xlu0 %682 }
 0x263   : > { %v685_v13 = vmul.f32 0.0078125, %v683_v12 }
 0x265   : > { %v686_v14 = vsub.f32 %v675_v6, %v685_v13  ;;  %v8501_v6 = vmov 1966171168  }
 0x266   : > { %v911_v7 = vunpack.c.l.s4 %v8501_v6 }
 0x267   : > { %v687_v15 = vmul.f32 %v686_v14, %v686_v14 }
 0x268   : > { %v912_v9 = vunpack.c.0.s8 %v911_v7  ;;  %v1118_v7 = vsub.s32 1, %v8938_v10 }
 0x269   : > { %688 = vadd.xlane.f32.xlu0 %v687_v15 }
 0x26a   : > { %v8941_v12 = vsub.s32 %v912_v9, %v8938_v10 }
 0x2f6   : > { %v689_v22 = vpop.xlane.xlu0 %688 }
 0x2f7   : > { %v690_v23 = vmul.f32 0.0078125, %v689_v22 }
 0x2f9   : > { %v691_v24 = vadd.f32 1e-05, %v690_v23 }
 0x2fb   : > { %7974 = vrsqrt.f32 %v691_v24 }
 0x305   : > { %v7975_v25 = vpop.eup %7974 }
 0x306   : > { %v693_v27 = vmul.f32 %v7975_v25, %v686_v14  ;;  %v900_v25 = vld [vmem:[%s8951_s28] sm:$0xff] }
 0x308   : > { %v694_v29 = vmul.f32 %v693_v27, %v680_v26  ;;  %v901_v26 = vld [vmem:[%s8951_s28 + $0x8] sm:$0xff] }
 0x30a   : > { %v695_v30 = vadd.f32 %v694_v29, %v681_v28 }
 0x30c   : > { %v696_v31 = vmax.f32 %v695_v30, 0.0 }
 0x30e   : > { %v697_v32 = vpack.c.bf16 %v696_v31, %v696_v31 }
 0x310   : > { %7187 = vmatmul.mubr.bf16.vlgmr.msra.gmra.mrb[4].mxu1 %v697_v32 }
 0x311   : > { %7204 = vmatprep.mubr.msk.bf16.mxu1 %vm8499_vm0, %v8498_v0 }
 0x3e3   : > { %v797_v34 = vpop.f32.mrb[4].mxu1 }
 0x3e4   : > { %v798_v35 = vadd.f32 %v797_v34, %v714_v33  ;;  %v7188_v36 = vpop.f32.mrb[5].mxu1 }
 0x3e5   : > { %v800_v37 = vpop.f32.mrb[6].mxu1  ;;  %v903_v36 = vld [vmem:[%s8951_s28 + $0x18] sm:$0xff] }
 0x3e6   : > { %v7189_v38 = vpop.f32.mrb[7].mxu1  ;;  %v806_v39 = vsel %vm805_vm2, %v798_v35, 0.0 }
 0x3e7   : > { %807 = vadd.xlane.f32.xlu1 %v806_v39  ;;  %v902_v38 = vld [vmem:[%s8951_s28 + $0x10] sm:$0xff] }
 0x474   : > { %v808_v40 = vpop.xlane.xlu1 %807 }
 0x475   : > { %v810_v41 = vmul.f32 0.015625, %v808_v40 }
 0x477   : > { %v811_v42 = vsub.f32 %v798_v35, %v810_v41 }
 0x479   : > { %v812_v43 = vmul.f32 %v811_v42, %v811_v42 }
 0x47b   : > { %v813_v44 = vsel %vm805_vm2, %v812_v43, 0.0 }
 0x47c   : > { %814 = vadd.xlane.f32.xlu1 %v813_v44 }
 0x509   : > { %v815_v50 = vpop.xlane.xlu1 %814 }
 0x50a   : > { %v816_v51 = vmul.f32 0.015625, %v815_v50 }
 0x50c   : > { %v817_v52 = vadd.f32 1e-05, %v816_v51 }
 0x50e   : > { %7976 = vrsqrt.f32 %v817_v52 }
 0x518   : > { %v7977_v53 = vpop.eup %7976 }
 0x519   : > { %v819_v55 = vmul.f32 %v7977_v53, %v811_v42 }
 0x51b   : > { %v820_v57 = vmul.f32 %v819_v55, %v803_v54  ;;  %v907_v54 = vld [vmem:[%s8951_s28 + $0x38] sm:$0xff] }
 0x51d   : > { %v821_v58 = vadd.f32 %v820_v57, %v804_v56  ;;  %v906_v56 = vld [vmem:[%s8951_s28 + $0x30] sm:$0xff] }
 0x51f   : > { %v822_v59 = vmax.f32 %v821_v58, 0.0 }
 0x521   : > { %v823_v61 = vpack.c.bf16 %v822_v59, %v822_v59 }
 0x523   : > { %7199 = vmatmul.mubr.msk.bf16.vlgmr.msra.gmra.mrb[0].mxu0 %vm805_vm2, %v823_v61 }
 0x524   : > { %1175 = vmatpush1.bf16.msra.mxu0 %v7909_v60  ;;  %1206 = vmatprep.mubr.bf16.mxu0 %v8500_v5  ;;  %v1110_v60 = vld [vmem:[#allocation14 + $0x7] ss:$8 sm:$0x3] }
 0x525   : > { %1176 = vmatprep.subr.bf16.mxu0 %v7914_v62  ;;  %v1115_v61 = vrot.slane %v1110_v60, %v8945_v19  ;;  %v9022_v9 = vrot.slane %v1110_v60, %v1118_v7 }
 0x528   : > { %1177 = vmatpush1.bf16.msra.mxu0 %v7912_v63 }
 0x529   : > { %1178 = vmatprep.subr.bf16.mxu0 %v7917_v1 }
 0x52c   : > { %1179 = vmatpush1.bf16.msra.mxu0 %v7915_v2 }
 0x52d   : > { %1180 = vmatprep.subr.bf16.mxu0 %v7920_v3 }
 0x530   : > { %1181 = vmatpush1.bf16.msra.mxu0 %v7918_v4 }
 0x531   : > { %7226 = vmatprep.subr.bf16.mxu0 %v8498_v0 }
 0x5f6   : > { %v894_v13 = vpop.f32.mrb[0].mxu0 }
 0x5f7   : > { %v895_v14 = vadd.f32 %v894_v13, %v832_v11  ;;  %v7200_v15 = vpop.f32.mrb[1].mxu0 }
 0x5f8   : > { %v897_v16 = vpop.f32.mrb[2].mxu0 }
 0x5f9   : > { %v916_v17 = vrot.slane %v895_v14, %v8941_v12  ;;  %v7201_v18 = vpop.f32.mrb[3].mxu0  ;;  %v909_v22 = vcombine.high %v895_v14, %v895_v14 }
 0x5fb   : > { %v924_v20 = vcombine.high %v916_v17, %v916_v17  ;;  %v932_v21 = vrot.slane %v916_v17, %v8941_v12  ;;  %v923_v28 = vrot.slane %v909_v22, %v8941_v12 }
 0x5fd   : > { %v946_v23 = vrot.slane %v924_v20, %v8941_v12  ;;  %v961_v24 = vrot.slane %v932_v21, %v8945_v19  ;;  %v954_v30 = vcombine.high %v932_v21, %v932_v21  ;;  %v925_v33 = vcombine.high %v923_v28, %v923_v28 }
 0x5fe   : > { %v939_v41 = vrot.slane %v923_v28, %v8941_v12 }
 0x5ff   : > { %v965_v27 = vrot.slane %v946_v23, %v8945_v19  ;;  %v956_v29 = vcombine.high %v946_v23, %v946_v23  ;;  %v8959_v31 = vadd.f32 %v961_v24, %v900_v25  ;;  %v969_v37 = vrot.slane %v954_v30, %v8945_v19 }
 0x600   : > { %v953_v39 = vrot.slane %v925_v33, %v8941_v12  ;;  %v977_v46 = vrot.slane %v939_v41, %v8945_v19  ;;  %v955_v50 = vcombine.high %v939_v41, %v939_v41 }
 0x601   : > { %v8961_v32 = vadd.f32 %v965_v27, %v901_v26  ;;  %v973_v34 = vrot.slane %v956_v29, %v8945_v19  ;;  %v8975_v42 = vadd.f32 %v969_v37, %v902_v38 }
 0x602   : > { %v981_v43 = vrot.slane %v953_v39, %v8945_v19  ;;  %v957_v48 = vcombine.high %v953_v39, %v953_v39  ;;  %v8987_v51 = vadd.f32 %v977_v46, %v904_v47  ;;  %v985_v55 = vrot.slane %v955_v50, %v8945_v19 }
 0x603   : > { %v1097_v35 = vpack.c.bf16 %v8961_v32, %v8959_v31  ;;  %v8972_v40 = vadd.f32 %v973_v34, %v903_v36 }
 0x604   : > { %v8985_v49 = vadd.f32 %v981_v43, %v905_v45  ;;  %v989_v53 = vrot.slane %v957_v48, %v8945_v19  ;;  %v8999_v58 = vadd.f32 %v985_v55, %v906_v56 }
 0x605   : > { %6787 = vmatmul.mubr.msk.bf16.vlgmr.msra.gmra.mrb[4].mxu0 %vm805_vm2, %v1097_v35  ;;  %v1098_v44 = vpack.c.bf16 %v8972_v40, %v8975_v42 }
 0x606   : > { %1216 = vmatprep.mubr.bf16.mxu0 %v8500_v5  ;;  %v1099_v52 = vpack.c.bf16 %v8985_v49, %v8987_v51  ;;  %v8997_v57 = vadd.f32 %v989_v53, %v907_v54 }
 0x608   : > { %v1100_v59 = vpack.c.bf16 %v8997_v57, %v8999_v58 }
 0x60d   : > { %6788 = vmatmul.mubr.msk.bf16.gmra.mrb[8].mxu0 %vm805_vm2, %v1098_v44 }
 0x60e   : > { %1226 = vmatprep.mubr.bf16.mxu0 %v8500_v5 }
 0x615   : > { %6789 = vmatmul.mubr.msk.bf16.gmra.mrb[12].mxu0 %vm805_vm2, %v1099_v52 }
 0x616   : > { %1236 = vmatprep.mubr.bf16.mxu0 %v8500_v5 }
 0x61d   : > { %6790 = vmatmul.mubr.msk.bf16.gmra.mrb[16].mxu0 %vm805_vm2, %v1100_v59 }
 0x61e   : > { %7228 = vmatprep.mubr.msk.bf16.mxu0 %vm8499_vm0, %v8498_v0 }
 0x6d8   : > { %v1208_v62 = vpop.f32.mrb[4].mxu0 }
 0x6d9   : > { %v1209_v63 = vadd.f32 %v1208_v62, %v1115_v61  ;;  %v9007_v1 = vpop.f32.mrb[5].mxu0 }
 0x6da   : > { %v1212_v2 = vpop.f32.mrb[6].mxu0 }
 0x6db   : > { %v9009_v3 = vpack.c.bf16 %v1209_v63, %v1209_v63  ;;  %v1213_v4 = vadd.f32 %v1212_v2, %v1115_v61  ;;  %v9011_v6 = vpop.f32.mrb[7].mxu0 }
 0x6dd   : > { %v9014_v8 = vpack.c.bf16 %v1213_v4, %v1213_v4  ;;  %1256 = vrot.lane.b32.xlu0 %v9009_v3, %s8502_s26 }
 0x6df   : > { %1306 = vrot.lane.b32.xlu1 %v9014_v8, %s8502_s26 }
 0x6e0   : > { %v1218_v11 = vpop.f32.mrb[8].mxu0 }
 0x6e1   : > { %v1219_v13 = vadd.f32 %v1218_v11, %v1115_v61  ;;  %v1220_v14 = vpop.f32.mrb[9].mxu0 }
 0x6e2   : > { %v9025_v15 = vadd.f32 %v1220_v14, %v9022_v9  ;;  %v1222_v16 = vpop.f32.mrb[10].mxu0  ;;  %v1215_v14 = vadd.f32 %v9011_v6, %v9022_v9  ;;  %v1006_v6 = vld [vmem:[%s623_s24] sm:$0xff]  ;;  %s613_s24 = scalar_lea.vmem [#allocation16], %s6752_s22  ;;  %s8505_s22 = smov [#allocation16]  }
 0x6e3   : > { %v9027_v17 = vpack.c.bf16 %v1219_v13, %v1219_v13  ;;  %v1223_v18 = vadd.f32 %v1222_v16, %v1115_v61  ;;  %v1224_v20 = vpop.f32.mrb[11].mxu0  ;;  %s6578_s3 = sshll.u32 %s613_s24, 4  ;;  %s8404_s23 = sshll.u32 %s8505_s22, 4  ;;  %s10466_s3 = int_to_ptr.vmem [resolvable:$true] %s6578_s3  ;;  %s8405_s23 = int_to_ptr.vmem [resolvable:$false] %s8404_s23 }
 0x6e4   : > { %v9030_v21 = vadd.f32 %v1224_v20, %v9022_v9  ;;  %s8400_s20 = scalar_lea.vmem %s10466_s3, 128  ;;  %p8407_p6 = scmp.lt.s32.totalorder %s10466_s3, %s8405_s23 }
 0x6e5   : > { %1355 = vrot.lane.b32.xlu1 %v9027_v17, %s8502_s26  ;;  %v9034_v22 = vpack.c.bf16 %v1223_v18, %v1223_v18  ;;  %v9119_v18 = vpack.c.bf16 %v1215_v14, %v1215_v14  ;;  %p8401_p13 = scmp.ne.s32.totalorder %s10466_s3, %s8400_s20 }
 0x6e7   : > { %v1804_v20 = vsel %vm1756_vm4, %v9119_v18, 0  ;;  %p8402_p2 = pnand %p8401_p13, %p10569_p0 }
 0x6e8   : > { %v1228_v23 = vpop.f32.mrb[12].mxu0 }
 0x6e9   : > { %v1229_v24 = vadd.f32 %v1228_v23, %v1115_v61  ;;  %v1230_v25 = vpop.f32.mrb[13].mxu0  ;;  %1404 = vrot.lane.b32.xlu1 %v9034_v22, %s8502_s26  ;;  %p8403_p3 = pneg %p8402_p2 }
 0x6ea   : > { %v9039_v26 = vadd.f32 %v1230_v25, %v9022_v9  ;;  %v1232_v27 = vpop.f32.mrb[14].mxu0 }
 0x6eb   : > { %v9041_v28 = vpack.c.bf16 %v1229_v24, %v1229_v24  ;;  %v1233_v29 = vadd.f32 %v1232_v27, %v1115_v61  ;;  %v1234_v30 = vpop.f32.mrb[15].mxu0 }
 0x6ec   : > { %v9044_v33 = vadd.f32 %v1234_v30, %v9022_v9 }
 0x6ed   : > { %v9046_v34 = vpack.c.bf16 %v1233_v29, %v1233_v29  ;;  %1453 = vrot.lane.b32.xlu0 %v9041_v28, %s8502_s26 }
 0x6ef   : > { %1502 = vrot.lane.b32.xlu1 %v9046_v34, %s8502_s26 }
 0x6f0   : > { %v1238_v35 = vpop.f32.mrb[16].mxu0 }
 0x6f1   : > { %v1239_v36 = vadd.f32 %v1238_v35, %v1115_v61  ;;  %v1240_v37 = vpop.f32.mrb[17].mxu0 }
 0x6f2   : > { %v9053_v38 = vadd.f32 %v1240_v37, %v9022_v9  ;;  %v1242_v39 = vpop.f32.mrb[18].mxu0 }
 0x6f3   : > { %v9055_v41 = vpack.c.bf16 %v1239_v36, %v1239_v36  ;;  %v1243_v43 = vadd.f32 %v1242_v39, %v1115_v61  ;;  %v1244_v44 = vpop.f32.mrb[19].mxu0  ;;  %v1211_v61 = vadd.f32 %v9007_v1, %v9022_v9 }
 0x6f4   : > { %v9058_v45 = vadd.f32 %v1244_v44, %v9022_v9  ;;  %v1015_v9 = vrot.slane %v1006_v6, %v8941_v12 }
 0x6f5   : > { %v9060_v46 = vpack.c.bf16 %v1243_v43, %v1243_v43  ;;  %1551 = vrot.lane.b32.xlu0 %v9055_v41, %s8502_s26  ;;  %v9096_v1 = vpack.c.bf16 %v1211_v61, %v1211_v61 }
 0x6f6   : > { %v1031_v23 = vrot.slane %v1015_v9, %v8941_v12  ;;  %v1023_v25 = vcombine.high %v1015_v9, %v1015_v9 }
 0x6f7   : > { %1600 = vrot.lane.b32.xlu1 %v9060_v46, %s8502_s26  ;;  %v1758_v4 = vsel %vm1756_vm4, %v9096_v1, 0 }
 0x6f8   : > { %v9136_v24 = vrot.slane %v1031_v23, %v8945_v19  ;;  %v1045_v35 = vrot.slane %v1023_v25, %v8941_v12 }
 0x6fa   : > { %v9145_v43 = vrot.slane %v1045_v35, %v8945_v19 }
 0x74f   : > { %v1257_v47 = vpop.permute.xlu0 %1256 }
 0x750   : > { %v1263_v48 = vsel %vm1258_vm3, %v1257_v47, 0 }
 0x751   : > { %7203 = vmatpush3.bf16.xpose.msra.mxu1 %v1263_v48  ;;  %v1307_v50 = vpop.permute.xlu1 %1306 }
 0x752   : > { %7208 = vmatprep.subr.bf16.mxu1 %v8498_v0  ;;  %v1312_v52 = vsel %vm1258_vm3, %v1307_v50, 0  ;;  %v1053_v50 = vcombine.high %v1031_v23, %v1031_v23 }
 0x757   : > { %v1356_v53 = vpop.permute.xlu1 %1355 }
 0x758   : > { %7205 = vmatmul.mubr.msk.bf16.vlgmr.msra.gmra.mrb[8].mxu1 %vm1258_vm3, %v9009_v3  ;;  %v1361_v55 = vsel %vm1258_vm3, %v1356_v53, 0 }
 0x759   : > { %7209 = vmatpush3.bf16.xpose.msra.mxu1 %v1312_v52  ;;  %7210 = vmatprep.mubr.msk.bf16.mxu1 %vm8499_vm0, %v8498_v0 }
 0x75a   : > { %7214 = vmatprep.subr.bf16.mxu1 %v8498_v0 }
 0x75b   : > { %v1405_v59 = vpop.permute.xlu1 %1404 }
 0x75c   : > { %v1410_v62 = vsel %vm1258_vm3, %v1405_v59, 0 }
 0x75f   : > { %v1454_v54 = vpop.permute.xlu0 %1453 }
 0x760   : > { %v1459_v56 = vsel %vm1258_vm3, %v1454_v54, 0  ;;  %7211 = vmatmul.mubr.msk.bf16.vlgmr.msra.gmra.mrb[12].mxu1 %vm1258_vm3, %v9014_v8 }
 0x761   : > { %7215 = vmatpush3.bf16.xpose.msra.mxu1 %v1361_v55  ;;  %7227 = vmatpush3.bf16.xpose.msra.mxu0 %v1459_v56  ;;  %v1503_v2 = vpop.permute.xlu1 %1502  ;;  %v1008_v55 = vcombine.high %v1006_v6, %v1006_v6  ;;  %v9153_v56 = vrot.slane %v1053_v50, %v8945_v19 }
 0x762   : > { %7216 = vmatprep.mubr.msk.bf16.mxu1 %vm8499_vm0, %v8498_v0  ;;  %7220 = vmatprep.subr.bf16.mxu1 %v8498_v0  ;;  %v1508_v11 = vsel %vm1258_vm3, %v1503_v2, 0 }
 0x763   : > { %7238 = vmatprep.subr.bf16.mxu0 %v8498_v0  ;;  %v1022_v59 = vrot.slane %v1008_v55, %v8941_v12 }
 0x765   : > { %v1038_v14 = vrot.slane %v1022_v59, %v8941_v12  ;;  %v1024_v23 = vcombine.high %v1022_v59, %v1022_v59 }
 0x767   : > { %v1552_v60 = vpop.permute.xlu0 %1551  ;;  %v9166_v25 = vrot.slane %v1038_v14, %v8945_v19 }
 0x768   : > { %v1557_v63 = vsel %vm1258_vm3, %v1552_v60, 0  ;;  %7217 = vmatmul.mubr.msk.bf16.vlgmr.msra.gmra.mrb[16].mxu1 %vm1258_vm3, %v9027_v17  ;;  %7229 = vmatmul.mubr.msk.bf16.vlgmr.msra.gmra.mrb[20].mxu0 %vm1258_vm3, %v9041_v28 }
 0x769   : > { %7221 = vmatpush3.bf16.xpose.msra.mxu1 %v1410_v62  ;;  %7239 = vmatpush3.bf16.xpose.msra.mxu0 %v1557_v63  ;;  %v1601_v13 = vpop.permute.xlu1 %1600 }
 0x76a   : > { %7222 = vmatprep.mubr.msk.bf16.mxu1 %vm8499_vm0, %v8498_v0  ;;  %7240 = vmatprep.mubr.msk.bf16.mxu0 %vm8499_vm0, %v8498_v0  ;;  %v1606_v16 = vsel %vm1258_vm3, %v1601_v13, 0 }
 0x76b   : > { %7232 = vmatprep.subr.bf16.mxu1 %v8498_v0  ;;  %7250 = vmatprep.subr.bf16.mxu0 %v8498_v0 }
 0x770   : > { %7223 = vmatmul.mubr.msk.bf16.vlgmr.msra.gmra.mrb[20].mxu1 %vm1258_vm3, %v9034_v22  ;;  %7241 = vmatmul.mubr.msk.bf16.vlgmr.msra.gmra.mrb[24].mxu0 %vm1258_vm3, %v9055_v41 }
 0x771   : > { %7233 = vmatpush3.bf16.xpose.msra.mxu1 %v1508_v11  ;;  %7251 = vmatpush3.bf16.msra.mxu0 %v1758_v4  ;;  %v1055_v4 = vcombine.high %v1045_v35, %v1045_v35 }
 0x772   : > { %7234 = vmatprep.mubr.msk.bf16.mxu1 %vm8499_vm0, %v8498_v0  ;;  %7244 = vmatprep.subr.bf16.mxu1 %v8498_v0 }
 0x773   : > { %7252 = vmatprep.mubr.msk.bf16.mxu0 %vm8499_vm0, %v8498_v0  ;;  %7262 = vmatprep.subr.bf16.mxu0 %v8498_v0  ;;  %v9163_v9 = vrot.slane %v1055_v4, %v8945_v19 }
 0x778   : > { %7235 = vmatmul.mubr.msk.bf16.vlgmr.msra.gmra.mrb[24].mxu1 %vm1258_vm3, %v9046_v34 }
 0x779   : > { %7245 = vmatpush3.bf16.xpose.msra.mxu1 %v1606_v16  ;;  %7246 = vmatprep.mubr.msk.bf16.mxu1 %vm8499_vm0, %v8498_v0 }
 0x77a   : > { %7256 = vmatprep.subr.bf16.mxu1 %v8498_v0 }
 0x780   : > { %7247 = vmatmul.mubr.msk.bf16.vlgmr.msra.gmra.mrb[28].mxu1 %vm1258_vm3, %v9060_v46 }
 0x781   : > { %7257 = vmatpush3.bf16.msra.mxu1 %v1804_v20  ;;  %7258 = vmatprep.mubr.msk.bf16.mxu1 %vm8499_vm0, %v8498_v0 }
 0x782   : > { %7268 = vmatprep.subr.bf16.mxu1 %v8498_v0 }
 0x82b   : > { %v1299_v27 = vpop.f32.mrb[8].mxu1 }
 0x82c   : > { %v9139_v29 = vadd.f32 %v1299_v27, %v9136_v24  ;;  %v7206_v30 = vpop.f32.mrb[9].mxu1  ;;  %v1054_v27 = vcombine.high %v1038_v14, %v1038_v14 }
 0x82d   : > { %v1302_v36 = vpop.f32.mrb[10].mxu1 }
 0x82e   : > { %v7207_v37 = vpop.f32.mrb[11].mxu1  ;;  %v1649_v39 = vsel %vm1648_vm5, %v9139_v29, -inf }
 0x82f   : > { %1650 = vmax.xlane.f32.xlu0 %v1649_v39 }
 0x833   : > { %v1348_v44 = vpop.f32.mrb[12].mxu1 }
 0x834   : > { %v9148_v47 = vadd.f32 %v1348_v44, %v9145_v43  ;;  %v7212_v48 = vpop.f32.mrb[13].mxu1  ;;  %v1052_v44 = vrot.slane %v1024_v23, %v8941_v12 }
 0x835   : > { %v1351_v52 = vpop.f32.mrb[14].mxu1 }
 0x836   : > { %v7213_v53 = vpop.f32.mrb[15].mxu1  ;;  %v1652_v54 = vsel %vm1648_vm5, %v9148_v47, -inf }
 0x837   : > { %1653 = vmax.xlane.f32.xlu1 %v1652_v54  ;;  %v9172_v53 = vrot.slane %v1054_v27, %v8945_v19 }
 0x83b   : > { %v1397_v60 = vpop.f32.mrb[16].mxu1  ;;  %v1495_v61 = vpop.f32.mrb[20].mxu0 }
 0x83c   : > { %v9157_v62 = vadd.f32 %v1397_v60, %v9153_v56  ;;  %v7218_v63 = vpop.f32.mrb[17].mxu1  ;;  %v7230_v2 = vpop.f32.mrb[21].mxu0  ;;  %v1496_v52 = vadd.f32 %v1495_v61, %v9166_v25  ;;  %v9176_v60 = vrot.slane %v1052_v44, %v8945_v19 }
 0x83d   : > { %v1400_v11 = vpop.f32.mrb[18].mxu1  ;;  %v1498_v13 = vpop.f32.mrb[22].mxu0 }
 0x83e   : > { %v7219_v16 = vpop.f32.mrb[19].mxu1  ;;  %v7231_v20 = vpop.f32.mrb[23].mxu0  ;;  %v1655_v6 = vsel %vm1648_vm5, %v9157_v62, -inf  ;;  %v1661_v2 = vsel %vm1648_vm5, %v1496_v52, -inf  ;;  %v1056_v11 = vcombine.high %v1052_v44, %v1052_v44 }
 0x83f   : > { %1656 = vmax.xlane.f32.xlu0 %v1655_v6 }
 0x840   : > { %v9187_v6 = vrot.slane %v1056_v11, %v8945_v19 }
 0x843   : > { %v1446_v30 = vpop.f32.mrb[20].mxu1  ;;  %v1593_v35 = vpop.f32.mrb[24].mxu0 }
 0x844   : > { %v1447_v36 = vadd.f32 %v1446_v30, %v9163_v9  ;;  %v7224_v37 = vpop.f32.mrb[21].mxu1  ;;  %v7242_v39 = vpop.f32.mrb[25].mxu0  ;;  %v1594_v63 = vadd.f32 %v1593_v35, %v9172_v53 }
 0x845   : > { %v1449_v48 = vpop.f32.mrb[22].mxu1  ;;  %v1596_v50 = vpop.f32.mrb[26].mxu0 }
 0x846   : > { %v7225_v54 = vpop.f32.mrb[23].mxu1  ;;  %v7243_v55 = vpop.f32.mrb[27].mxu0  ;;  %v1658_v59 = vsel %vm1648_vm5, %v1447_v36, -inf  ;;  %v1667_v16 = vsel %vm1648_vm5, %v1594_v63, -inf }
 0x847   : > { %1659 = vmax.xlane.f32.xlu0 %v1658_v59 }
 0x84b   : > { %1662 = vmax.xlane.f32.xlu0 %v1661_v2  ;;  %v1544_v12 = vpop.f32.mrb[24].mxu1 }
 0x84c   : > { %v9181_v4 = vadd.f32 %v1544_v12, %v9176_v60  ;;  %v7236_v61 = vpop.f32.mrb[25].mxu1 }
 0x84d   : > { %v1547_v13 = vpop.f32.mrb[26].mxu1 }
 0x84e   : > { %v7237_v14 = vpop.f32.mrb[27].mxu1  ;;  %v1664_v20 = vsel %vm1648_vm5, %v9181_v4, -inf }
 0x84f   : > { %1668 = vmax.xlane.f32.xlu0 %v1667_v16  ;;  %1665 = vmax.xlane.f32.xlu1 %v1664_v20 }
 0x853   : > { %v1642_v23 = vpop.f32.mrb[28].mxu1 }
 0x854   : > { %v9190_v27 = vadd.f32 %v1642_v23, %v9187_v6  ;;  %v7248_v30 = vpop.f32.mrb[29].mxu1 }
 0x855   : > { %v1645_v35 = vpop.f32.mrb[30].mxu1 }
 0x856   : > { %v7249_v37 = vpop.f32.mrb[31].mxu1  ;;  %v1670_v39 = vsel %vm1648_vm5, %v9190_v27, -inf }
 0x857   : > { %1671 = vmax.xlane.f32.xlu1 %v1670_v39 }
 0x8bc   : > { %v1651_v44 = vpop.xlane.xlu0 %1650 }
 0x8bd   : > { %v1673_v48 = vsub.f32 %v9139_v29, %v1651_v44 }
 0x8bf   : > { %v1681_v50 = vmul.f32 1.442695, %v1673_v48 }
 0x8c1   : > { %7978 = vpow2.f32 %v1681_v50 }
 0x8c4   : > { %v1654_v54 = vpop.xlane.xlu1 %1653 }
 0x8c5   : > { %v1674_v55 = vsub.f32 %v9148_v47, %v1654_v54 }
 0x8c7   : > { %v1683_v59 = vmul.f32 1.442695, %v1674_v55 }
 0x8c9   : > { %7980 = vpow2.f32 %v1683_v59 }
 0x8cb   : > { %v9196_v2 = vpop.eup %7978 }
 0x8cc   : > { %v1657_v12 = vpop.xlane.xlu0 %1656  ;;  %v1697_v61 = vsel %vm1648_vm5, %v9196_v2, 0.0 }
 0x8cd   : > { %v1675_v11 = vsub.f32 %v9157_v62, %v1657_v12  ;;  %1698 = vadd.xlane.f32.xlu0 %v1697_v61 }
 0x8cf   : > { %v1685_v13 = vmul.f32 1.442695, %v1675_v11 }
 0x8d1   : > { %7982 = vpow2.f32 %v1685_v13 }
 0x8d3   : > { %v9201_v14 = vpop.eup %7980 }
 0x8d4   : > { %v1660_v29 = vpop.xlane.xlu0 %1659  ;;  %v1700_v16 = vsel %vm1648_vm5, %v9201_v14, 0.0 }
 0x8d5   : > { %v1676_v47 = vsub.f32 %v1447_v36, %v1660_v29  ;;  %1701 = vadd.xlane.f32.xlu1 %v1700_v16 }
 0x8d7   : > { %v1687_v20 = vmul.f32 1.442695, %v1676_v47 }
 0x8d8   : > { %v1663_v23 = vpop.xlane.xlu0 %1662 }
 0x8d9   : > { %7984 = vpow2.f32 %v1687_v20  ;;  %v1677_v30 = vsub.f32 %v1496_v52, %v1663_v23 }
 0x8db   : > { %v9205_v35 = vpop.eup %7982  ;;  %v1689_v37 = vmul.f32 1.442695, %v1677_v30 }
 0x8dc   : > { %v1669_v39 = vpop.xlane.xlu0 %1668  ;;  %v1703_v62 = vsel %vm1648_vm5, %v9205_v35, 0.0  ;;  %v1666_v59 = vpop.xlane.xlu1 %1665 }
 0x8dd   : > { %7986 = vpow2.f32 %v1689_v37  ;;  %v1679_v44 = vsub.f32 %v1594_v63, %v1669_v39  ;;  %1704 = vadd.xlane.f32.xlu0 %v1703_v62  ;;  %v1678_v12 = vsub.f32 %v9181_v4, %v1666_v59 }
 0x8df   : > { %v1693_v48 = vmul.f32 1.442695, %v1679_v44  ;;  %v1691_v61 = vmul.f32 1.442695, %v1678_v12 }
 0x8e1   : > { %7988 = vpow2.f32 %v1693_v48 }
 0x8e2   : > { %7990 = vpow2.f32 %v1691_v61  ;;  %v9305_v61 = vpack.c.bf16 %v9053_v38, %v9053_v38 }
 0x8e3   : > { %v9209_v50 = vpop.eup %7984 }
 0x8e4   : > { %v1706_v36 = vsel %vm1648_vm5, %v9209_v50, 0.0 }
 0x8e5   : > { %1707 = vadd.xlane.f32.xlu1 %v1706_v36 }
 0x8e7   : > { %v9213_v54 = vpop.eup %7986 }
 0x8e8   : > { %v1709_v52 = vsel %vm1648_vm5, %v9213_v54, 0.0 }
 0x8e9   : > { %1710 = vadd.xlane.f32.xlu0 %v1709_v52 }
 0x8eb   : > { %v9217_v55 = vpop.eup %7988 }
 0x8ec   : > { %v1715_v63 = vsel %vm1648_vm5, %v9217_v55, 0.0  ;;  %v9234_v11 = vpop.eup %7990 }
 0x8ed   : > { %1716 = vadd.xlane.f32.xlu0 %v1715_v63  ;;  %v1712_v4 = vsel %vm1648_vm5, %v9234_v11, 0.0 }
 0x8f6   : > { %2174 = vrot.lane.b32.xlu1 %v9014_v8, %s8503_s21 }
 0x903   : > { %2124 = vrot.lane.b32.xlu0 %v9009_v3, %s8503_s21 }
 0x907   : > { %2224 = vrot.lane.b32.xlu0 %v9027_v17, %s8503_s21 }
 0x90b   : > { %2222 = vrot.lane.b32.xlu0 %v9027_v17, %s8504_s7  ;;  %v1672_v17 = vpop.xlane.xlu1 %1671 }
 0x90c   : > { %v1680_v13 = vsub.f32 %v9190_v27, %v1672_v17  ;;  %v9255_v27 = vpack.c.bf16 %v9025_v15, %v9025_v15  ;;  %v2034_v17 = vsel %vm1756_vm4, %v9305_v61, 0 }
 0x90e   : > { %v1695_v29 = vmul.f32 1.442695, %v1680_v13  ;;  %v1850_v30 = vsel %vm1756_vm4, %v9255_v27, 0 }
 0x90f   : > { %2324 = vrot.lane.b32.xlu0 %v9041_v28, %s8503_s21 }
 0x910   : > { %7992 = vpow2.f32 %v1695_v29 }
 0x913   : > { %2322 = vrot.lane.b32.xlu0 %v9041_v28, %s8504_s7 }
 0x917   : > { %2424 = vrot.lane.b32.xlu0 %v9055_v41, %s8503_s21 }
 0x91a   : > { %1713 = vadd.xlane.f32.xlu1 %v1712_v4  ;;  %v9245_v28 = vpop.eup %7992 }
 0x91b   : > { %2422 = vrot.lane.b32.xlu0 %v9055_v41, %s8504_s7  ;;  %v1718_v16 = vsel %vm1648_vm5, %v9245_v28, 0.0 }
 0x92b   : > { %2122 = vrot.lane.b32.xlu1 %v9009_v3, %s8504_s7 }
 0x94f   : > { %1719 = vadd.xlane.f32.xlu1 %v1718_v16 }
 0x95a   : > { %v1699_v47 = vpop.xlane.xlu0 %1698 }
 0x95b   : > { %7994 = vrcp.f32 %v1699_v47 }
 0x960   : > { %2172 = vrot.lane.b32.xlu1 %v9014_v8, %s8504_s7 }
 0x962   : > { %v1702_v41 = vpop.xlane.xlu1 %1701 }
 0x963   : > { %7996 = vrcp.f32 %v1702_v41 }
 0x964   : > { %2274 = vrot.lane.b32.xlu1 %v9034_v22, %s8503_s21 }
 0x965   : > { %v7995_v3 = vpop.eup %7994 }
 0x966   : > { %v1729_v20 = vmul.f32 %v7995_v3, %v9196_v2 }
 0x968   : > { %2272 = vrot.lane.b32.xlu1 %v9034_v22, %s8504_s7  ;;  %v1737_v23 = vpack.c.bf16 %v1729_v20, %v1729_v20  ;;  %v9270_v22 = vpack.c.bf16 %v9030_v21, %v9030_v21 }
 0x96a   : > { %7253 = vmatmul.mubr.msk.bf16.vlgmr.msra.gmra.mrb[28].mxu0 %vm1648_vm5, %v1737_v23  ;;  %v1705_v8 = vpop.xlane.xlu0 %1704  ;;  %v1896_v39 = vsel %vm1756_vm4, %v9270_v22, 0 }
 0x96b   : > { %7263 = vmatpush3.bf16.msra.mxu0 %v1850_v30  ;;  %7998 = vrcp.f32 %v1705_v8  ;;  %7264 = vmatprep.mubr.msk.bf16.mxu0 %vm8499_vm0, %v8498_v0  ;;  %v9331_v8 = vpack.c.bf16 %v9058_v45, %v9058_v45 }
 0x96c   : > { %2374 = vrot.lane.b32.xlu1 %v9046_v34, %s8503_s21  ;;  %7274 = vmatprep.subr.bf16.mxu0 %v8498_v0 }
 0x96d   : > { %v7997_v15 = vpop.eup %7996 }
 0x96e   : > { %v1730_v2 = vmul.f32 %v7997_v15, %v9201_v14 }
 0x970   : > { %2372 = vrot.lane.b32.xlu1 %v9046_v34, %s8504_s7  ;;  %v1738_v37 = vpack.c.bf16 %v1730_v2, %v1730_v2  ;;  %v9285_v34 = vpack.c.bf16 %v9039_v26, %v9039_v26 }
 0x972   : > { %7259 = vmatmul.mubr.msk.bf16.vlgmr.msra.gmra.mrb[32].mxu1 %vm1648_vm5, %v1738_v37  ;;  %v1708_v62 = vpop.xlane.xlu1 %1707  ;;  %v1942_v36 = vsel %vm1756_vm4, %v9285_v34, 0 }
 0x973   : > { %7269 = vmatpush3.bf16.msra.mxu1 %v1896_v39  ;;  %8000 = vrcp.f32 %v1708_v62  ;;  %7270 = vmatprep.mubr.msk.bf16.mxu1 %vm8499_vm0, %v8498_v0  ;;  %v2080_v62 = vsel %vm1756_vm4, %v9331_v8, 0 }
 0x974   : > { %2474 = vrot.lane.b32.xlu1 %v9060_v46, %s8503_s21  ;;  %7280 = vmatprep.subr.bf16.mxu1 %v8498_v0 }
 0x975   : > { %v7999_v21 = vpop.eup %7998 }
 0x976   : > { %v1711_v14 = vpop.xlane.xlu0 %1710  ;;  %v1731_v44 = vmul.f32 %v7999_v21, %v9205_v35  ;;  %v9298_v35 = vpack.c.bf16 %v9044_v33, %v9044_v33  ;;  %v2175_v47 = vpop.permute.xlu1 %2174 }
 0x977   : > { %8002 = vrcp.f32 %v1711_v14 }
 0x978   : > { %2472 = vrot.lane.b32.xlu1 %v9060_v46, %s8504_s7  ;;  %v1739_v48 = vpack.c.bf16 %v1731_v44, %v1731_v44  ;;  %v1988_v12 = vsel %vm1756_vm4, %v9298_v35, 0 }
 0x97a   : > { %7265 = vmatmul.mubr.msk.bf16.vlgmr.msra.gmra.mrb[32].mxu0 %vm1648_vm5, %v1739_v48  ;;  %v1717_v52 = vpop.xlane.xlu0 %1716 }
 0x97b   : > { %7275 = vmatpush3.bf16.msra.mxu0 %v1942_v36  ;;  %8004 = vrcp.f32 %v1717_v52  ;;  %7276 = vmatprep.mubr.msk.bf16.mxu0 %vm8499_vm0, %v8498_v0 }
 0x97c   : > { %7286 = vmatprep.subr.bf16.mxu0 %v8498_v0 }
 0x97d   : > { %v8001_v26 = vpop.eup %8000 }
 0x97e   : > { %v1732_v46 = vmul.f32 %v8001_v26, %v9209_v50 }
 0x980   : > { %v1740_v63 = vpack.c.bf16 %v1732_v46, %v1732_v46  ;;  %v2180_v46 = vsel %vm1258_vm3, %v2175_v47, 0 }
 0x981   : > { %v8003_v59 = vpop.eup %8002 }
 0x982   : > { %7271 = vmatmul.mubr.msk.bf16.vlgmr.msra.gmra.mrb[36].mxu1 %vm1648_vm5, %v1740_v63  ;;  %v1733_v4 = vmul.f32 %v8003_v59, %v9213_v54  ;;  %v2125_v54 = vpop.permute.xlu0 %2124 }
 0x983   : > { %7281 = vmatpush3.bf16.msra.mxu1 %v1988_v12  ;;  %7282 = vmatprep.mubr.msk.bf16.mxu1 %vm8499_vm0, %v8498_v0  ;;  %v2130_v29 = vsel %vm1258_vm3, %v2125_v54, 0 }
 0x984   : > { %v1741_v33 = vpack.c.bf16 %v1733_v4, %v1733_v4  ;;  %7292 = vmatprep.subr.bf16.mxu1 %v8498_v0 }
 0x985   : > { %v8005_v50 = vpop.eup %8004 }
 0x986   : > { %7277 = vmatmul.mubr.msk.bf16.vlgmr.msra.gmra.mrb[36].mxu0 %vm1648_vm5, %v1741_v33  ;;  %v1735_v38 = vmul.f32 %v8005_v50, %v9217_v55  ;;  %v2225_v16 = vpop.permute.xlu0 %2224 }
 0x987   : > { %7287 = vmatpush3.bf16.msra.mxu0 %v2034_v17  ;;  %7288 = vmatprep.mubr.msk.bf16.mxu0 %vm8499_vm0, %v8498_v0  ;;  %v2230_v20 = vsel %vm1258_vm3, %v2225_v16, 0 }
 0x988   : > { %7298 = vmatprep.subr.bf16.mxu0 %v8498_v0  ;;  %v1743_v13 = vpack.c.bf16 %v1735_v38, %v1735_v38 }
 0x98a   : > { %v2223_v41 = vpop.permute.xlu0 %2222 }
 0x98e   : > { %7289 = vmatmul.mubr.msk.bf16.vlgmr.msra.gmra.mrb[40].mxu0 %vm1648_vm5, %v1743_v13  ;;  %v2325_v23 = vpop.permute.xlu0 %2324 }
 0x98f   : > { %7300 = vmatprep.mubr.msk.bf16.mxu0 %vm8499_vm0, %v8498_v0  ;;  %v2330_v37 = vsel %vm1258_vm3, %v2325_v23, 0 }
 0x990   : > { %7299 = vmatpush3.bf16.xpose.msra.mxu0 %v2130_v29 }
 0x991   : > { %7310 = vmatprep.subr.bf16.mxu0 %v8498_v0 }
 0x992   : > { %v2323_v15 = vpop.permute.xlu0 %2322 }
 0x996   : > { %v2425_v45 = vpop.permute.xlu0 %2424 }
 0x99a   : > { %v2423_v21 = vpop.permute.xlu0 %2422 }
 0x9a7   : > { %v1714_v3 = vpop.xlane.xlu1 %1713 }
 0x9a8   : > { %8006 = vrcp.f32 %v1714_v3 }
 0x9ab   : > { %v2123_v55 = vpop.permute.xlu1 %2122 }
 0x9ac   : > { %7301 = vmatmul.mubr.msk.bf16.vlgmr.msra.gmra.mrb[44].mxu0 %vm1258_vm3, %v2123_v55 }
 0x9ad   : > { %7311 = vmatpush3.bf16.xpose.msra.mxu0 %v2230_v20  ;;  %7312 = vmatprep.mubr.msk.bf16.mxu0 %vm8499_vm0, %v8498_v0 }
 0x9ae   : > { %7322 = vmatprep.subr.bf16.mxu0 %v8498_v0 }
 0x9b2   : > { %v8007_v30 = vpop.eup %8006 }
 0x9b3   : > { %v1734_v2 = vmul.f32 %v8007_v30, %v9234_v11  ;;  %v2430_v11 = vsel %vm1258_vm3, %v2425_v45, 0 }
 0x9b4   : > { %7313 = vmatmul.mubr.msk.bf16.vlgmr.msra.gmra.mrb[48].mxu0 %vm1258_vm3, %v2223_v41 }
 0x9b5   : > { %7323 = vmatpush3.bf16.xpose.msra.mxu0 %v2330_v37  ;;  %v1742_v39 = vpack.c.bf16 %v1734_v2, %v1734_v2  ;;  %7324 = vmatprep.mubr.msk.bf16.mxu0 %vm8499_vm0, %v8498_v0 }
 0x9b6   : > { %7334 = vmatprep.subr.bf16.mxu0 %v8498_v0 }
 0x9b7   : > { %7283 = vmatmul.mubr.msk.bf16.vlgmr.msra.gmra.mrb[40].mxu1 %vm1648_vm5, %v1742_v39 }
 0x9b8   : > { %7293 = vmatpush3.bf16.msra.mxu1 %v2080_v62  ;;  %7294 = vmatprep.mubr.msk.bf16.mxu1 %vm8499_vm0, %v8498_v0 }
 0x9b9   : > { %7304 = vmatprep.subr.bf16.mxu1 %v8498_v0 }
 0x9bc   : > { %7325 = vmatmul.mubr.msk.bf16.vlgmr.msra.gmra.mrb[52].mxu0 %vm1258_vm3, %v2323_v15 }
 0x9bd   : > { %7335 = vmatpush3.bf16.xpose.msra.mxu0 %v2430_v11  ;;  %7336 = vmatprep.mubr.msk.bf16.mxu0 %vm8499_vm0, %v8498_v0 }
 0x9be   : > { %7346 = vmatprep.subr.bf16.mxu0 %v8498_v0 }
 0x9c4   : > { %7337 = vmatmul.mubr.msk.bf16.vlgmr.msra.gmra.mrb[56].mxu0 %vm1258_vm3, %v2423_v21 }
 0x9c5   : > { %7348 = vmatprep.mubr.msk.bf16.mxu0 %vm8499_vm0, %v8498_v0 }
 0x9dc   : > { %v1720_v14 = vpop.xlane.xlu1 %1719 }
 0x9dd   : > { %8008 = vrcp.f32 %v1720_v14 }
 0x9e0   : > { %v2173_v44 = vpop.permute.xlu1 %2172 }
 0x9e4   : > { %v2275_v52 = vpop.permute.xlu1 %2274 }
 0x9e5   : > { %v2280_v59 = vsel %vm1258_vm3, %v2275_v52, 0 }
 0x9e7   : > { %v8009_v48 = vpop.eup %8008 }
 0x9e8   : > { %v1736_v36 = vmul.f32 %v8009_v48, %v9245_v28  ;;  %v2273_v63 = vpop.permute.xlu1 %2272 }
 0x9ea   : > { %v1744_v26 = vpack.c.bf16 %v1736_v36, %v1736_v36 }
 0x9ec   : > { %7295 = vmatmul.mubr.msk.bf16.vlgmr.msra.gmra.mrb[44].mxu1 %vm1648_vm5, %v1744_v26  ;;  %v2375_v12 = vpop.permute.xlu1 %2374 }
 0x9ed   : > { %7305 = vmatpush3.bf16.xpose.msra.mxu1 %v2180_v46  ;;  %7306 = vmatprep.mubr.msk.bf16.mxu1 %vm8499_vm0, %v8498_v0  ;;  %v2380_v4 = vsel %vm1258_vm3, %v2375_v12, 0 }
 0x9ee   : > { %7316 = vmatprep.subr.bf16.mxu1 %v8498_v0 }
 0x9f0   : > { %v2373_v28 = vpop.permute.xlu1 %2372 }
 0x9f4   : > { %7307 = vmatmul.mubr.msk.bf16.vlgmr.msra.gmra.mrb[48].mxu1 %vm1258_vm3, %v2173_v44  ;;  %v2475_v33 = vpop.permute.xlu1 %2474 }
 0x9f5   : > { %7317 = vmatpush3.bf16.xpose.msra.mxu1 %v2280_v59  ;;  %7318 = vmatprep.mubr.msk.bf16.mxu1 %vm8499_vm0, %v8498_v0  ;;  %v2480_v50 = vsel %vm1258_vm3, %v2475_v33, 0 }
 0x9f6   : > { %7328 = vmatprep.subr.bf16.mxu1 %v8498_v0 }
 0x9f8   : > { %v2473_v17 = vpop.permute.xlu1 %2472 }
 0x9fc   : > { %7319 = vmatmul.mubr.msk.bf16.vlgmr.msra.gmra.mrb[52].mxu1 %vm1258_vm3, %v2273_v63 }
 0x9fd   : > { %7329 = vmatpush3.bf16.xpose.msra.mxu1 %v2380_v4  ;;  %7330 = vmatprep.mubr.msk.bf16.mxu1 %vm8499_vm0, %v8498_v0 }
 0x9fe   : > { %7340 = vmatprep.subr.bf16.mxu1 %v8498_v0 }
 0xa04   : > { %7331 = vmatmul.mubr.msk.bf16.vlgmr.msra.gmra.mrb[56].mxu1 %vm1258_vm3, %v2373_v28 }
 0xa05   : > { %7341 = vmatpush3.bf16.xpose.msra.mxu1 %v2480_v50  ;;  %7342 = vmatprep.mubr.msk.bf16.mxu1 %vm8499_vm0, %v8498_v0 }
 0xa06   : > { %7352 = vmatprep.subr.bf16.mxu1 %v8498_v0 }
 0xa0c   : > { %7343 = vmatmul.mubr.msk.bf16.vlgmr.msra.gmra.mrb[60].mxu1 %vm1258_vm3, %v2473_v17 }
 0xa0d   : > { %7354 = vmatprep.mubr.msk.bf16.mxu1 %vm8499_vm0, %v8498_v0 }
 0xa3d   : > { %v9377_v38 = vpop.f32.mrb[28].mxu0 }
 0xa3e   : > { %v7254_v54 = vpop.f32.mrb[29].mxu0 }
 0xa3f   : > { %v1797_v13 = vpop.f32.mrb[30].mxu0 }
 0xa40   : > { %v7255_v29 = vpop.f32.mrb[31].mxu0 }
 0xa45   : > { %v9379_v16 = vpop.f32.mrb[32].mxu1 }
 0xa46   : > { %v7260_v47 = vpop.f32.mrb[33].mxu1 }
 0xa47   : > { %v1843_v41 = vpop.f32.mrb[34].mxu1 }
 0xa48   : > { %v7261_v3 = vpop.f32.mrb[35].mxu1 }
 0xa4d   : > { %v9381_v55 = vpop.f32.mrb[32].mxu0 }
 0xa4e   : > { %v7266_v20 = vpop.f32.mrb[33].mxu0 }
 0xa4f   : > { %v1889_v23 = vpop.f32.mrb[34].mxu0 }
 0xa50   : > { %v7267_v30 = vpop.f32.mrb[35].mxu0 }
 0xa55   : > { %v9383_v15 = vpop.f32.mrb[36].mxu1 }
 0xa56   : > { %v7272_v2 = vpop.f32.mrb[37].mxu1 }
 0xa57   : > { %v1935_v37 = vpop.f32.mrb[38].mxu1 }
 0xa58   : > { %v7273_v39 = vpop.f32.mrb[39].mxu1 }
 0xa59   : > { %v9385_v62 = vpop.f32.mrb[36].mxu0 }
 0xa5a   : > { %v7278_v45 = vpop.f32.mrb[37].mxu0 }
 0xa5b   : > { %v1981_v11 = vpop.f32.mrb[38].mxu0 }
 0xa5c   : > { %v7279_v21 = vpop.f32.mrb[39].mxu0 }
 0xa61   : > { %v9387_v14 = vpop.f32.mrb[40].mxu0 }
 0xa62   : > { %v7290_v44 = vpop.f32.mrb[41].mxu0 }
 0xa63   : > { %v2073_v48 = vpop.f32.mrb[42].mxu0 }
 0xa64   : > { %v7291_v36 = vpop.f32.mrb[43].mxu0 }
 0xa7f   : > { %v2166_v52 = vpop.f32.mrb[44].mxu0 }
 0xa80   : > { %v9390_v26 = vadd.f32 %v2166_v52, %v9136_v24  ;;  %v7302_v46 = vpop.f32.mrb[45].mxu0 }
 0xa81   : > { %v2169_v63 = vpop.f32.mrb[46].mxu0 }
 0xa82   : > { %v7303_v59 = vpop.f32.mrb[47].mxu0  ;;  %v2522_v12 = vsel %vm1648_vm5, %v9390_v26, -inf }
 0xa83   : > { %2523 = vmax.xlane.f32.xlu0 %v2522_v12 }
 0xa87   : > { %v2266_v28 = vpop.f32.mrb[48].mxu0 }
 0xa88   : > { %v9395_v4 = vadd.f32 %v2266_v28, %v9153_v56  ;;  %v7314_v33 = vpop.f32.mrb[49].mxu0 }
 0xa89   : > { %v2269_v50 = vpop.f32.mrb[50].mxu0 }
 0xa8a   : > { %v9397_v17 = vpop.f32.mrb[40].mxu1  ;;  %v7315_v54 = vpop.f32.mrb[51].mxu0  ;;  %v2528_v13 = vsel %vm1648_vm5, %v9395_v4, -inf }
 0xa8b   : > { %2529 = vmax.xlane.f32.xlu0 %v2528_v13  ;;  %v7284_v29 = vpop.f32.mrb[41].mxu1 }
 0xa8c   : > { %v2027_v47 = vpop.f32.mrb[42].mxu1 }
 0xa8d   : > { %v7285_v41 = vpop.f32.mrb[43].mxu1 }
 0xa8f   : > { %v2366_v3 = vpop.f32.mrb[52].mxu0 }
 0xa90   : > { %v7326_v20 = vpop.f32.mrb[53].mxu0  ;;  %v2367_v13 = vadd.f32 %v2366_v3, %v9166_v25 }
 0xa91   : > { %v2369_v23 = vpop.f32.mrb[54].mxu0 }
 0xa92   : > { %v7327_v30 = vpop.f32.mrb[55].mxu0  ;;  %v2534_v20 = vsel %vm1648_vm5, %v2367_v13, -inf }
 0xa97   : > { %v2466_v2 = vpop.f32.mrb[56].mxu0 }
 0xa98   : > { %v7338_v37 = vpop.f32.mrb[57].mxu0  ;;  %v9412_v41 = vadd.f32 %v2466_v2, %v9172_v53 }
 0xa99   : > { %v2469_v39 = vpop.f32.mrb[58].mxu0 }
 0xa9a   : > { %v7339_v45 = vpop.f32.mrb[59].mxu0  ;;  %v2540_v3 = vsel %vm1648_vm5, %v9412_v41, -inf }
 0xabf   : > { %v9401_v11 = vpop.f32.mrb[44].mxu1 }
 0xac0   : > { %v7296_v21 = vpop.f32.mrb[45].mxu1 }
 0xac1   : > { %v2119_v44 = vpop.f32.mrb[46].mxu1 }
 0xac2   : > { %v7297_v48 = vpop.f32.mrb[47].mxu1 }
 0xac7   : > { %v2216_v36 = vpop.f32.mrb[48].mxu1 }
 0xac8   : > { %v2217_v52 = vadd.f32 %v2216_v36, %v9145_v43  ;;  %v7308_v46 = vpop.f32.mrb[49].mxu1 }
 0xac9   : > { %v2219_v63 = vpop.f32.mrb[50].mxu1 }
 0xaca   : > { %v7309_v59 = vpop.f32.mrb[51].mxu1  ;;  %v2525_v12 = vsel %vm1648_vm5, %v2217_v52, -inf }
 0xacb   : > { %2526 = vmax.xlane.f32.xlu1 %v2525_v12 }
 0xacf   : > { %v2316_v28 = vpop.f32.mrb[52].mxu1 }
 0xad0   : > { %v9406_v33 = vadd.f32 %v2316_v28, %v9163_v9  ;;  %v7320_v50 = vpop.f32.mrb[53].mxu1 }
 0xad1   : > { %v2319_v54 = vpop.f32.mrb[54].mxu1 }
 0xad2   : > { %v7321_v29 = vpop.f32.mrb[55].mxu1  ;;  %v2531_v47 = vsel %vm1648_vm5, %v9406_v33, -inf }
 0xad3   : > { %2532 = vmax.xlane.f32.xlu0 %v2531_v47 }
 0xad7   : > { %2535 = vmax.xlane.f32.xlu0 %v2534_v20  ;;  %v2416_v23 = vpop.f32.mrb[56].mxu1 }
 0xad8   : > { %v9416_v30 = vadd.f32 %v2416_v23, %v9176_v60  ;;  %v7332_v37 = vpop.f32.mrb[57].mxu1 }
 0xad9   : > { %v2419_v39 = vpop.f32.mrb[58].mxu1 }
 0xada   : > { %v7333_v45 = vpop.f32.mrb[59].mxu1  ;;  %v2537_v21 = vsel %vm1648_vm5, %v9416_v30, -inf }
 0xadb   : > { %2541 = vmax.xlane.f32.xlu0 %v2540_v3  ;;  %2538 = vmax.xlane.f32.xlu1 %v2537_v21 }
 0xadf   : > { %v2516_v2 = vpop.f32.mrb[60].mxu1 }
 0xae0   : > { %v7344_v44 = vpop.f32.mrb[61].mxu1  ;;  %v2517_v46 = vadd.f32 %v2516_v2, %v9187_v6 }
 0xae1   : > { %v2519_v48 = vpop.f32.mrb[62].mxu1 }
 0xae2   : > { %v7345_v36 = vpop.f32.mrb[63].mxu1  ;;  %v2543_v63 = vsel %vm1648_vm5, %v2517_v46, -inf }
 0xaec   : > { %2668 = vrot.lane.b32.xlu1 %v9119_v18, %s8504_s7 }
 0xaf1   : > { %2619 = vrot.lane.b32.xlu0 %v9096_v1, %s8504_s7 }
 0xb10   : > { %v2524_v59 = vpop.xlane.xlu0 %2523  ;;  %2544 = vmax.xlane.f32.xlu1 %v2543_v63 }
 0xb11   : > { %v2546_v12 = vsub.f32 %v9390_v26, %v2524_v59 }
 0xb13   : > { %v2554_v28 = vmul.f32 1.442695, %v2546_v12 }
 0xb15   : > { %8010 = vpow2.f32 %v2554_v28 }
 0xb18   : > { %v2530_v50 = vpop.xlane.xlu0 %2529 }
 0xb19   : > { %v2548_v54 = vsub.f32 %v9395_v4, %v2530_v50 }
 0xb1b   : > { %v2558_v29 = vmul.f32 1.442695, %v2548_v54 }
 0xb1d   : > { %8012 = vpow2.f32 %v2558_v29 }
 0xb1f   : > { %v8011_v47 = vpop.eup %8010 }
 0xb20   : > { %v2570_v18 = vsel %vm1648_vm5, %v8011_v47, 0.0 }
 0xb21   : > { %2571 = vadd.xlane.f32.xlu0 %v2570_v18 }
 0xb27   : > { %v8013_v1 = vpop.eup %8012 }
 0xb28   : > { %v2576_v20 = vsel %vm1648_vm5, %v8013_v1, 0.0 }
 0xb29   : > { %2577 = vadd.xlane.f32.xlu0 %v2576_v20 }
 0xb3f   : > { %2717 = vrot.lane.b32.xlu0 %v9255_v27, %s8504_s7 }
 0xb58   : > { %v2527_v23 = vpop.xlane.xlu1 %2526 }
 0xb59   : > { %v2547_v26 = vsub.f32 %v2217_v52, %v2527_v23 }
 0xb5b   : > { %v2556_v37 = vmul.f32 1.442695, %v2547_v26 }
 0xb5d   : > { %8014 = vpow2.f32 %v2556_v37 }
 0xb60   : > { %v2533_v39 = vpop.xlane.xlu0 %2532 }
 0xb61   : > { %v2549_v12 = vsub.f32 %v9406_v33, %v2533_v39 }
 0xb63   : > { %v2560_v28 = vmul.f32 1.442695, %v2549_v12 }
 0xb64   : > { %v2536_v45 = vpop.xlane.xlu0 %2535 }
 0xb65   : > { %v2550_v4 = vsub.f32 %v2367_v13, %v2536_v45 }
 0xb67   : > { %v9434_v3 = vpop.eup %8014  ;;  %v2562_v21 = vmul.f32 1.442695, %v2550_v4 }
 0xb68   : > { %v2542_v2 = vpop.xlane.xlu0 %2541  ;;  %v2539_v44 = vpop.xlane.xlu1 %2538  ;;  %v2573_v48 = vsel %vm1648_vm5, %v9434_v3, 0.0 }
 0xb69   : > { %8016 = vpow2.f32 %v2562_v21  ;;  %2574 = vadd.xlane.f32.xlu1 %v2573_v48  ;;  %v2551_v21 = vsub.f32 %v9416_v30, %v2539_v44  ;;  %v2552_v48 = vsub.f32 %v9412_v41, %v2542_v2 }
 0xb6a   : > { %8018 = vpow2.f32 %v2560_v28 }
 0xb6c   : > { %v2620_v36 = vpop.permute.xlu0 %2619  ;;  %v2669_v63 = vpop.permute.xlu1 %2668 }
 0xb6d   : > { %v2625_v27 = vsel %vm1756_vm4, %v2620_v36, 0  ;;  %v2674_v52 = vsel %vm1756_vm4, %v2669_v63, 0  ;;  %v2564_v36 = vmul.f32 1.442695, %v2551_v21  ;;  %v2566_v63 = vmul.f32 1.442695, %v2552_v48 }
 0xb6e   : > { %7347 = vmatpush3.bf16.msra.mxu0 %v2625_v27  ;;  %7353 = vmatpush3.bf16.msra.mxu1 %v2674_v52 }
 0xb6f   : > { %7358 = vmatprep.subr.bf16.mxu0 %v8498_v0  ;;  %7364 = vmatprep.subr.bf16.mxu1 %v8498_v0 }
 0xb73   : > { %v9442_v13 = vpop.eup %8016 }
 0xb74   : > { %v2582_v59 = vsel %vm1648_vm5, %v9442_v13, 0.0  ;;  %v9451_v54 = vpop.eup %8018 }
 0xb75   : > { %2583 = vadd.xlane.f32.xlu0 %v2582_v59  ;;  %v2579_v20 = vsel %vm1648_vm5, %v9451_v54, 0.0 }
 0xb7a   : > { %2766 = vrot.lane.b32.xlu1 %v9270_v22, %s8504_s7 }
 0xb7e   : > { %2815 = vrot.lane.b32.xlu1 %v9285_v34, %s8504_s7 }
 0xb9d   : > { %v2545_v50 = vpop.xlane.xlu1 %2544 }
 0xb9e   : > { %v2553_v29 = vsub.f32 %v2517_v46, %v2545_v50 }
 0xba0   : > { %v2568_v18 = vmul.f32 1.442695, %v2553_v29 }
 0xba2   : > { %8020 = vpow2.f32 %v2568_v18  ;;  %2580 = vadd.xlane.f32.xlu1 %v2579_v20 }
 0xbac   : > { %v9455_v23 = vpop.eup %8020 }
 0xbad   : > { %v2591_v22 = vsel %vm1648_vm5, %v9455_v23, 0.0 }
 0xbae   : > { %v2572_v34 = vpop.xlane.xlu0 %2571  ;;  %2592 = vadd.xlane.f32.xlu0 %v2591_v22 }
 0xbaf   : > { %8022 = vrcp.f32 %v2572_v34 }
 0xbb3   : > { %2864 = vrot.lane.b32.xlu1 %v9298_v35, %s8504_s7 }
 0xbb6   : > { %v2578_v33 = vpop.xlane.xlu0 %2577 }
 0xbb7   : > { %8024 = vrcp.f32 %v2578_v33 }
 0xbb8   : > { %8026 = vpow2.f32 %v2564_v36 }
 0xbb9   : > { %v8023_v46 = vpop.eup %8022  ;;  %8028 = vpow2.f32 %v2566_v63 }
 0xbba   : > { %v2602_v26 = vmul.f32 %v8023_v46, %v8011_v47  ;;  %v2718_v37 = vpop.permute.xlu0 %2717 }
 0xbbb   : > { %v2723_v45 = vsel %vm1756_vm4, %v2718_v37, 0 }
 0xbbc   : > { %v2610_v39 = vpack.c.bf16 %v2602_v26, %v2602_v26 }
 0xbbe   : > { %7349 = vmatmul.mubr.msk.bf16.vlgmr.msra.gmra.mrb[60].mxu0 %vm1648_vm5, %v2610_v39 }
 0xbbf   : > { %7359 = vmatpush3.bf16.msra.mxu0 %v2723_v45  ;;  %7360 = vmatprep.mubr.msk.bf16.mxu0 %vm8499_vm0, %v8498_v0 }
 0xbc0   : > { %7370 = vmatprep.subr.bf16.mxu0 %v8498_v0 }
 0xbc1   : > { %v8025_v4 = vpop.eup %8024 }
 0xbc2   : > { %v2604_v35 = vmul.f32 %v8025_v4, %v8013_v1  ;;  %v8027_v27 = vpop.eup %8026 }
 0xbc3   : > { %v2585_v52 = vsel %vm1648_vm5, %v8027_v27, 0.0  ;;  %v8029_v30 = vpop.eup %8028 }
 0xbc4   : > { %2913 = vrot.lane.b32.xlu0 %v9305_v61, %s8504_s7  ;;  %v2612_v47 = vpack.c.bf16 %v2604_v35, %v2604_v35  ;;  %v2588_v1 = vsel %vm1648_vm5, %v8029_v30, 0.0 }
 0xbc6   : > { %7361 = vmatmul.mubr.msk.bf16.vlgmr.msra.gmra.mrb[64].mxu0 %vm1648_vm5, %v2612_v47 }
 0xbc7   : > { %7372 = vmatprep.mubr.msk.bf16.mxu0 %vm8499_vm0, %v8498_v0 }
 0xbd7   : > { %2586 = vadd.xlane.f32.xlu1 %v2585_v52 }
 0xbdb   : > { %2589 = vadd.xlane.f32.xlu1 %v2588_v1 }
 0xbec   : > { %2962 = vrot.lane.b32.xlu1 %v9331_v8, %s8504_s7 }
 0xbf6   : > { %v2575_v61 = vpop.xlane.xlu1 %2574 }
 0xbf7   : > { %8030 = vrcp.f32 %v2575_v61 }
 0xbfa   : > { %v2767_v41 = vpop.permute.xlu1 %2766 }
 0xbfb   : > { %v2772_v29 = vsel %vm1756_vm4, %v2767_v41, 0 }
 0xbfe   : > { %v2816_v2 = vpop.permute.xlu1 %2815 }
 0xbff   : > { %v2821_v44 = vsel %vm1756_vm4, %v2816_v2, 0 }
 0xc00   : > { %7371 = vmatpush3.bf16.msra.mxu0 %v2821_v44 }
 0xc01   : > { %v8031_v59 = vpop.eup %8030  ;;  %7382 = vmatprep.subr.bf16.mxu0 %v8498_v0 }
 0xc02   : > { %v2584_v12 = vpop.xlane.xlu0 %2583  ;;  %v2603_v28 = vmul.f32 %v8031_v59, %v9434_v3 }
 0xc03   : > { %8032 = vrcp.f32 %v2584_v12 }
 0xc04   : > { %v2611_v50 = vpack.c.bf16 %v2603_v28, %v2603_v28 }
 0xc06   : > { %7355 = vmatmul.mubr.msk.bf16.vlgmr.msra.gmra.mrb[64].mxu1 %vm1648_vm5, %v2611_v50 }
 0xc07   : > { %7365 = vmatpush3.bf16.msra.mxu1 %v2772_v29  ;;  %7366 = vmatprep.mubr.msk.bf16.mxu1 %vm8499_vm0, %v8498_v0  ;;  %v7922_v29 = vld [vmem:[%s10565_s6] sm:$0xff]  }
 0xc08   : > { %7376 = vmatprep.subr.bf16.mxu1 %v8498_v0 }
 0xc0d   : > { %v8033_v8 = vpop.eup %8032 }
 0xc0e   : > { %v2606_v18 = vmul.f32 %v8033_v8, %v9442_v13  ;;  %v7924_v8 = vld [vmem:[%s10565_s6 + $0x10] sm:$0xff]  }
 0xc10   : > { %v2614_v20 = vpack.c.bf16 %v2606_v18, %v2606_v18 }
 0xc12   : > { %7373 = vmatmul.mubr.msk.bf16.vlgmr.msra.gmra.mrb[68].mxu0 %vm1648_vm5, %v2614_v20 }
 0xc13   : > { %7384 = vmatprep.mubr.msk.bf16.mxu0 %vm8499_vm0, %v8498_v0 }
 0xc2f   : > { %v2581_v3 = vpop.xlane.xlu1 %2580 }
 0xc30   : > { %8034 = vrcp.f32 %v2581_v3 }
 0xc33   : > { %v2865_v46 = vpop.permute.xlu1 %2864 }
 0xc34   : > { %v2870_v37 = vsel %vm1756_vm4, %v2865_v46, 0 }
 0xc3a   : > { %v8035_v22 = vpop.eup %8034 }
 0xc3b   : > { %v2593_v34 = vpop.xlane.xlu0 %2592  ;;  %v2605_v33 = vmul.f32 %v8035_v22, %v9451_v54 }
 0xc3d   : > { %v2613_v26 = vpack.c.bf16 %v2605_v33, %v2605_v33 }
 0xc3f   : > { %v2914_v39 = vpop.permute.xlu0 %2913  ;;  %7367 = vmatmul.mubr.msk.bf16.vlgmr.msra.gmra.mrb[68].mxu1 %vm1648_vm5, %v2613_v26 }
 0xc40   : > { %v2919_v13 = vsel %vm1756_vm4, %v2914_v39, 0  ;;  %7377 = vmatpush3.bf16.msra.mxu1 %v2870_v37  ;;  %7378 = vmatprep.mubr.msk.bf16.mxu1 %vm8499_vm0, %v8498_v0  ;;  %v7925_v39 = vld [vmem:[%s10565_s6 + $0x18] sm:$0xff]  }
 0xc41   : > { %7383 = vmatpush3.bf16.msra.mxu0 %v2919_v13  ;;  %7388 = vmatprep.subr.bf16.mxu1 %v8498_v0 }
 0xc42   : > { %7394 = vmatprep.subr.bf16.mxu0 %v7922_v29 }
 0xc64   : > { %v2587_v45 = vpop.xlane.xlu1 %2586 }
 0xc65   : > { %8036 = vrcp.f32 %v2587_v45 }
 0xc66   : > { %8038 = vrcp.f32 %v2593_v34 }
 0xc68   : > { %v2590_v54 = vpop.xlane.xlu1 %2589 }
 0xc69   : > { %8040 = vrcp.f32 %v2590_v54 }
 0xc6c   : > { %v2963_v35 = vpop.permute.xlu1 %2962 }
 0xc6d   : > { %v2968_v63 = vsel %vm1756_vm4, %v2963_v35, 0 }
 0xc6f   : > { %v8037_v4 = vpop.eup %8036 }
 0xc70   : > { %v2607_v21 = vmul.f32 %v8037_v4, %v8027_v27  ;;  %v8039_v47 = vpop.eup %8038 }
 0xc71   : > { %v2609_v61 = vmul.f32 %v8039_v47, %v9455_v23  ;;  %v7923_v23 = vld [vmem:[%s10565_s6 + $0x8] sm:$0xff]  }
 0xc72   : > { %v2615_v48 = vpack.c.bf16 %v2607_v21, %v2607_v21 }
 0xc73   : > { %v8041_v36 = vpop.eup %8040  ;;  %v2617_v41 = vpack.c.bf16 %v2609_v61, %v2609_v61 }
 0xc74   : > { %7379 = vmatmul.mubr.msk.bf16.vlgmr.msra.gmra.mrb[72].mxu1 %vm1648_vm5, %v2615_v48  ;;  %v2608_v52 = vmul.f32 %v8041_v36, %v8029_v30 }
 0xc75   : > { %7389 = vmatpush3.bf16.msra.mxu1 %v2968_v63  ;;  %7390 = vmatprep.mubr.msk.bf16.mxu1 %vm8499_vm0, %v8498_v0 }
 0xc76   : > { %v2616_v1 = vpack.c.bf16 %v2608_v52, %v2608_v52 }
 0xc78   : > { %7385 = vmatmul.mubr.msk.bf16.vlgmr.msra.gmra.mrb[72].mxu0 %vm1648_vm5, %v2616_v1 }
 0xc79   : > { %7395 = vmatpush3.bf16.msra.mxu0 %v7922_v29 }
 0xc7a   : > { %7396 = vmatprep.subr.bf16.mxu0 %v7923_v23 }
 0xc7c   : > { %7391 = vmatmul.mubr.msk.bf16.vlgmr.msra.gmra.mrb[76].mxu1 %vm1648_vm5, %v2617_v41 }
 0xc7d   : > { %7397 = vmatpush3.bf16.msra.mxu0 %v7923_v23 }
 0xc7e   : > { %7398 = vmatprep.subr.bf16.mxu0 %v7924_v8 }
 0xc81   : > { %7399 = vmatpush3.bf16.msra.mxu0 %v7924_v8 }
 0xc82   : > { %7400 = vmatprep.subr.bf16.mxu0 %v7925_v39 }
 0xc85   : > { %7401 = vmatpush3.bf16.msra.mxu0 %v7925_v39 }
 0xc91   : > { %v2661_v27 = vpop.f32.mrb[60].mxu0 }
 0xc92   : > { %v7350_v2 = vpop.f32.mrb[61].mxu0 }
 0xc93   : > { %v2664_v44 = vpop.f32.mrb[62].mxu0 }
 0xc94   : > { %v7351_v59 = vpop.f32.mrb[63].mxu0 }
 0xc99   : > { %v2759_v12 = vpop.f32.mrb[64].mxu0 }
 0xc9a   : > { %v7362_v28 = vpop.f32.mrb[65].mxu0 }
 0xc9b   : > { %v2762_v50 = vpop.f32.mrb[66].mxu0 }
 0xc9c   : > { %v7363_v30 = vpop.f32.mrb[67].mxu0 }
 0xcd9   : > { %v2710_v18 = vpop.f32.mrb[64].mxu1 }
 0xcda   : > { %v7856_v20 = vpack.i.bf16 %v2710_v18, %v2661_v27  ;;  %v7356_v3 = vpop.f32.mrb[65].mxu1 }
 0xcdb   : > { %v2713_v22 = vpop.f32.mrb[66].mxu1 }
 0xcdc   : > { %7857 = vrot.lane.b32.xlu0 %v7856_v20, %s8503_s21  ;;  %v7357_v34 = vpop.f32.mrb[67].mxu1 }
 0xce5   : > { %v2857_v33 = vpop.f32.mrb[68].mxu0 }
 0xce6   : > { %v7374_v46 = vpop.f32.mrb[69].mxu0 }
 0xce7   : > { %v2860_v26 = vpop.f32.mrb[70].mxu0 }
 0xce8   : > { %v7375_v37 = vpop.f32.mrb[71].mxu0 }
 0xd12   : > { %v2808_v13 = vpop.f32.mrb[68].mxu1 }
 0xd13   : > { %v7861_v45 = vpack.i.bf16 %v2808_v13, %v2759_v12  ;;  %v7368_v54 = vpop.f32.mrb[69].mxu1 }
 0xd14   : > { %v2811_v4 = vpop.f32.mrb[70].mxu1 }
 0xd15   : > { %7862 = vrot.lane.b32.xlu1 %v7861_v45, %s8503_s21  ;;  %v7369_v21 = vpop.f32.mrb[71].mxu1 }
 0xd16   : > { %v3062_v21 = vld [vmem:[#allocation14 + $0x10] ss:$0 sm:$0xff] }
 0xd47   : > { %v2906_v35 = vpop.f32.mrb[72].mxu1 }
 0xd48   : > { %v7866_v47 = vpack.i.bf16 %v2906_v35, %v2857_v33  ;;  %v7380_v48 = vpop.f32.mrb[73].mxu1 }
 0xd49   : > { %v2909_v36 = vpop.f32.mrb[74].mxu1 }
 0xd4a   : > { %7867 = vrot.lane.b32.xlu0 %v7866_v47, %s8503_s21  ;;  %v7381_v63 = vpop.f32.mrb[75].mxu1 }
 0xd4b   : > { %v2955_v52 = vpop.f32.mrb[72].mxu0 }
 0xd4c   : > { %v7386_v1 = vpop.f32.mrb[73].mxu0 }
 0xd4d   : > { %v2958_v61 = vpop.f32.mrb[74].mxu0 }
 0xd4e   : > { %v7387_v41 = vpop.f32.mrb[75].mxu0  ;;  %v7858_v27 = vpop.permute.xlu0 %7857 }
 0xd4f   : > { %v7860_v2 = vunpack.i.h.bf16 %v7858_v27  ;;  %v7859_v44 = vunpack.i.l.bf16 %v7858_v27  ;;  %v3004_v59 = vpop.f32.mrb[76].mxu1 }
 0xd50   : > { %v7871_v12 = vpack.i.bf16 %v3004_v59, %v2955_v52  ;;  %v7392_v28 = vpop.f32.mrb[77].mxu1 }
 0xd51   : > { %v3043_v50 = vsel %vm1258_vm3, %v9379_v16, %v7860_v2  ;;  %v3042_v30 = vsel %vm1258_vm3, %v9377_v38, %v7859_v44  ;;  %v3007_v29 = vpop.f32.mrb[78].mxu1 }
 0xd52   : > { %7872 = vrot.lane.b32.xlu1 %v7871_v12, %s8503_s21  ;;  %v7393_v23 = vpop.f32.mrb[79].mxu1  ;;  %v3050_v8 = vpack.c.bf16 %v3043_v50, %v3042_v30 }
 0xd54   : > { %7402 = vmatprep.mubr.msk.bf16.mxu0 %vm805_vm2, %v3050_v8 }
 0xd87   : > { %v7863_v18 = vpop.permute.xlu1 %7862 }
 0xd88   : > { %v7865_v20 = vunpack.i.h.bf16 %v7863_v18  ;;  %v7864_v3 = vunpack.i.l.bf16 %v7863_v18 }
 0xd8a   : > { %v3045_v22 = vsel %vm1258_vm3, %v9383_v15, %v7865_v20  ;;  %v3044_v34 = vsel %vm1258_vm3, %v9381_v55, %v7864_v3 }
 0xd8b   : > { %v3051_v16 = vpack.c.bf16 %v3045_v22, %v3044_v34 }
 0xd8d   : > { %7403 = vmatmul.mubr.msk.bf16.vlgmr.msra.gmra.mrb[76].mxu0 %vm805_vm2, %v3051_v16 }
 0xdbc   : > { %v7868_v38 = vpop.permute.xlu0 %7867 }
 0xdbd   : > { %v7870_v33 = vunpack.i.h.bf16 %v7868_v38  ;;  %v7869_v46 = vunpack.i.l.bf16 %v7868_v38 }
 0xdbf   : > { %v3047_v26 = vsel %vm1258_vm3, %v9397_v17, %v7870_v33  ;;  %v3046_v37 = vsel %vm1258_vm3, %v9385_v62, %v7869_v46 }
 0xdc0   : > { %v3052_v39 = vpack.c.bf16 %v3047_v26, %v3046_v37 }
 0xdc2   : > { %7406 = vmatprep.mubr.msk.bf16.mxu0 %vm805_vm2, %v3052_v39 }
 0xdc4   : > { %v7873_v13 = vpop.permute.xlu1 %7872 }
 0xdc5   : > { %v7875_v15 = vunpack.i.h.bf16 %v7873_v13  ;;  %v7874_v45 = vunpack.i.l.bf16 %v7873_v13 }
 0xdc7   : > { %v3049_v55 = vsel %vm1258_vm3, %v9401_v11, %v7875_v15  ;;  %v3048_v54 = vsel %vm1258_vm3, %v9387_v14, %v7874_v45 }
 0xdc8   : > { %v3053_v4 = vpack.c.bf16 %v3049_v55, %v3048_v54 }
 0xdca   : > { %7407 = vmatmul.mubr.msk.bf16.gmra.mrb[80].mxu0 %vm805_vm2, %v3053_v4 }
 0xe60   : > { %v7404_v17 = vpop.f32.mrb[76].mxu0 }
 0xe61   : > { %v3133_v35 = vpop.f32.mrb[77].mxu0  ;;  %v3142_v47 = vadd.f32 %v7404_v17, %v3062_v21 }
 0xe62   : > { %v3134_v62 = vadd.f32 %v3133_v35, %v3062_v21  ;;  %v7405_v48 = vpop.f32.mrb[78].mxu0  ;;  %v7926_v35 = vld [vmem:[%s10566_s11] sm:$0xff]  }
 0xe63   : > { %v3136_v36 = vpop.f32.mrb[79].mxu0  ;;  %v3145_v1 = vadd.f32 %v7405_v48, %v3062_v21  ;;  %v3166_v14 = vadd.f32 %v3142_v47, %v8975_v42  ;;  %7410 = vmatprep.subr.bf16.mxu1 %v7926_v35  ;;  %v7927_v47 = vld [vmem:[%s10566_s11 + $0x8] sm:$0xff]   ;;  %v7929_v48 = vld [vmem:[%s10566_s11 + $0x18] sm:$0xff]  }
 0xe64   : > { %v3137_v63 = vadd.f32 %v3136_v36, %v3062_v21  ;;  %v3164_v52 = vadd.f32 %v3134_v62, %v8959_v31  ;;  %7411 = vmatpush3.bf16.msra.mxu1 %v7926_v35  ;;  %v7928_v62 = vld [vmem:[%s10566_s11 + $0x10] sm:$0xff]  }
 0xe65   : > { %v3180_v27 = vsel %vm805_vm2, %v3166_v14, 0.0  ;;  %v3167_v2 = vadd.f32 %v3145_v1, %v8972_v40  ;;  %7412 = vmatprep.subr.bf16.mxu1 %v7927_v47 }
 0xe66   : > { %v3174_v61 = vsel %vm805_vm2, %v3164_v52, 0.0  ;;  %v3165_v11 = vadd.f32 %v3137_v63, %v8961_v32 }
 0xe67   : > { %3175 = vadd.xlane.f32.xlu0 %v3174_v61  ;;  %v3183_v44 = vsel %vm805_vm2, %v3167_v2, 0.0 }
 0xe68   : > { %v3177_v41 = vsel %vm805_vm2, %v3165_v11, 0.0  ;;  %7413 = vmatpush3.bf16.msra.mxu1 %v7927_v47 }
 0xe69   : > { %3178 = vadd.xlane.f32.xlu1 %v3177_v41  ;;  %7414 = vmatprep.subr.bf16.mxu1 %v7928_v62 }
 0xe6b   : > { %3181 = vadd.xlane.f32.xlu0 %v3180_v27 }
 0xe6c   : > { %7415 = vmatpush3.bf16.msra.mxu1 %v7928_v62 }
 0xe6d   : > { %7416 = vmatprep.subr.bf16.mxu1 %v7929_v48 }
 0xe6f   : > { %3184 = vadd.xlane.f32.xlu0 %v3183_v44 }
 0xe70   : > { %7417 = vmatpush3.bf16.msra.mxu1 %v7929_v48 }
 0xe9d   : > { %v7408_v31 = vpop.f32.mrb[80].mxu0 }
 0xe9e   : > { %v3158_v59 = vadd.f32 %v7408_v31, %v3062_v21  ;;  %v3149_v12 = vpop.f32.mrb[81].mxu0 }
 0xe9f   : > { %v3150_v28 = vadd.f32 %v3149_v12, %v3062_v21  ;;  %v7409_v50 = vpop.f32.mrb[82].mxu0 }
 0xea0   : > { %v3161_v32 = vadd.f32 %v7409_v50, %v3062_v21  ;;  %v3152_v30 = vpop.f32.mrb[83].mxu0  ;;  %v3170_v40 = vadd.f32 %v3158_v59, %v8999_v58 }
 0xea1   : > { %v3153_v42 = vadd.f32 %v3152_v30, %v3062_v21  ;;  %v3168_v29 = vadd.f32 %v3150_v28, %v8987_v51 }
 0xea2   : > { %v3171_v20 = vadd.f32 %v3161_v32, %v8997_v57  ;;  %v3192_v3 = vsel %vm805_vm2, %v3170_v40, 0.0 }
 0xea3   : > { %v3186_v23 = vsel %vm805_vm2, %v3168_v29, 0.0  ;;  %v3169_v8 = vadd.f32 %v3153_v42, %v8985_v49 }
 0xea4   : > { %3187 = vadd.xlane.f32.xlu0 %v3186_v23  ;;  %v3195_v22 = vsel %vm805_vm2, %v3171_v20, 0.0  ;;  %v7930_v23 = vld [vmem:[#allocation13] sm:$0xff]  }
 0xea5   : > { %v3189_v18 = vsel %vm805_vm2, %v3169_v8, 0.0  ;;  %7426 = vmatprep.subr.bf16.mxu0 %v7930_v23 }
 0xea6   : > { %3190 = vadd.xlane.f32.xlu1 %v3189_v18  ;;  %7427 = vmatpush3.bf16.msra.mxu0 %v7930_v23 }
 0xea8   : > { %3193 = vadd.xlane.f32.xlu0 %v3192_v3 }
 0xeaa   : > { %3196 = vadd.xlane.f32.xlu1 %v3195_v22 }
 0xef4   : > { %v3176_v34 = vpop.xlane.xlu0 %3175 }
 0xef5   : > { %v3198_v51 = vmul.f32 0.015625, %v3176_v34 }
 0xef6   : > { %v3179_v16 = vpop.xlane.xlu1 %3178 }
 0xef7   : > { %v9555_v38 = vsub.f32 %v3164_v52, %v3198_v51  ;;  %v3199_v49 = vmul.f32 0.015625, %v3179_v16 }
 0xef8   : > { %v3182_v33 = vpop.xlane.xlu0 %3181 }
 0xef9   : > { %v9557_v58 = vsub.f32 %v3165_v11, %v3199_v49  ;;  %v3200_v46 = vmul.f32 0.015625, %v3182_v33  ;;  %v3214_v57 = vmul.f32 %v9555_v38, %v9555_v38 }
 0xefb   : > { %v9561_v26 = vsub.f32 %v3166_v14, %v3200_v46  ;;  %v3222_v37 = vsel %vm805_vm2, %v3214_v57, 0.0  ;;  %v3215_v39 = vmul.f32 %v9557_v58, %v9557_v58 }
 0xefc   : > { %v3185_v13 = vpop.xlane.xlu0 %3184  ;;  %3223 = vadd.xlane.f32.xlu0 %v3222_v37 }
 0xefd   : > { %v3201_v15 = vmul.f32 0.015625, %v3185_v13  ;;  %v3225_v45 = vsel %vm805_vm2, %v3215_v39, 0.0  ;;  %v3216_v55 = vmul.f32 %v9561_v26, %v9561_v26  ;;  %v3172_v39 = vld [vmem:[#allocation14 + $0x11] ss:$0 sm:$0xff] }
 0xefe   : > { %3226 = vadd.xlane.f32.xlu1 %v3225_v45 }
 0xeff   : > { %v9569_v54 = vsub.f32 %v3167_v2, %v3201_v15  ;;  %v3228_v4 = vsel %vm805_vm2, %v3216_v55, 0.0 }
 0xf00   : > { %3229 = vadd.xlane.f32.xlu0 %v3228_v4 }
 0xf01   : > { %v3217_v21 = vmul.f32 %v9569_v54, %v9569_v54 }
 0xf03   : > { %v3231_v17 = vsel %vm805_vm2, %v3217_v21, 0.0  ;;  %v3173_v21 = vld [vmem:[#allocation14 + $0x12] ss:$0 sm:$0xff] }
 0xf04   : > { %3232 = vadd.xlane.f32.xlu1 %v3231_v17 }
 0xf31   : > { %v3188_v36 = vpop.xlane.xlu0 %3187 }
 0xf32   : > { %v3202_v63 = vmul.f32 0.015625, %v3188_v36 }
 0xf33   : > { %v3191_v52 = vpop.xlane.xlu1 %3190 }
 0xf34   : > { %v9587_v1 = vsub.f32 %v3168_v29, %v3202_v63  ;;  %v3203_v61 = vmul.f32 0.015625, %v3191_v52 }
 0xf35   : > { %v3194_v11 = vpop.xlane.xlu0 %3193 }
 0xf36   : > { %v9589_v14 = vsub.f32 %v3169_v8, %v3203_v61  ;;  %v3204_v41 = vmul.f32 0.015625, %v3194_v11  ;;  %v3218_v27 = vmul.f32 %v9587_v1, %v9587_v1  ;;  %v7931_v8 = vld [vmem:[#allocation13 + $0x8] sm:$0xff]  }
 0xf37   : > { %v3197_v2 = vpop.xlane.xlu1 %3196  ;;  %7428 = vmatprep.subr.bf16.mxu0 %v7931_v8 }
 0xf38   : > { %v9593_v44 = vsub.f32 %v3170_v40, %v3204_v41  ;;  %v3205_v31 = vmul.f32 0.015625, %v3197_v2  ;;  %v3234_v59 = vsel %vm805_vm2, %v3218_v27, 0.0  ;;  %v3219_v12 = vmul.f32 %v9589_v14, %v9589_v14  ;;  %7429 = vmatpush3.bf16.msra.mxu0 %v7931_v8 }
 0xf39   : > { %3235 = vadd.xlane.f32.xlu0 %v3234_v59 }
 0xf3a   : > { %v9598_v28 = vsub.f32 %v3171_v20, %v3205_v31  ;;  %v3237_v50 = vsel %vm805_vm2, %v3219_v12, 0.0  ;;  %v3220_v32 = vmul.f32 %v9593_v44, %v9593_v44 }
 0xf3b   : > { %3238 = vadd.xlane.f32.xlu1 %v3237_v50 }
 0xf3c   : > { %v3240_v30 = vsel %vm805_vm2, %v3220_v32, 0.0  ;;  %v3221_v42 = vmul.f32 %v9598_v28, %v9598_v28 }
 0xf3d   : > { %3241 = vadd.xlane.f32.xlu0 %v3240_v30 }
 0xf3e   : > { %v3243_v29 = vsel %vm805_vm2, %v3221_v42, 0.0 }
 0xf3f   : > { %3244 = vadd.xlane.f32.xlu1 %v3243_v29 }
 0xf89   : > { %v3224_v40 = vpop.xlane.xlu0 %3223 }
 0xf8a   : > { %v3246_v18 = vmul.f32 0.015625, %v3224_v40 }
 0xf8b   : > { %v3227_v20 = vpop.xlane.xlu1 %3226 }
 0xf8c   : > { %v3254_v3 = vadd.f32 1e-05, %v3246_v18  ;;  %v3247_v22 = vmul.f32 0.015625, %v3227_v20 }
 0xf8d   : > { %v3230_v34 = vpop.xlane.xlu0 %3229 }
 0xf8e   : > { %8042 = vrsqrt.f32 %v3254_v3  ;;  %v3255_v51 = vadd.f32 1e-05, %v3247_v22  ;;  %v3248_v16 = vmul.f32 0.015625, %v3230_v34 }
 0xf90   : > { %8044 = vrsqrt.f32 %v3255_v51  ;;  %v3256_v49 = vadd.f32 1e-05, %v3248_v16 }
 0xf91   : > { %v3233_v33 = vpop.xlane.xlu1 %3232 }
 0xf92   : > { %8046 = vrsqrt.f32 %v3256_v49  ;;  %v3249_v46 = vmul.f32 0.015625, %v3233_v33 }
 0xf94   : > { %v3257_v57 = vadd.f32 1e-05, %v3249_v46 }
 0xf96   : > { %8048 = vrsqrt.f32 %v3257_v57 }
 0xf98   : > { %v8043_v37 = vpop.eup %8042 }
 0xf99   : > { %v3270_v13 = vmul.f32 %v8043_v37, %v9555_v38  ;;  %v7932_v37 = vld [vmem:[#allocation13 + $0x10] sm:$0xff]  }
 0xf9a   : > { %v8045_v15 = vpop.eup %8044  ;;  %7430 = vmatprep.subr.bf16.mxu0 %v7932_v37 }
 0xf9b   : > { %v3271_v45 = vmul.f32 %v8045_v15, %v9557_v58  ;;  %v3278_v55 = vmul.f32 %v3270_v13, %v3172_v39  ;;  %7431 = vmatpush3.bf16.msra.mxu0 %v7932_v37 }
 0xf9c   : > { %v8047_v4 = vpop.eup %8046 }
 0xf9d   : > { %v3272_v17 = vmul.f32 %v8047_v4, %v9561_v26  ;;  %v3279_v35 = vmul.f32 %v3271_v45, %v3172_v39  ;;  %v9610_v47 = vadd.f32 %v3278_v55, %v3173_v21 }
 0xf9f   : > { %v9612_v62 = vadd.f32 %v3279_v35, %v3173_v21  ;;  %v3280_v36 = vmul.f32 %v3272_v17, %v3172_v39 }
 0xfa0   : > { %v8049_v48 = vpop.eup %8048 }
 0xfa1   : > { %v3273_v63 = vmul.f32 %v8049_v48, %v9569_v54  ;;  %v3294_v38 = vpack.c.bf16 %v9612_v62, %v9610_v47  ;;  %v9618_v58 = vadd.f32 %v3280_v36, %v3173_v21 }
 0xfa3   : > { %v3281_v52 = vmul.f32 %v3273_v63, %v3172_v39  ;;  %7418 = vmatprep.mubr.msk.bf16.mxu1 %vm805_vm2, %v3294_v38 }
 0xfa5   : > { %v9620_v61 = vadd.f32 %v3281_v52, %v3173_v21 }
 0xfa7   : > { %v3295_v26 = vpack.c.bf16 %v9620_v61, %v9618_v58 }
 0xfa9   : > { %7419 = vmatmul.mubr.msk.bf16.vlgmr.msra.gmra.mrb[80].mxu1 %vm805_vm2, %v3295_v26 }
 0xfc6   : > { %v3236_v11 = vpop.xlane.xlu0 %3235 }
 0xfc7   : > { %v3250_v41 = vmul.f32 0.015625, %v3236_v11 }
 0xfc8   : > { %v3239_v27 = vpop.xlane.xlu1 %3238 }
 0xfc9   : > { %v3258_v2 = vadd.f32 1e-05, %v3250_v41  ;;  %v3251_v54 = vmul.f32 0.015625, %v3239_v27 }
 0xfca   : > { %v3242_v31 = vpop.xlane.xlu0 %3241 }
 0xfcb   : > { %8050 = vrsqrt.f32 %v3258_v2  ;;  %v3259_v59 = vadd.f32 1e-05, %v3251_v54  ;;  %v3252_v12 = vmul.f32 0.015625, %v3242_v31 }
 0xfcc   : > { %v3245_v50 = vpop.xlane.xlu1 %3244 }
 0xfcd   : > { %8052 = vrsqrt.f32 %v3259_v59  ;;  %v3260_v32 = vadd.f32 1e-05, %v3252_v12  ;;  %v3253_v30 = vmul.f32 0.015625, %v3245_v50 }
 0xfcf   : > { %8054 = vrsqrt.f32 %v3260_v32  ;;  %v3261_v42 = vadd.f32 1e-05, %v3253_v30 }
 0xfd1   : > { %8056 = vrsqrt.f32 %v3261_v42 }
 0xfd5   : > { %v8051_v29 = vpop.eup %8050 }
 0xfd6   : > { %v3274_v23 = vmul.f32 %v8051_v29, %v9587_v1 }
 0xfd7   : > { %v8053_v8 = vpop.eup %8052 }
 0xfd8   : > { %v3275_v40 = vmul.f32 %v8053_v8, %v9589_v14  ;;  %v3282_v18 = vmul.f32 %v3274_v23, %v3172_v39  ;;  %v3428_v8 = vld [vmem:[#allocation14 + $0x14] ss:$0 sm:$0xff] }
 0xfd9   : > { %v8055_v20 = vpop.eup %8054 }
 0xfda   : > { %v3283_v3 = vmul.f32 %v3275_v40, %v3172_v39  ;;  %v3276_v22 = vmul.f32 %v8055_v20, %v9593_v44  ;;  %v9628_v51 = vadd.f32 %v3282_v18, %v3173_v21 }
 0xfdb   : > { %v8057_v34 = vpop.eup %8056 }
 0xfdc   : > { %v9630_v16 = vadd.f32 %v3283_v3, %v3173_v21  ;;  %v3277_v49 = vmul.f32 %v8057_v34, %v9598_v28  ;;  %v3284_v33 = vmul.f32 %v3276_v22, %v3172_v39  ;;  %v7933_v28 = vld [vmem:[#allocation13 + $0x18] sm:$0xff]  }
 0xfdd   : > { %7432 = vmatprep.subr.bf16.mxu0 %v7933_v28 }
 0xfde   : > { %v3296_v46 = vpack.c.bf16 %v9630_v16, %v9628_v51  ;;  %v3285_v1 = vmul.f32 %v3277_v49, %v3172_v39  ;;  %v9636_v14 = vadd.f32 %v3284_v33, %v3173_v21  ;;  %7433 = vmatpush3.bf16.msra.mxu0 %v7933_v28  ;;  %v3306_v39 = vld [vmem:[#allocation14 + $0x13] ss:$0 sm:$0xff] }
 0xfdf   : > { %7442 = vmatprep.subr.bf16.mxu0 %v8498_v0 }
 0xfe0   : > { %7422 = vmatprep.mubr.msk.bf16.mxu1 %vm805_vm2, %v3296_v46  ;;  %v9638_v57 = vadd.f32 %v3285_v1, %v3173_v21 }
 0xfe2   : > { %v3297_v44 = vpack.c.bf16 %v9638_v57, %v9636_v14 }
 0xfe4   : > { %7423 = vmatmul.mubr.msk.bf16.gmra.mrb[84].mxu1 %vm805_vm2, %v3297_v44 }
 0xfe5   : > { %3770 = vmatprep.mubr.bf16.mxu1 %v8500_v5 }
0x107c   : > { %v7420_v13 = vpop.f32.mrb[80].mxu1 }
0x107d   : > { %v3386_v15 = vadd.f32 %v7420_v13, %v3306_v39  ;;  %v3377_v45 = vpop.f32.mrb[81].mxu1 }
0x107e   : > { %v3378_v55 = vadd.f32 %v3377_v45, %v3306_v39  ;;  %v7421_v4 = vpop.f32.mrb[82].mxu1 }
0x107f   : > { %v3389_v21 = vadd.f32 %v7421_v4, %v3306_v39  ;;  %v3380_v17 = vpop.f32.mrb[83].mxu1  ;;  %v3410_v48 = vmax.f32 %v3386_v15, 0.0 }
0x1080   : > { %v3381_v35 = vadd.f32 %v3380_v17, %v3306_v39  ;;  %v3408_v63 = vmax.f32 %v3378_v55, 0.0 }
0x1081   : > { %v3411_v36 = vmax.f32 %v3389_v21, 0.0 }
0x1082   : > { %v3409_v38 = vmax.f32 %v3381_v35, 0.0 }
0x1083   : > { %v3417_v52 = vpack.c.bf16 %v3411_v36, %v3410_v48 }
0x1084   : > { %v3416_v26 = vpack.c.bf16 %v3409_v38, %v3408_v63 }
0x1086   : > { %7434 = vmatprep.mubr.msk.bf16.mxu0 %vm805_vm2, %v3416_v26 }
0x1087   : > { %7435 = vmatmul.mubr.msk.bf16.vlgmr.msra.gmra.mrb[84].mxu0 %vm805_vm2, %v3417_v52 }
0x10b7   : > { %v7424_v11 = vpop.f32.mrb[84].mxu1 }
0x10b8   : > { %v3402_v41 = vadd.f32 %v7424_v11, %v3306_v39  ;;  %v3393_v27 = vpop.f32.mrb[85].mxu1 }
0x10b9   : > { %v3394_v2 = vadd.f32 %v3393_v27, %v3306_v39  ;;  %v7425_v54 = vpop.f32.mrb[86].mxu1 }
0x10ba   : > { %v3405_v31 = vadd.f32 %v7425_v54, %v3306_v39  ;;  %v3396_v59 = vpop.f32.mrb[87].mxu1  ;;  %v3414_v50 = vmax.f32 %v3402_v41, 0.0 }
0x10bb   : > { %v3397_v12 = vadd.f32 %v3396_v59, %v3306_v39  ;;  %v3412_v30 = vmax.f32 %v3394_v2, 0.0 }
0x10bc   : > { %v3415_v32 = vmax.f32 %v3405_v31, 0.0 }
0x10bd   : > { %v3413_v42 = vmax.f32 %v3397_v12, 0.0 }
0x10be   : > { %v3419_v29 = vpack.c.bf16 %v3415_v32, %v3414_v50 }
0x10bf   : > { %v3418_v23 = vpack.c.bf16 %v3413_v42, %v3412_v30 }
0x10c1   : > { %7438 = vmatprep.mubr.msk.bf16.mxu0 %vm805_vm2, %v3418_v23 }
0x10c2   : > { %7439 = vmatmul.mubr.msk.bf16.gmra.mrb[88].mxu0 %vm805_vm2, %v3419_v29 }
0x10c3   : > { %7444 = vmatprep.mubr.msk.bf16.mxu0 %vm8499_vm0, %v8498_v0 }
0x115a   : > { %v7436_v40 = vpop.f32.mrb[84].mxu0 }
0x115b   : > { %v3499_v18 = vpop.f32.mrb[85].mxu0  ;;  %v3508_v20 = vadd.f32 %v7436_v40, %v3428_v8 }
0x115c   : > { %v3500_v3 = vadd.f32 %v3499_v18, %v3428_v8  ;;  %v7437_v22 = vpop.f32.mrb[86].mxu0  ;;  %v7936_v18 = vld [vmem:[#allocation11 + $0x44] ss:$8 sps:$4 sm:$0xff]  }
0x115d   : > { %v3502_v34 = vpop.f32.mrb[87].mxu0  ;;  %v3511_v49 = vadd.f32 %v7437_v22, %v3428_v8  ;;  %v3532_v37 = vadd.f32 %v3508_v20, %v9618_v58  ;;  %v7934_v20 = vld [vmem:[#allocation11 + $0x40] ss:$8 sps:$4 sm:$0xff]   ;;  %3738 = vmatprep.subr.bf16.mxu1 %v7936_v18  ;;  %v7937_v22 = vld [vmem:[#allocation11 + $0x50] ss:$8 sps:$4 sm:$0xff]  }
0x115e   : > { %v3503_v33 = vadd.f32 %v3502_v34, %v3428_v8  ;;  %v3530_v46 = vadd.f32 %v3500_v3, %v9610_v47  ;;  %3739 = vmatpush1.bf16.msra.mxu1 %v7934_v20  ;;  %v7939_v3 = vld [vmem:[#allocation11 + $0x54] ss:$8 sps:$4 sm:$0xff]   ;;  %v7942_v34 = vld [vmem:[#allocation11 + $0x64] ss:$8 sps:$4 sm:$0xff]  }
0x115f   : > { %v3533_v39 = vadd.f32 %v3511_v49, %v9620_v61  ;;  %v3546_v13 = vsel %vm805_vm2, %v3532_v37, 0.0  ;;  %3740 = vmatprep.subr.bf16.mxu1 %v7939_v3  ;;  %v7940_v49 = vld [vmem:[#allocation11 + $0x60] ss:$8 sps:$4 sm:$0xff]   ;;  %v3539_v18 = vld [vmem:[#allocation14 + $0x16] ss:$0 sm:$0xff] }
0x1160   : > { %v3540_v1 = vsel %vm805_vm2, %v3530_v46, 0.0  ;;  %v3531_v44 = vadd.f32 %v3503_v33, %v9612_v62  ;;  %v7945_v33 = vld [vmem:[#allocation11 + $0x74] ss:$8 sps:$4 sm:$0xff]  }
0x1161   : > { %3541 = vadd.xlane.f32.xlu0 %v3540_v1  ;;  %v3549_v15 = vsel %vm805_vm2, %v3533_v39, 0.0 }
0x1162   : > { %v3543_v28 = vsel %vm805_vm2, %v3531_v44, 0.0  ;;  %3741 = vmatpush1.bf16.msra.mxu1 %v7937_v22 }
0x1163   : > { %3544 = vadd.xlane.f32.xlu1 %v3543_v28  ;;  %3742 = vmatprep.subr.bf16.mxu1 %v7942_v34 }
0x1165   : > { %3547 = vadd.xlane.f32.xlu0 %v3546_v13 }
0x1166   : > { %3743 = vmatpush1.bf16.msra.mxu1 %v7940_v49 }
0x1167   : > { %3550 = vadd.xlane.f32.xlu1 %v3549_v15  ;;  %3744 = vmatprep.subr.bf16.mxu1 %v7945_v33 }
0x1195   : > { %v7440_v45 = vpop.f32.mrb[88].mxu0 }
0x1196   : > { %v3515_v47 = vpop.f32.mrb[89].mxu0  ;;  %v3524_v55 = vadd.f32 %v7440_v45, %v3428_v8 }
0x1197   : > { %v3516_v4 = vadd.f32 %v3515_v47, %v3428_v8  ;;  %v7441_v21 = vpop.f32.mrb[90].mxu0 }
0x1198   : > { %v3527_v62 = vadd.f32 %v7441_v21, %v3428_v8  ;;  %v3518_v17 = vpop.f32.mrb[91].mxu0  ;;  %v3536_v36 = vadd.f32 %v3524_v55, %v9636_v14 }
0x1199   : > { %v3519_v58 = vadd.f32 %v3518_v17, %v3428_v8  ;;  %v3534_v35 = vadd.f32 %v3516_v4, %v9628_v51 }
0x119a   : > { %v3537_v38 = vadd.f32 %v3527_v62, %v9638_v57  ;;  %v3558_v52 = vsel %vm805_vm2, %v3536_v36, 0.0 }
0x119b   : > { %v3552_v48 = vsel %vm805_vm2, %v3534_v35, 0.0  ;;  %v3535_v61 = vadd.f32 %v3519_v58, %v9630_v16 }
0x119c   : > { %3553 = vadd.xlane.f32.xlu0 %v3552_v48  ;;  %v3561_v26 = vsel %vm805_vm2, %v3537_v38, 0.0 }
0x119d   : > { %v3555_v63 = vsel %vm805_vm2, %v3535_v61, 0.0 }
0x119e   : > { %3556 = vadd.xlane.f32.xlu1 %v3555_v63 }
0x11a0   : > { %3559 = vadd.xlane.f32.xlu0 %v3558_v52 }
0x11a2   : > { %3562 = vadd.xlane.f32.xlu1 %v3561_v26 }
0x11ee   : > { %v3542_v11 = vpop.xlane.xlu0 %3541 }
0x11ef   : > { %v3564_v51 = vmul.f32 0.015625, %v3542_v11 }
0x11f0   : > { %v3545_v41 = vpop.xlane.xlu1 %3544 }
0x11f1   : > { %v9667_v27 = vsub.f32 %v3530_v46, %v3564_v51  ;;  %v3565_v16 = vmul.f32 0.015625, %v3545_v41  ;;  %v7943_v46 = vld [vmem:[#allocation11 + $0x70] ss:$8 sps:$4 sm:$0xff]  }
0x11f2   : > { %v3548_v2 = vpop.xlane.xlu0 %3547  ;;  %3745 = vmatpush1.bf16.msra.mxu1 %v7943_v46 }
0x11f3   : > { %v9669_v14 = vsub.f32 %v3531_v44, %v3565_v16  ;;  %v3566_v54 = vmul.f32 0.015625, %v3548_v2  ;;  %v3580_v57 = vmul.f32 %v9667_v27, %v9667_v27  ;;  %7460 = vmatprep.subr.bf16.mxu1 %v8498_v0 }
0x11f4   : > { %v3551_v31 = vpop.xlane.xlu1 %3550 }
0x11f5   : > { %v9673_v59 = vsub.f32 %v3532_v37, %v3566_v54  ;;  %v3567_v12 = vmul.f32 0.015625, %v3551_v31  ;;  %v3588_v50 = vsel %vm805_vm2, %v3580_v57, 0.0  ;;  %v3581_v32 = vmul.f32 %v9669_v14, %v9669_v14 }
0x11f6   : > { %3589 = vadd.xlane.f32.xlu0 %v3588_v50 }
0x11f7   : > { %v9678_v30 = vsub.f32 %v3533_v39, %v3567_v12  ;;  %v3591_v42 = vsel %vm805_vm2, %v3581_v32, 0.0  ;;  %v3582_v29 = vmul.f32 %v9673_v59, %v9673_v59  ;;  %v3538_v32 = vld [vmem:[#allocation14 + $0x15] ss:$0 sm:$0xff] }
0x11f8   : > { %3592 = vadd.xlane.f32.xlu1 %v3591_v42 }
0x11f9   : > { %v3594_v23 = vsel %vm805_vm2, %v3582_v29, 0.0  ;;  %v3583_v8 = vmul.f32 %v9678_v30, %v9678_v30 }
0x11fa   : > { %3595 = vadd.xlane.f32.xlu0 %v3594_v23 }
0x11fb   : > { %v3597_v40 = vsel %vm805_vm2, %v3583_v8, 0.0 }
0x11fc   : > { %3598 = vadd.xlane.f32.xlu1 %v3597_v40 }
0x1229   : > { %v3554_v1 = vpop.xlane.xlu0 %3553 }
0x122a   : > { %v3568_v44 = vmul.f32 0.015625, %v3554_v1 }
0x122b   : > { %v3557_v37 = vpop.xlane.xlu1 %3556 }
0x122c   : > { %v9688_v28 = vsub.f32 %v3534_v35, %v3568_v44  ;;  %v3569_v39 = vmul.f32 0.015625, %v3557_v37 }
0x122d   : > { %v3560_v13 = vpop.xlane.xlu0 %3559 }
0x122e   : > { %v9690_v15 = vsub.f32 %v3535_v61, %v3569_v39  ;;  %v3570_v45 = vmul.f32 0.015625, %v3560_v13  ;;  %v3584_v47 = vmul.f32 %v9688_v28, %v9688_v28 }
0x122f   : > { %v3563_v55 = vpop.xlane.xlu1 %3562 }
0x1230   : > { %v9694_v4 = vsub.f32 %v3536_v36, %v3570_v45  ;;  %v3571_v21 = vmul.f32 0.015625, %v3563_v55  ;;  %v3600_v62 = vsel %vm805_vm2, %v3584_v47, 0.0  ;;  %v3585_v17 = vmul.f32 %v9690_v15, %v9690_v15 }
0x1231   : > { %3601 = vadd.xlane.f32.xlu0 %v3600_v62 }
0x1232   : > { %v9699_v58 = vsub.f32 %v3537_v38, %v3571_v21  ;;  %v3603_v35 = vsel %vm805_vm2, %v3585_v17, 0.0  ;;  %v3586_v48 = vmul.f32 %v9694_v4, %v9694_v4 }
0x1233   : > { %3604 = vadd.xlane.f32.xlu1 %v3603_v35 }
0x1234   : > { %v3606_v61 = vsel %vm805_vm2, %v3586_v48, 0.0  ;;  %v3587_v36 = vmul.f32 %v9699_v58, %v9699_v58 }
0x1235   : > { %3607 = vadd.xlane.f32.xlu0 %v3606_v61 }
0x1236   : > { %v3609_v63 = vsel %vm805_vm2, %v3587_v36, 0.0 }
0x1237   : > { %3610 = vadd.xlane.f32.xlu1 %v3609_v63 }
0x1283   : > { %v3590_v52 = vpop.xlane.xlu0 %3589 }
0x1284   : > { %v3612_v26 = vmul.f32 0.015625, %v3590_v52 }
0x1285   : > { %v3593_v11 = vpop.xlane.xlu1 %3592 }
0x1286   : > { %v3620_v38 = vadd.f32 1e-05, %v3612_v26  ;;  %v3613_v51 = vmul.f32 0.015625, %v3593_v11 }
0x1287   : > { %v3596_v41 = vpop.xlane.xlu0 %3595 }
0x1288   : > { %8058 = vrsqrt.f32 %v3620_v38  ;;  %v3621_v16 = vadd.f32 1e-05, %v3613_v51  ;;  %v3614_v2 = vmul.f32 0.015625, %v3596_v41 }
0x1289   : > { %v3599_v54 = vpop.xlane.xlu1 %3598 }
0x128a   : > { %8060 = vrsqrt.f32 %v3621_v16  ;;  %v3622_v57 = vadd.f32 1e-05, %v3614_v2  ;;  %v3615_v31 = vmul.f32 0.015625, %v3599_v54 }
0x128c   : > { %8062 = vrsqrt.f32 %v3622_v57  ;;  %v3623_v12 = vadd.f32 1e-05, %v3615_v31 }
0x128e   : > { %8064 = vrsqrt.f32 %v3623_v12 }
0x1292   : > { %v8059_v50 = vpop.eup %8058 }
0x1293   : > { %v3636_v42 = vmul.f32 %v8059_v50, %v9667_v27 }
0x1294   : > { %v8061_v29 = vpop.eup %8060 }
0x1295   : > { %v3644_v23 = vmul.f32 %v3636_v42, %v3538_v32  ;;  %v3637_v8 = vmul.f32 %v8061_v29, %v9669_v14 }
0x1296   : > { %v8063_v40 = vpop.eup %8062 }
0x1297   : > { %v3645_v20 = vmul.f32 %v3637_v8, %v3538_v32  ;;  %v9710_v22 = vadd.f32 %v3644_v23, %v3539_v18  ;;  %v3638_v49 = vmul.f32 %v8063_v40, %v9673_v59 }
0x1298   : > { %v8065_v3 = vpop.eup %8064 }
0x1299   : > { %v9712_v34 = vadd.f32 %v3645_v20, %v3539_v18  ;;  %v3639_v33 = vmul.f32 %v8065_v3, %v9678_v30  ;;  %v3646_v1 = vmul.f32 %v3638_v49, %v3538_v32 }
0x129b   : > { %v3660_v46 = vpack.c.bf16 %v9712_v34, %v9710_v22  ;;  %v3647_v27 = vmul.f32 %v3639_v33, %v3538_v32  ;;  %v9722_v44 = vadd.f32 %v3646_v1, %v3539_v18 }
0x129d   : > { %6855 = vmatmul.mubr.msk.bf16.vlgmr.msra.gmra.mrb[88].mxu1 %vm805_vm2, %v3660_v46  ;;  %v9720_v14 = vadd.f32 %v3647_v27, %v3539_v18 }
0x129e   : > { %3780 = vmatprep.mubr.bf16.mxu1 %v8500_v5 }
0x129f   : > { %v3661_v37 = vpack.c.bf16 %v9720_v14, %v9722_v44 }
0x12a5   : > { %6856 = vmatmul.mubr.msk.bf16.gmra.mrb[92].mxu1 %vm805_vm2, %v3661_v37 }
0x12a6   : > { %3790 = vmatprep.mubr.bf16.mxu1 %v8500_v5 }
0x12be   : > { %v3602_v59 = vpop.xlane.xlu0 %3601 }
0x12bf   : > { %v3616_v30 = vmul.f32 0.015625, %v3602_v59 }
0x12c0   : > { %v3605_v39 = vpop.xlane.xlu1 %3604 }
0x12c1   : > { %v3624_v13 = vadd.f32 1e-05, %v3616_v30  ;;  %v3617_v45 = vmul.f32 0.015625, %v3605_v39 }
0x12c2   : > { %v3608_v47 = vpop.xlane.xlu0 %3607 }
0x12c3   : > { %8066 = vrsqrt.f32 %v3624_v13  ;;  %v3625_v55 = vadd.f32 1e-05, %v3617_v45  ;;  %v3618_v21 = vmul.f32 0.015625, %v3608_v47 }
0x12c4   : > { %v3611_v62 = vpop.xlane.xlu1 %3610 }
0x12c5   : > { %8068 = vrsqrt.f32 %v3625_v55  ;;  %v3626_v17 = vadd.f32 1e-05, %v3618_v21  ;;  %v3619_v35 = vmul.f32 0.015625, %v3611_v62 }
0x12c7   : > { %8070 = vrsqrt.f32 %v3626_v17  ;;  %v3627_v48 = vadd.f32 1e-05, %v3619_v35 }
0x12c9   : > { %8072 = vrsqrt.f32 %v3627_v48 }
0x12cd   : > { %v8067_v61 = vpop.eup %8066 }
0x12ce   : > { %v3640_v36 = vmul.f32 %v8067_v61, %v9688_v28 }
0x12cf   : > { %v8069_v63 = vpop.eup %8068 }
0x12d0   : > { %v3641_v52 = vmul.f32 %v8069_v63, %v9690_v15  ;;  %v3648_v26 = vmul.f32 %v3640_v36, %v3538_v32 }
0x12d1   : > { %v8071_v11 = vpop.eup %8070 }
0x12d2   : > { %v3649_v38 = vmul.f32 %v3641_v52, %v3538_v32  ;;  %v9730_v41 = vadd.f32 %v3648_v26, %v3539_v18  ;;  %v3642_v2 = vmul.f32 %v8071_v11, %v9694_v4  ;;  %v9749_v4 = vld [vmem:[#allocation14 + $0x17] ss:$8 sm:$0x3] }
0x12d3   : > { %v8073_v51 = vpop.eup %8072 }
0x12d4   : > { %v9732_v16 = vadd.f32 %v3649_v38, %v3539_v18  ;;  %v3643_v54 = vmul.f32 %v8073_v51, %v9699_v58  ;;  %v3650_v28 = vmul.f32 %v3642_v2, %v3538_v32  ;;  %v3679_v58 = vrot.slane %v9749_v4, %v8945_v19 }
0x12d6   : > { %v3662_v57 = vpack.c.bf16 %v9732_v16, %v9730_v41  ;;  %v3651_v31 = vmul.f32 %v3643_v54, %v3538_v32  ;;  %v9742_v12 = vadd.f32 %v3650_v28, %v3539_v18 }
0x12d8   : > { %6857 = vmatmul.mubr.msk.bf16.gmra.mrb[96].mxu1 %vm805_vm2, %v3662_v57  ;;  %v9740_v15 = vadd.f32 %v3651_v31, %v3539_v18 }
0x12d9   : > { %3800 = vmatprep.mubr.bf16.mxu1 %v8500_v5 }
0x12da   : > { %v3663_v50 = vpack.c.bf16 %v9740_v15, %v9742_v12 }
0x12e0   : > { %6858 = vmatmul.mubr.msk.bf16.gmra.mrb[100].mxu1 %vm805_vm2, %v3663_v50 }
0x12e1   : > { %7462 = vmatprep.mubr.msk.bf16.mxu1 %vm8499_vm0, %v8498_v0 }
0x1370   : > { %v3772_v32 = vpop.f32.mrb[88].mxu1 }
0x1371   : > { %v3773_v42 = vadd.f32 %v3772_v32, %v3679_v58  ;;  %v9753_v5 = vpop.f32.mrb[89].mxu1  ;;  %v9831_v32 = vrot.slane %v9749_v4, %v1118_v7 }
0x1372   : > { %v3776_v29 = vpop.f32.mrb[90].mxu1 }
0x1373   : > { %v9755_v23 = vpack.c.bf16 %v3773_v42, %v3773_v42  ;;  %v3777_v8 = vadd.f32 %v3776_v29, %v3679_v58  ;;  %v9757_v40 = vpop.f32.mrb[91].mxu1  ;;  %v3775_v29 = vadd.f32 %v9753_v5, %v9831_v32 }
0x1374   : > { %v3779_v10 = vadd.f32 %v9757_v40, %v9831_v32 }
0x1375   : > { %v9759_v18 = vpack.c.bf16 %v3777_v8, %v3777_v8  ;;  %3820 = vrot.lane.b32.xlu0 %v9755_v23, %s8502_s26  ;;  %v9849_v4 = vpack.c.bf16 %v3775_v29, %v3775_v29 }
0x1376   : > { %v9852_v5 = vpack.c.bf16 %v3779_v10, %v3779_v10 }
0x1377   : > { %3869 = vrot.lane.b32.xlu1 %v9759_v18, %s8502_s26  ;;  %v4319_v40 = vsel %vm1756_vm4, %v9849_v4, 0 }
0x1378   : > { %v3782_v20 = vpop.f32.mrb[92].mxu1 }
0x1379   : > { %v3783_v19 = vadd.f32 %v3782_v20, %v3679_v58  ;;  %v9765_v3 = vpop.f32.mrb[93].mxu1 }
0x137a   : > { %v3786_v49 = vpop.f32.mrb[94].mxu1 }
0x137b   : > { %v9767_v33 = vpack.c.bf16 %v3783_v19, %v3783_v19  ;;  %v3787_v46 = vadd.f32 %v3786_v49, %v3679_v58  ;;  %v9769_v27 = vpop.f32.mrb[95].mxu1  ;;  %v4365_v19 = vsel %vm1756_vm4, %v9852_v5, 0 }
0x137d   : > { %3918 = vrot.lane.b32.xlu1 %v9767_v33, %s8502_s26  ;;  %v9773_v1 = vpack.c.bf16 %v3787_v46, %v3787_v46 }
0x1381   : > { %3967 = vrot.lane.b32.xlu1 %v9773_v1, %s8502_s26 }
0x13ab   : > { %v3792_v37 = vpop.f32.mrb[96].mxu1 }
0x13ac   : > { %v3793_v59 = vadd.f32 %v3792_v37, %v3679_v58  ;;  %v9777_v30 = vpop.f32.mrb[97].mxu1 }
0x13ad   : > { %v3796_v39 = vpop.f32.mrb[98].mxu1 }
0x13ae   : > { %v9779_v13 = vpack.c.bf16 %v3793_v59, %v3793_v59  ;;  %v3797_v45 = vadd.f32 %v3796_v39, %v3679_v58  ;;  %v9781_v47 = vpop.f32.mrb[99].mxu1 }
0x13b0   : > { %v9783_v55 = vpack.c.bf16 %v3797_v45, %v3797_v45  ;;  %4016 = vrot.lane.b32.xlu0 %v9779_v13, %s8502_s26 }
0x13b2   : > { %4065 = vrot.lane.b32.xlu1 %v9783_v55, %s8502_s26 }
0x13b3   : > { %v3802_v21 = vpop.f32.mrb[100].mxu1 }
0x13b4   : > { %v3803_v62 = vadd.f32 %v3802_v21, %v3679_v58  ;;  %v9789_v17 = vpop.f32.mrb[101].mxu1 }
0x13b5   : > { %v3806_v35 = vpop.f32.mrb[102].mxu1 }
0x13b6   : > { %v9791_v48 = vpack.c.bf16 %v3803_v62, %v3803_v62  ;;  %v3807_v61 = vadd.f32 %v3806_v35, %v3679_v58  ;;  %v9793_v36 = vpop.f32.mrb[103].mxu1 }
0x13b8   : > { %v9795_v63 = vpack.c.bf16 %v3807_v61, %v3807_v61  ;;  %4114 = vrot.lane.b32.xlu0 %v9791_v48, %s8502_s26 }
0x13ba   : > { %4163 = vrot.lane.b32.xlu1 %v9795_v63, %s8502_s26  ;;  %s8406_s26 = scalar_lea.vmem %s8405_s23, 256 }
0x13bb   : > { %p8408_p10 = scmp.lt.s32.totalorder %s8406_s26, %s8400_s20 }
0x13bd   : > { %p8409_p11 = por %p8408_p10, %p8407_p6 }
0x13bf   : > { %p8410_p8 = pnand %p8409_p11, %p8403_p3 }
0x13e7   : > { %v3821_v52 = vpop.permute.xlu0 %3820 }
0x13e8   : > { %v3826_v26 = vsel %vm1258_vm3, %v3821_v52, 0 }
0x13e9   : > { %7443 = vmatpush3.bf16.xpose.msra.mxu0 %v3826_v26  ;;  %v3870_v11 = vpop.permute.xlu1 %3869 }
0x13ea   : > { %7448 = vmatprep.subr.bf16.mxu0 %v8498_v0  ;;  %v3875_v51 = vsel %vm1258_vm3, %v3870_v11, 0 }
0x13ef   : > { %v3919_v38 = vpop.permute.xlu1 %3918 }
0x13f0   : > { %7445 = vmatmul.mubr.msk.bf16.vlgmr.msra.gmra.mrb[92].mxu0 %vm1258_vm3, %v9755_v23  ;;  %v3924_v57 = vsel %vm1258_vm3, %v3919_v38, 0 }
0x13f1   : > { %7449 = vmatpush3.bf16.xpose.msra.mxu0 %v3875_v51  ;;  %7450 = vmatprep.mubr.msk.bf16.mxu0 %vm8499_vm0, %v8498_v0 }
0x13f2   : > { %7454 = vmatprep.subr.bf16.mxu0 %v8498_v0 }
0x13f3   : > { %v3968_v2 = vpop.permute.xlu1 %3967 }
0x13f4   : > { %v3973_v54 = vsel %vm1258_vm3, %v3968_v2, 0 }
0x13f5   : > { %7461 = vmatpush3.bf16.xpose.msra.mxu1 %v3973_v54 }
0x13f6   : > { %7472 = vmatprep.subr.bf16.mxu1 %v8498_v0 }
0x13f8   : > { %7451 = vmatmul.mubr.msk.bf16.vlgmr.msra.gmra.mrb[96].mxu0 %vm1258_vm3, %v9759_v18 }
0x13f9   : > { %7455 = vmatpush3.bf16.xpose.msra.mxu0 %v3924_v57  ;;  %7456 = vmatprep.mubr.msk.bf16.mxu0 %vm8499_vm0, %v8498_v0 }
0x13fa   : > { %7466 = vmatprep.subr.bf16.mxu0 %v8498_v0 }
0x13fc   : > { %7463 = vmatmul.mubr.msk.bf16.vlgmr.msra.gmra.mrb[104].mxu1 %vm1258_vm3, %v9773_v1 }
0x13fd   : > { %7474 = vmatprep.mubr.msk.bf16.mxu1 %vm8499_vm0, %v8498_v0 }
0x1400   : > { %7457 = vmatmul.mubr.msk.bf16.vlgmr.msra.gmra.mrb[100].mxu0 %vm1258_vm3, %v9767_v33 }
0x1401   : > { %7468 = vmatprep.mubr.msk.bf16.mxu0 %vm8499_vm0, %v8498_v0 }
0x1422   : > { %v4017_v31 = vpop.permute.xlu0 %4016 }
0x1423   : > { %v4022_v28 = vsel %vm1258_vm3, %v4017_v31, 0 }
0x1424   : > { %v4066_v50 = vpop.permute.xlu1 %4065  ;;  %7467 = vmatpush3.bf16.xpose.msra.mxu0 %v4022_v28 }
0x1425   : > { %v4071_v58 = vsel %vm1258_vm3, %v4066_v50, 0  ;;  %7478 = vmatprep.subr.bf16.mxu0 %v8498_v0 }
0x1426   : > { %7473 = vmatpush3.bf16.xpose.msra.mxu1 %v4071_v58 }
0x1427   : > { %7484 = vmatprep.subr.bf16.mxu1 %v8498_v0 }
0x142a   : > { %v4115_v42 = vpop.permute.xlu0 %4114 }
0x142b   : > { %v4120_v8 = vsel %vm1258_vm3, %v4115_v42, 0  ;;  %7469 = vmatmul.mubr.msk.bf16.vlgmr.msra.gmra.mrb[104].mxu0 %vm1258_vm3, %v9779_v13 }
0x142c   : > { %v4164_v20 = vpop.permute.xlu1 %4163  ;;  %7479 = vmatpush3.bf16.xpose.msra.mxu0 %v4120_v8  ;;  %7480 = vmatprep.mubr.msk.bf16.mxu0 %vm8499_vm0, %v8498_v0 }
0x142d   : > { %v4169_v7 = vsel %vm1258_vm3, %v4164_v20, 0  ;;  %7475 = vmatmul.mubr.msk.bf16.vlgmr.msra.gmra.mrb[108].mxu1 %vm1258_vm3, %v9783_v55  ;;  %7490 = vmatprep.subr.bf16.mxu0 %v8498_v0 }
0x142e   : > { %7485 = vmatpush3.bf16.xpose.msra.mxu1 %v4169_v7  ;;  %7486 = vmatprep.mubr.msk.bf16.mxu1 %vm8499_vm0, %v8498_v0 }
0x142f   : > { %7496 = vmatprep.subr.bf16.mxu1 %v8498_v0 }
0x1433   : > { %7481 = vmatmul.mubr.msk.bf16.vlgmr.msra.gmra.mrb[108].mxu0 %vm1258_vm3, %v9791_v48 }
0x1434   : > { %7491 = vmatpush3.bf16.msra.mxu0 %v4319_v40  ;;  %7492 = vmatprep.mubr.msk.bf16.mxu0 %vm8499_vm0, %v8498_v0 }
0x1435   : > { %7487 = vmatmul.mubr.msk.bf16.vlgmr.msra.gmra.mrb[112].mxu1 %vm1258_vm3, %v9795_v63  ;;  %7502 = vmatprep.subr.bf16.mxu0 %v8498_v0 }
0x1436   : > { %7497 = vmatpush3.bf16.msra.mxu1 %v4365_v19  ;;  %7498 = vmatprep.mubr.msk.bf16.mxu1 %vm8499_vm0, %v8498_v0 }
0x1437   : > { %7508 = vmatprep.subr.bf16.mxu1 %v8498_v0 }
0x14c3   : > { %v3862_v49 = vpop.f32.mrb[92].mxu0 }
0x14c4   : > { %v3863_v46 = vadd.f32 %v3862_v49, %v9136_v24  ;;  %v7446_v37 = vpop.f32.mrb[93].mxu0 }
0x14c5   : > { %v3865_v59 = vpop.f32.mrb[94].mxu0 }
0x14c6   : > { %v7447_v39 = vpop.f32.mrb[95].mxu0  ;;  %v4211_v45 = vsel %vm1648_vm5, %v3863_v46, -inf }
0x14c7   : > { %4212 = vmax.xlane.f32.xlu0 %v4211_v45 }
0x14cb   : > { %v3911_v21 = vpop.f32.mrb[96].mxu0 }
0x14cc   : > { %v3912_v62 = vadd.f32 %v3911_v21, %v9145_v43  ;;  %v7452_v35 = vpop.f32.mrb[97].mxu0 }
0x14cd   : > { %v3914_v61 = vpop.f32.mrb[98].mxu0 }
0x14ce   : > { %v7453_v52 = vpop.f32.mrb[99].mxu0  ;;  %v4214_v26 = vsel %vm1648_vm5, %v3912_v62, -inf }
0x14cf   : > { %v4009_v11 = vpop.f32.mrb[104].mxu1  ;;  %4215 = vmax.xlane.f32.xlu1 %v4214_v26 }
0x14d0   : > { %v7464_v38 = vpop.f32.mrb[105].mxu1  ;;  %v4010_v50 = vadd.f32 %v4009_v11, %v9163_v9 }
0x14d1   : > { %v4012_v51 = vpop.f32.mrb[106].mxu1 }
0x14d2   : > { %v7465_v2 = vpop.f32.mrb[107].mxu1  ;;  %v4220_v29 = vsel %vm1648_vm5, %v4010_v50, -inf }
0x14d3   : > { %v3960_v54 = vpop.f32.mrb[100].mxu0 }
0x14d4   : > { %v3961_v57 = vadd.f32 %v3960_v54, %v9153_v56  ;;  %v7458_v31 = vpop.f32.mrb[101].mxu0 }
0x14d5   : > { %v3963_v28 = vpop.f32.mrb[102].mxu0 }
0x14d6   : > { %v7459_v58 = vpop.f32.mrb[103].mxu0  ;;  %v4217_v42 = vsel %vm1648_vm5, %v3961_v57, -inf }
0x14d7   : > { %4218 = vmax.xlane.f32.xlu0 %v4217_v42 }
0x14db   : > { %4221 = vmax.xlane.f32.xlu0 %v4220_v29 }
0x14fe   : > { %v4058_v8 = vpop.f32.mrb[104].mxu0 }
0x14ff   : > { %v4059_v20 = vadd.f32 %v4058_v8, %v9166_v25  ;;  %v7470_v10 = vpop.f32.mrb[105].mxu0 }
0x1500   : > { %v4061_v7 = vpop.f32.mrb[106].mxu0  ;;  %v4107_v40 = vpop.f32.mrb[108].mxu1 }
0x1501   : > { %v4108_v19 = vadd.f32 %v4107_v40, %v9176_v60  ;;  %v7471_v49 = vpop.f32.mrb[107].mxu0  ;;  %v7476_v37 = vpop.f32.mrb[109].mxu1  ;;  %v4223_v59 = vsel %vm1648_vm5, %v4059_v20, -inf }
0x1502   : > { %v4110_v39 = vpop.f32.mrb[110].mxu1  ;;  %4224 = vmax.xlane.f32.xlu0 %v4223_v59 }
0x1503   : > { %v7477_v45 = vpop.f32.mrb[111].mxu1  ;;  %v4226_v21 = vsel %vm1648_vm5, %v4108_v19, -inf }
0x1504   : > { %4227 = vmax.xlane.f32.xlu1 %v4226_v21 }
0x1506   : > { %v4156_v35 = vpop.f32.mrb[108].mxu0 }
0x1507   : > { %v4157_v61 = vadd.f32 %v4156_v35, %v9172_v53  ;;  %v7482_v52 = vpop.f32.mrb[109].mxu0 }
0x1508   : > { %v4159_v26 = vpop.f32.mrb[110].mxu0  ;;  %v4205_v11 = vpop.f32.mrb[112].mxu1 }
0x1509   : > { %v4206_v38 = vadd.f32 %v4205_v11, %v9187_v6  ;;  %v7483_v51 = vpop.f32.mrb[111].mxu0  ;;  %v7488_v2 = vpop.f32.mrb[113].mxu1  ;;  %v4229_v54 = vsel %vm1648_vm5, %v4157_v61, -inf }
0x150a   : > { %v4208_v31 = vpop.f32.mrb[114].mxu1  ;;  %4230 = vmax.xlane.f32.xlu0 %v4229_v54 }
0x150b   : > { %v7489_v28 = vpop.f32.mrb[115].mxu1  ;;  %v4232_v58 = vsel %vm1648_vm5, %v4206_v38, -inf }
0x150c   : > { %4233 = vmax.xlane.f32.xlu1 %v4232_v58 }
0x1554   : > { %v4213_v42 = vpop.xlane.xlu0 %4212 }
0x1555   : > { %v4235_v29 = vsub.f32 %v3863_v46, %v4213_v42 }
0x1557   : > { %v4243_v8 = vmul.f32 1.442695, %v4235_v29 }
0x1559   : > { %8074 = vpow2.f32 %v4243_v8 }
0x155c   : > { %v4216_v10 = vpop.xlane.xlu1 %4215 }
0x155d   : > { %v4236_v7 = vsub.f32 %v3912_v62, %v4216_v10 }
0x155f   : > { %v4245_v40 = vmul.f32 1.442695, %v4236_v7 }
0x1561   : > { %8076 = vpow2.f32 %v4245_v40 }
0x1563   : > { %v9884_v49 = vpop.eup %8074 }
0x1564   : > { %v4219_v37 = vpop.xlane.xlu0 %4218  ;;  %v4259_v59 = vsel %vm1648_vm5, %v9884_v49, 0.0 }
0x1565   : > { %v4237_v39 = vsub.f32 %v3961_v57, %v4219_v37  ;;  %4260 = vadd.xlane.f32.xlu0 %v4259_v59 }
0x1567   : > { %v4247_v45 = vmul.f32 1.442695, %v4237_v39 }
0x1568   : > { %v4222_v21 = vpop.xlane.xlu0 %4221 }
0x1569   : > { %8078 = vpow2.f32 %v4247_v45  ;;  %v4238_v35 = vsub.f32 %v4010_v50, %v4222_v21 }
0x156b   : > { %v9888_v52 = vpop.eup %8076  ;;  %v4249_v46 = vmul.f32 1.442695, %v4238_v35  ;;  %v3789_v35 = vadd.f32 %v9769_v27, %v9831_v32 }
0x156c   : > { %v4262_v62 = vsel %vm1648_vm5, %v9888_v52, 0.0 }
0x156d   : > { %8080 = vpow2.f32 %v4249_v46  ;;  %4263 = vadd.xlane.f32.xlu1 %v4262_v62  ;;  %v9961_v46 = vpack.c.bf16 %v3789_v35, %v3789_v35 }
0x156f   : > { %v4457_v27 = vsel %vm1756_vm4, %v9961_v46, 0 }
0x1573   : > { %v9892_v26 = vpop.eup %8078 }
0x1574   : > { %v4265_v11 = vsel %vm1648_vm5, %v9892_v26, 0.0 }
0x1575   : > { %4266 = vadd.xlane.f32.xlu0 %v4265_v11 }
0x1577   : > { %v9896_v57 = vpop.eup %8080 }
0x1578   : > { %v4268_v51 = vsel %vm1648_vm5, %v9896_v57, 0.0 }
0x1579   : > { %4269 = vadd.xlane.f32.xlu1 %v4268_v51  ;;  %v3795_v51 = vadd.f32 %v9777_v30, %v9831_v32 }
0x158f   : > { %v4225_v50 = vpop.xlane.xlu0 %4224 }
0x1590   : > { %v4239_v2 = vsub.f32 %v4059_v20, %v4225_v50 }
0x1591   : > { %v4228_v54 = vpop.xlane.xlu1 %4227 }
0x1592   : > { %v4251_v31 = vmul.f32 1.442695, %v4239_v2  ;;  %v4240_v28 = vsub.f32 %v4108_v19, %v4228_v54  ;;  %v9972_v2 = vpack.c.bf16 %v3795_v51, %v3795_v51 }
0x1594   : > { %8082 = vpow2.f32 %v4251_v31  ;;  %v4253_v58 = vmul.f32 1.442695, %v4240_v28  ;;  %v4503_v30 = vsel %vm1756_vm4, %v9972_v2, 0 }
0x1596   : > { %8084 = vpow2.f32 %v4253_v58 }
0x1597   : > { %v4231_v42 = vpop.xlane.xlu0 %4230 }
0x1598   : > { %v4241_v29 = vsub.f32 %v4157_v61, %v4231_v42 }
0x1599   : > { %v4234_v8 = vpop.xlane.xlu1 %4233 }
0x159a   : > { %v4255_v10 = vmul.f32 1.442695, %v4241_v29  ;;  %v4242_v7 = vsub.f32 %v4206_v38, %v4234_v8  ;;  %v3805_v8 = vadd.f32 %v9789_v17, %v9831_v32 }
0x159c   : > { %8086 = vpow2.f32 %v4255_v10  ;;  %v4257_v40 = vmul.f32 1.442695, %v4242_v7  ;;  %v3809_v7 = vadd.f32 %v9793_v36, %v9831_v32 }
0x159e   : > { %v9900_v37 = vpop.eup %8082  ;;  %8088 = vpow2.f32 %v4257_v40 }
0x159f   : > { %v4271_v59 = vsel %vm1648_vm5, %v9900_v37, 0.0 }
0x15a0   : > { %v9904_v20 = vpop.eup %8084  ;;  %4272 = vadd.xlane.f32.xlu0 %v4271_v59 }
0x15a1   : > { %v4274_v19 = vsel %vm1648_vm5, %v9904_v20, 0.0 }
0x15a2   : > { %4275 = vadd.xlane.f32.xlu1 %v4274_v19  ;;  %v9996_v19 = vpack.c.bf16 %v3805_v8, %v3805_v8 }
0x15a4   : > { %v4595_v17 = vsel %vm1756_vm4, %v9996_v19, 0 }
0x15a6   : > { %v9908_v39 = vpop.eup %8086 }
0x15a7   : > { %v4277_v61 = vsel %vm1648_vm5, %v9908_v39, 0.0 }
0x15a8   : > { %v9912_v38 = vpop.eup %8088  ;;  %4278 = vadd.xlane.f32.xlu0 %v4277_v61 }
0x15a9   : > { %v4280_v45 = vsel %vm1648_vm5, %v9912_v38, 0.0 }
0x15aa   : > { %4281 = vadd.xlane.f32.xlu1 %v4280_v45 }
0x15bb   : > { %4735 = vrot.lane.b32.xlu1 %v9759_v18, %s8503_s21 }
0x15be   : > { %4685 = vrot.lane.b32.xlu0 %v9755_v23, %s8503_s21 }
0x15bf   : > { %4683 = vrot.lane.b32.xlu1 %v9755_v23, %s8504_s7 }
0x15c2   : > { %4785 = vrot.lane.b32.xlu0 %v9767_v33, %s8503_s21 }
0x15c3   : > { %4733 = vrot.lane.b32.xlu1 %v9759_v18, %s8504_s7  ;;  %v3785_v18 = vadd.f32 %v9765_v3, %v9831_v32 }
0x15c6   : > { %4783 = vrot.lane.b32.xlu0 %v9767_v33, %s8504_s7 }
0x15c7   : > { %4835 = vrot.lane.b32.xlu1 %v9773_v1, %s8503_s21 }
0x15ca   : > { %4885 = vrot.lane.b32.xlu0 %v9779_v13, %s8503_s21 }
0x15cb   : > { %4833 = vrot.lane.b32.xlu1 %v9773_v1, %s8504_s7 }
0x15ce   : > { %4883 = vrot.lane.b32.xlu0 %v9779_v13, %s8504_s7  ;;  %v9950_v13 = vpack.c.bf16 %v3785_v18, %v3785_v18 }
0x15cf   : > { %4935 = vrot.lane.b32.xlu1 %v9783_v55, %s8503_s21 }
0x15d2   : > { %4985 = vrot.lane.b32.xlu0 %v9791_v48, %s8503_s21 }
0x15d3   : > { %4933 = vrot.lane.b32.xlu1 %v9783_v55, %s8504_s7 }
0x15d6   : > { %4983 = vrot.lane.b32.xlu0 %v9791_v48, %s8504_s7  ;;  %v4411_v48 = vsel %vm1756_vm4, %v9950_v13, 0 }
0x15d7   : > { %5035 = vrot.lane.b32.xlu1 %v9795_v63, %s8503_s21 }
0x15db   : > { %5033 = vrot.lane.b32.xlu1 %v9795_v63, %s8504_s7 }
0x15f2   : > { %v4261_v23 = vpop.xlane.xlu0 %4260 }
0x15f3   : > { %8090 = vrcp.f32 %v4261_v23  ;;  %v9999_v23 = vpack.c.bf16 %v3809_v7, %v3809_v7 }
0x15fa   : > { %v4264_v33 = vpop.xlane.xlu1 %4263 }
0x15fb   : > { %8092 = vrcp.f32 %v4264_v33 }
0x15fd   : > { %v8091_v1 = vpop.eup %8090 }
0x15fe   : > { %v4291_v55 = vmul.f32 %v8091_v1, %v9884_v49 }
0x1600   : > { %v4299_v21 = vpack.c.bf16 %v4291_v55, %v4291_v55 }
0x1602   : > { %7493 = vmatmul.mubr.msk.bf16.vlgmr.msra.gmra.mrb[112].mxu0 %vm1648_vm5, %v4299_v21  ;;  %v4267_v63 = vpop.xlane.xlu0 %4266 }
0x1603   : > { %7503 = vmatpush3.bf16.msra.mxu0 %v4411_v48  ;;  %8094 = vrcp.f32 %v4267_v63  ;;  %7504 = vmatprep.mubr.msk.bf16.mxu0 %vm8499_vm0, %v8498_v0 }
0x1604   : > { %7514 = vmatprep.subr.bf16.mxu0 %v8498_v0 }
0x1605   : > { %v8093_v3 = vpop.eup %8092 }
0x1606   : > { %v4292_v49 = vmul.f32 %v8093_v3, %v9888_v52  ;;  %v4270_v62 = vpop.xlane.xlu1 %4269  ;;  %v3799_v52 = vadd.f32 %v9781_v47, %v9831_v32  ;;  %v4641_v32 = vsel %vm1756_vm4, %v9999_v23, 0 }
0x1607   : > { %8096 = vrcp.f32 %v4270_v62 }
0x1608   : > { %v4300_v11 = vpack.c.bf16 %v4292_v49, %v4292_v49  ;;  %v9979_v58 = vpack.c.bf16 %v3799_v52, %v3799_v52 }
0x160a   : > { %7499 = vmatmul.mubr.msk.bf16.vlgmr.msra.gmra.mrb[116].mxu1 %vm1648_vm5, %v4300_v11  ;;  %v4549_v47 = vsel %vm1756_vm4, %v9979_v58, 0 }
0x160b   : > { %7509 = vmatpush3.bf16.msra.mxu1 %v4457_v27  ;;  %7510 = vmatprep.mubr.msk.bf16.mxu1 %vm8499_vm0, %v8498_v0 }
0x160c   : > { %7520 = vmatprep.subr.bf16.mxu1 %v8498_v0 }
0x160d   : > { %v8095_v50 = vpop.eup %8094 }
0x160e   : > { %v4293_v54 = vmul.f32 %v8095_v50, %v9892_v26 }
0x1610   : > { %v4301_v31 = vpack.c.bf16 %v4293_v54, %v4293_v54 }
0x1611   : > { %v8097_v28 = vpop.eup %8096 }
0x1612   : > { %v4294_v42 = vmul.f32 %v8097_v28, %v9896_v57  ;;  %7505 = vmatmul.mubr.msk.bf16.vlgmr.msra.gmra.mrb[116].mxu0 %vm1648_vm5, %v4301_v31 }
0x1613   : > { %7515 = vmatpush3.bf16.msra.mxu0 %v4503_v30  ;;  %7516 = vmatprep.mubr.msk.bf16.mxu0 %vm8499_vm0, %v8498_v0 }
0x1614   : > { %v4302_v29 = vpack.c.bf16 %v4294_v42, %v4294_v42  ;;  %7526 = vmatprep.subr.bf16.mxu0 %v8498_v0 }
0x1616   : > { %7511 = vmatmul.mubr.msk.bf16.vlgmr.msra.gmra.mrb[120].mxu1 %vm1648_vm5, %v4302_v29 }
0x1617   : > { %7521 = vmatpush3.bf16.msra.mxu1 %v4549_v47  ;;  %7522 = vmatprep.mubr.msk.bf16.mxu1 %vm8499_vm0, %v8498_v0 }
0x1618   : > { %7532 = vmatprep.subr.bf16.mxu1 %v8498_v0 }
0x162d   : > { %v4273_v26 = vpop.xlane.xlu0 %4272 }
0x162e   : > { %8098 = vrcp.f32 %v4273_v26 }
0x162f   : > { %v4276_v57 = vpop.xlane.xlu1 %4275 }
0x1630   : > { %8100 = vrcp.f32 %v4276_v57 }
0x1635   : > { %v4279_v10 = vpop.xlane.xlu0 %4278 }
0x1636   : > { %8102 = vrcp.f32 %v4279_v10 }
0x1637   : > { %v4282_v40 = vpop.xlane.xlu1 %4281 }
0x1638   : > { %v8099_v59 = vpop.eup %8098  ;;  %8104 = vrcp.f32 %v4282_v40 }
0x1639   : > { %v4295_v61 = vmul.f32 %v8099_v59, %v9900_v37  ;;  %v4686_v55 = vpop.permute.xlu0 %4685 }
0x163a   : > { %v8101_v45 = vpop.eup %8100  ;;  %v4691_v11 = vsel %vm1258_vm3, %v4686_v55, 0 }
0x163b   : > { %v4296_v18 = vmul.f32 %v8101_v45, %v9904_v20  ;;  %v4736_v33 = vpop.permute.xlu1 %4735  ;;  %v4303_v1 = vpack.c.bf16 %v4295_v61, %v4295_v61 }
0x163c   : > { %v4741_v27 = vsel %vm1258_vm3, %v4736_v33, 0 }
0x163d   : > { %7517 = vmatmul.mubr.msk.bf16.vlgmr.msra.gmra.mrb[120].mxu0 %vm1648_vm5, %v4303_v1  ;;  %v4304_v36 = vpack.c.bf16 %v4296_v18, %v4296_v18  ;;  %v4786_v63 = vpop.permute.xlu0 %4785 }
0x163e   : > { %7527 = vmatpush3.bf16.msra.mxu0 %v4595_v17  ;;  %7528 = vmatprep.mubr.msk.bf16.mxu0 %vm8499_vm0, %v8498_v0  ;;  %v4791_v50 = vsel %vm1258_vm3, %v4786_v63, 0 }
0x163f   : > { %7523 = vmatmul.mubr.msk.bf16.vlgmr.msra.gmra.mrb[124].mxu1 %vm1648_vm5, %v4304_v36  ;;  %v4684_v37 = vpop.permute.xlu1 %4683  ;;  %7538 = vmatprep.subr.bf16.mxu0 %v8498_v0 }
0x1640   : > { %v8103_v20 = vpop.eup %8102  ;;  %7533 = vmatpush3.bf16.msra.mxu1 %v4641_v32  ;;  %7534 = vmatprep.mubr.msk.bf16.mxu1 %vm8499_vm0, %v8498_v0 }
0x1641   : > { %v4297_v21 = vmul.f32 %v8103_v20, %v9908_v39  ;;  %7544 = vmatprep.subr.bf16.mxu1 %v8498_v0 }
0x1642   : > { %v8105_v48 = vpop.eup %8104 }
0x1643   : > { %v4298_v35 = vmul.f32 %v8105_v48, %v9912_v38  ;;  %v4734_v3 = vpop.permute.xlu1 %4733  ;;  %v4305_v49 = vpack.c.bf16 %v4297_v21, %v4297_v21  ;;  %v4784_v38 = vpop.permute.xlu0 %4783 }
0x1645   : > { %7529 = vmatmul.mubr.msk.bf16.vlgmr.msra.gmra.mrb[124].mxu0 %vm1648_vm5, %v4305_v49  ;;  %v4306_v62 = vpack.c.bf16 %v4298_v35, %v4298_v35 }
0x1646   : > { %7540 = vmatprep.mubr.msk.bf16.mxu0 %vm8499_vm0, %v8498_v0 }
0x1647   : > { %7539 = vmatpush3.bf16.xpose.msra.mxu0 %v4691_v11  ;;  %7535 = vmatmul.mubr.msk.bf16.vlgmr.msra.gmra.mrb[128].mxu1 %vm1648_vm5, %v4306_v62  ;;  %v4836_v39 = vpop.permute.xlu1 %4835  ;;  %v4886_v52 = vpop.permute.xlu0 %4885 }
0x1648   : > { %7550 = vmatprep.subr.bf16.mxu0 %v8498_v0  ;;  %7546 = vmatprep.mubr.msk.bf16.mxu1 %vm8499_vm0, %v8498_v0  ;;  %v4841_v54 = vsel %vm1258_vm3, %v4836_v39, 0  ;;  %v4891_v30 = vsel %vm1258_vm3, %v4886_v52, 0 }
0x1649   : > { %7545 = vmatpush3.bf16.xpose.msra.mxu1 %v4741_v27 }
0x164a   : > { %7556 = vmatprep.subr.bf16.mxu1 %v8498_v0 }
0x164b   : > { %v4834_v51 = vpop.permute.xlu1 %4833  ;;  %v4884_v28 = vpop.permute.xlu0 %4883 }
0x164e   : > { %7541 = vmatmul.mubr.msk.bf16.vlgmr.msra.gmra.mrb[128].mxu0 %vm1258_vm3, %v4684_v37 }
0x164f   : > { %7551 = vmatpush3.bf16.xpose.msra.mxu0 %v4791_v50  ;;  %7552 = vmatprep.mubr.msk.bf16.mxu0 %vm8499_vm0, %v8498_v0  ;;  %v4936_v31 = vpop.permute.xlu1 %4935  ;;  %v4986_v47 = vpop.permute.xlu0 %4985 }
0x1650   : > { %7547 = vmatmul.mubr.msk.bf16.vlgmr.msra.gmra.mrb[132].mxu1 %vm1258_vm3, %v4734_v3  ;;  %7562 = vmatprep.subr.bf16.mxu0 %v8498_v0  ;;  %v4941_v29 = vsel %vm1258_vm3, %v4936_v31, 0  ;;  %v4991_v57 = vsel %vm1258_vm3, %v4986_v47, 0 }
0x1651   : > { %7557 = vmatpush3.bf16.xpose.msra.mxu1 %v4841_v54  ;;  %7558 = vmatprep.mubr.msk.bf16.mxu1 %vm8499_vm0, %v8498_v0 }
0x1652   : > { %7568 = vmatprep.subr.bf16.mxu1 %v8498_v0 }
0x1653   : > { %v4934_v42 = vpop.permute.xlu1 %4933  ;;  %v4984_v10 = vpop.permute.xlu0 %4983 }
0x1656   : > { %7553 = vmatmul.mubr.msk.bf16.vlgmr.msra.gmra.mrb[132].mxu0 %vm1258_vm3, %v4784_v38 }
0x1657   : > { %7563 = vmatpush3.bf16.xpose.msra.mxu0 %v4891_v30  ;;  %7564 = vmatprep.mubr.msk.bf16.mxu0 %vm8499_vm0, %v8498_v0  ;;  %v5036_v26 = vpop.permute.xlu1 %5035 }
0x1658   : > { %7559 = vmatmul.mubr.msk.bf16.vlgmr.msra.gmra.mrb[136].mxu1 %vm1258_vm3, %v4834_v51  ;;  %7574 = vmatprep.subr.bf16.mxu0 %v8498_v0  ;;  %v5041_v8 = vsel %vm1258_vm3, %v5036_v26, 0 }
0x1659   : > { %7569 = vmatpush3.bf16.xpose.msra.mxu1 %v4941_v29  ;;  %7570 = vmatprep.mubr.msk.bf16.mxu1 %vm8499_vm0, %v8498_v0 }
0x165a   : > { %7580 = vmatprep.subr.bf16.mxu1 %v8498_v0 }
0x165b   : > { %v5034_v7 = vpop.permute.xlu1 %5033 }
0x165e   : > { %7565 = vmatmul.mubr.msk.bf16.vlgmr.msra.gmra.mrb[136].mxu0 %vm1258_vm3, %v4884_v28 }
0x165f   : > { %7575 = vmatpush3.bf16.xpose.msra.mxu0 %v4991_v57  ;;  %7576 = vmatprep.mubr.msk.bf16.mxu0 %vm8499_vm0, %v8498_v0 }
0x1660   : > { %7571 = vmatmul.mubr.msk.bf16.vlgmr.msra.gmra.mrb[140].mxu1 %vm1258_vm3, %v4934_v42  ;;  %7586 = vmatprep.subr.bf16.mxu0 %v8498_v0 }
0x1661   : > { %7581 = vmatpush3.bf16.xpose.msra.mxu1 %v5041_v8  ;;  %7582 = vmatprep.mubr.msk.bf16.mxu1 %vm8499_vm0, %v8498_v0 }
0x1662   : > { %7592 = vmatprep.subr.bf16.mxu1 %v8498_v0 }
0x1666   : > { %7577 = vmatmul.mubr.msk.bf16.vlgmr.msra.gmra.mrb[140].mxu0 %vm1258_vm3, %v4984_v10 }
0x1667   : > { %7588 = vmatprep.mubr.msk.bf16.mxu0 %vm8499_vm0, %v8498_v0 }
0x1668   : > { %7583 = vmatmul.mubr.msk.bf16.vlgmr.msra.gmra.mrb[144].mxu1 %vm1258_vm3, %v5034_v7 }
0x1669   : > { %7594 = vmatprep.mubr.msk.bf16.mxu1 %vm8499_vm0, %v8498_v0 }
0x16d5   : > { %v10062_v40 = vpop.f32.mrb[112].mxu0 }
0x16d6   : > { %v7494_v59 = vpop.f32.mrb[113].mxu0 }
0x16d7   : > { %v4358_v61 = vpop.f32.mrb[114].mxu0 }
0x16d8   : > { %v7495_v45 = vpop.f32.mrb[115].mxu0 }
0x16dd   : > { %v10064_v18 = vpop.f32.mrb[116].mxu1 }
0x16de   : > { %v7500_v33 = vpop.f32.mrb[117].mxu1 }
0x16df   : > { %v4404_v1 = vpop.f32.mrb[118].mxu1 }
0x16e0   : > { %v7501_v17 = vpop.f32.mrb[119].mxu1 }
0x16e5   : > { %v10066_v55 = vpop.f32.mrb[116].mxu0 }
0x16e6   : > { %v7506_v36 = vpop.f32.mrb[117].mxu0 }
0x16e7   : > { %v4450_v32 = vpop.f32.mrb[118].mxu0 }
0x16e8   : > { %v7507_v37 = vpop.f32.mrb[119].mxu0 }
0x16e9   : > { %v10068_v20 = vpop.f32.mrb[120].mxu1 }
0x16ea   : > { %v7512_v21 = vpop.f32.mrb[121].mxu1 }
0x16eb   : > { %v4496_v48 = vpop.f32.mrb[122].mxu1 }
0x16ec   : > { %v7513_v35 = vpop.f32.mrb[123].mxu1 }
0x1710   : > { %v10070_v63 = vpop.f32.mrb[120].mxu0 }
0x1711   : > { %v7518_v3 = vpop.f32.mrb[121].mxu0 }
0x1712   : > { %v4542_v49 = vpop.f32.mrb[122].mxu0  ;;  %v10072_v62 = vpop.f32.mrb[124].mxu1 }
0x1713   : > { %v7519_v11 = vpop.f32.mrb[123].mxu0  ;;  %v7524_v39 = vpop.f32.mrb[125].mxu1 }
0x1714   : > { %v4588_v27 = vpop.f32.mrb[126].mxu1 }
0x1715   : > { %v7525_v38 = vpop.f32.mrb[127].mxu1 }
0x1718   : > { %v10074_v51 = vpop.f32.mrb[124].mxu0 }
0x1719   : > { %v7530_v50 = vpop.f32.mrb[125].mxu0 }
0x171a   : > { %v4634_v52 = vpop.f32.mrb[126].mxu0  ;;  %v10076_v54 = vpop.f32.mrb[128].mxu1 }
0x171b   : > { %v7531_v31 = vpop.f32.mrb[127].mxu0  ;;  %v7536_v28 = vpop.f32.mrb[129].mxu1 }
0x171c   : > { %v4680_v30 = vpop.f32.mrb[130].mxu1 }
0x171d   : > { %v7537_v42 = vpop.f32.mrb[131].mxu1 }
0x1721   : > { %v4727_v29 = vpop.f32.mrb[128].mxu0 }
0x1722   : > { %v4728_v47 = vadd.f32 %v4727_v29, %v9136_v24  ;;  %v7542_v26 = vpop.f32.mrb[129].mxu0 }
0x1723   : > { %v4730_v57 = vpop.f32.mrb[130].mxu0  ;;  %v4777_v8 = vpop.f32.mrb[132].mxu1 }
0x1724   : > { %v4778_v10 = vadd.f32 %v4777_v8, %v9145_v43  ;;  %v7543_v7 = vpop.f32.mrb[131].mxu0  ;;  %v7548_v59 = vpop.f32.mrb[133].mxu1  ;;  %v5083_v61 = vsel %vm1648_vm5, %v4728_v47, -inf }
0x1725   : > { %v4780_v45 = vpop.f32.mrb[134].mxu1  ;;  %5084 = vmax.xlane.f32.xlu0 %v5083_v61 }
0x1726   : > { %v7549_v33 = vpop.f32.mrb[135].mxu1  ;;  %v5086_v1 = vsel %vm1648_vm5, %v4778_v10, -inf }
0x1727   : > { %5087 = vmax.xlane.f32.xlu1 %v5086_v1 }
0x1729   : > { %v4827_v17 = vpop.f32.mrb[132].mxu0 }
0x172a   : > { %v4828_v36 = vadd.f32 %v4827_v17, %v9153_v56  ;;  %v7554_v32 = vpop.f32.mrb[133].mxu0 }
0x172b   : > { %v4830_v24 = vpop.f32.mrb[134].mxu0  ;;  %v4877_v37 = vpop.f32.mrb[136].mxu1 }
0x172c   : > { %v10084_v21 = vadd.f32 %v4877_v37, %v9163_v9  ;;  %v7555_v43 = vpop.f32.mrb[135].mxu0  ;;  %v7560_v48 = vpop.f32.mrb[137].mxu1  ;;  %v5089_v35 = vsel %vm1648_vm5, %v4828_v36, -inf }
0x172d   : > { %v4880_v3 = vpop.f32.mrb[138].mxu1  ;;  %5090 = vmax.xlane.f32.xlu0 %v5089_v35 }
0x172e   : > { %v7561_v49 = vpop.f32.mrb[139].mxu1  ;;  %v5092_v11 = vsel %vm1648_vm5, %v10084_v21, -inf }
0x1731   : > { %5093 = vmax.xlane.f32.xlu0 %v5092_v11  ;;  %v4927_v39 = vpop.f32.mrb[136].mxu0 }
0x1732   : > { %v10090_v56 = vadd.f32 %v4927_v39, %v9166_v25  ;;  %v7566_v27 = vpop.f32.mrb[137].mxu0 }
0x1733   : > { %v4930_v38 = vpop.f32.mrb[138].mxu0  ;;  %v4977_v50 = vpop.f32.mrb[140].mxu1 }
0x1734   : > { %v10093_v9 = vadd.f32 %v4977_v50, %v9176_v60  ;;  %v7567_v52 = vpop.f32.mrb[139].mxu0  ;;  %v7572_v31 = vpop.f32.mrb[141].mxu1  ;;  %v5095_v28 = vsel %vm1648_vm5, %v10090_v56, -inf }
0x1735   : > { %v4980_v30 = vpop.f32.mrb[142].mxu1  ;;  %5096 = vmax.xlane.f32.xlu0 %v5095_v28 }
0x1736   : > { %v7573_v42 = vpop.f32.mrb[143].mxu1  ;;  %v5098_v29 = vsel %vm1648_vm5, %v10093_v9, -inf }
0x1737   : > { %5099 = vmax.xlane.f32.xlu1 %v5098_v29 }
0x1739   : > { %v5027_v25 = vpop.f32.mrb[140].mxu0 }
0x173a   : > { %v5028_v26 = vadd.f32 %v5027_v25, %v9172_v53  ;;  %v7578_v57 = vpop.f32.mrb[141].mxu0 }
0x173b   : > { %v5030_v8 = vpop.f32.mrb[142].mxu0  ;;  %v5077_v7 = vpop.f32.mrb[144].mxu1 }
0x173c   : > { %v7579_v60 = vpop.f32.mrb[143].mxu0  ;;  %v7584_v59 = vpop.f32.mrb[145].mxu1  ;;  %v5101_v61 = vsel %vm1648_vm5, %v5028_v26, -inf  ;;  %v10108_v53 = vadd.f32 %v5077_v7, %v9187_v6 }
0x173d   : > { %v5080_v45 = vpop.f32.mrb[146].mxu1  ;;  %5102 = vmax.xlane.f32.xlu0 %v5101_v61 }
0x173e   : > { %v7585_v33 = vpop.f32.mrb[147].mxu1  ;;  %v5104_v1 = vsel %vm1648_vm5, %v10108_v53, -inf }
0x1748   : > { %5229 = vrot.lane.b32.xlu1 %v9852_v5, %s8504_s7 }
0x174c   : > { %5278 = vrot.lane.b32.xlu1 %v9950_v13, %s8504_s7 }
0x1753   : > { %5180 = vrot.lane.b32.xlu0 %v9849_v4, %s8504_s7 }
0x1770   : > { %5105 = vmax.xlane.f32.xlu1 %v5104_v1 }
0x1781   : > { %5327 = vrot.lane.b32.xlu1 %v9961_v46, %s8504_s7 }
0x17b2   : > { %v5085_v17 = vpop.xlane.xlu0 %5084 }
0x17b3   : > { %v5107_v32 = vsub.f32 %v4728_v47, %v5085_v17 }
0x17b4   : > { %v5088_v24 = vpop.xlane.xlu1 %5087 }
0x17b5   : > { %v5115_v5 = vmul.f32 1.442695, %v5107_v32  ;;  %v5108_v37 = vsub.f32 %v4778_v10, %v5088_v24 }
0x17b7   : > { %8106 = vpow2.f32 %v5115_v5  ;;  %v5117_v13 = vmul.f32 1.442695, %v5108_v37 }
0x17b9   : > { %8108 = vpow2.f32 %v5117_v13 }
0x17ba   : > { %v5091_v43 = vpop.xlane.xlu0 %5090 }
0x17bb   : > { %v5109_v4 = vsub.f32 %v4828_v36, %v5091_v43 }
0x17bd   : > { %v5119_v48 = vmul.f32 1.442695, %v5109_v4 }
0x17be   : > { %v5094_v6 = vpop.xlane.xlu0 %5093 }
0x17bf   : > { %8110 = vpow2.f32 %v5119_v48  ;;  %v5110_v31 = vsub.f32 %v10084_v21, %v5094_v6 }
0x17c1   : > { %v10114_v35 = vpop.eup %8106  ;;  %v5121_v28 = vmul.f32 1.442695, %v5110_v31 }
0x17c2   : > { %v5131_v3 = vsel %vm1648_vm5, %v10114_v35, 0.0  ;;  %v5097_v10 = vpop.xlane.xlu0 %5096 }
0x17c3   : > { %v10118_v49 = vpop.eup %8108  ;;  %5132 = vadd.xlane.f32.xlu0 %v5131_v3  ;;  %v5111_v42 = vsub.f32 %v10090_v56, %v5097_v10  ;;  %8112 = vpow2.f32 %v5121_v28 }
0x17c4   : > { %v5100_v46 = vpop.xlane.xlu1 %5099  ;;  %v5134_v47 = vsel %vm1648_vm5, %v10118_v49, 0.0 }
0x17c5   : > { %5135 = vadd.xlane.f32.xlu1 %v5134_v47  ;;  %v5112_v30 = vsub.f32 %v10093_v9, %v5100_v46  ;;  %v5123_v25 = vmul.f32 1.442695, %v5111_v42 }
0x17c7   : > { %v5125_v29 = vmul.f32 1.442695, %v5112_v30 }
0x17c8   : > { %v5230_v11 = vpop.permute.xlu1 %5229 }
0x17c9   : > { %v10122_v39 = vpop.eup %8110  ;;  %v5235_v36 = vsel %vm1756_vm4, %v5230_v11, 0  ;;  %8114 = vpow2.f32 %v5125_v29 }
0x17ca   : > { %7593 = vmatpush3.bf16.msra.mxu1 %v5235_v36  ;;  %v5103_v27 = vpop.xlane.xlu0 %5102  ;;  %v5137_v38 = vsel %vm1648_vm5, %v10122_v39, 0.0  ;;  %8116 = vpow2.f32 %v5123_v25 }
0x17cb   : > { %5138 = vadd.xlane.f32.xlu0 %v5137_v38  ;;  %7604 = vmatprep.subr.bf16.mxu1 %v8498_v0  ;;  %v5113_v57 = vsub.f32 %v5028_v26, %v5103_v27 }
0x17cd   : > { %v5127_v8 = vmul.f32 1.442695, %v5113_v57  ;;  %v10137_v7 = vpop.eup %8112 }
0x17ce   : > { %v5181_v50 = vpop.permute.xlu0 %5180 }
0x17cf   : > { %v5186_v52 = vsel %vm1756_vm4, %v5181_v50, 0  ;;  %8118 = vpow2.f32 %v5127_v8 }
0x17d0   : > { %7587 = vmatpush3.bf16.msra.mxu0 %v5186_v52 }
0x17d1   : > { %7598 = vmatprep.subr.bf16.mxu0 %v8498_v0 }
0x17d3   : > { %v10141_v21 = vpop.eup %8114 }
0x17d4   : > { %v10143_v9 = vpop.eup %8116  ;;  %v5146_v60 = vsel %vm1648_vm5, %v10141_v21, 0.0 }
0x17d5   : > { %v5143_v59 = vsel %vm1648_vm5, %v10143_v9, 0.0 }
0x17d6   : > { %5425 = vrot.lane.b32.xlu1 %v9979_v58, %s8504_s7  ;;  %v5279_v58 = vpop.permute.xlu1 %5278 }
0x17d7   : > { %v5284_v6 = vsel %vm1756_vm4, %v5279_v58, 0 }
0x17d9   : > { %v10150_v61 = vpop.eup %8118 }
0x17da   : > { %v5149_v33 = vsel %vm1648_vm5, %v10150_v61, 0.0 }
0x17e1   : > { %5376 = vrot.lane.b32.xlu0 %v9972_v2, %s8504_s7  ;;  %v5140_v2 = vsel %vm1648_vm5, %v10137_v7, 0.0 }
0x17fa   : > { %5141 = vadd.xlane.f32.xlu1 %v5140_v2 }
0x17fd   : > { %v5106_v56 = vpop.xlane.xlu1 %5105 }
0x17fe   : > { %v5114_v26 = vsub.f32 %v10108_v53, %v5106_v56  ;;  %5147 = vadd.xlane.f32.xlu1 %v5146_v60 }
0x1800   : > { %v5129_v45 = vmul.f32 1.442695, %v5114_v26  ;;  %5144 = vadd.xlane.f32.xlu0 %v5143_v59 }
0x1801   : > { %v5328_v53 = vpop.permute.xlu1 %5327 }
0x1802   : > { %8120 = vpow2.f32 %v5129_v45 }
0x1804   : > { %5150 = vadd.xlane.f32.xlu0 %v5149_v33  ;;  %v7947_v33 = vld [vmem:[%s10565_s6 + $0x28] sm:$0xff]  }
0x180c   : > { %v10154_v1 = vpop.eup %8120 }
0x180d   : > { %v5152_v17 = vsel %vm1648_vm5, %v10154_v1, 0.0 }
0x180e   : > { %5153 = vadd.xlane.f32.xlu1 %v5152_v17 }
0x181a   : > { %5474 = vrot.lane.b32.xlu0 %v9996_v19, %s8504_s7 }
0x181f   : > { %5523 = vrot.lane.b32.xlu1 %v9999_v23, %s8504_s7  ;;  %v5333_v23 = vsel %vm1756_vm4, %v5328_v53, 0  ;;  %s6950_s7 = sshll.u32 %s8602_s19, 7  ;;  %s6565_s19 = scalar_lea.sflag [#allocation4], %s8860_s14 }
0x1850   : > { %v5133_v32 = vpop.xlane.xlu0 %5132 }
0x1851   : > { %8122 = vrcp.f32 %v5133_v32 }
0x1852   : > { %v5136_v24 = vpop.xlane.xlu1 %5135 }
0x1853   : > { %8124 = vrcp.f32 %v5136_v24 }
0x1856   : > { %v5426_v10 = vpop.permute.xlu1 %5425 }
0x1857   : > { %v5431_v28 = vsel %vm1756_vm4, %v5426_v10, 0 }
0x1858   : > { %v5139_v5 = vpop.xlane.xlu0 %5138 }
0x1859   : > { %8126 = vrcp.f32 %v5139_v5 }
0x185b   : > { %v8123_v37 = vpop.eup %8122 }
0x185c   : > { %v5163_v13 = vmul.f32 %v8123_v37, %v10114_v35 }
0x185d   : > { %v8125_v43 = vpop.eup %8124 }
0x185e   : > { %v5164_v4 = vmul.f32 %v8125_v43, %v10118_v49  ;;  %v5171_v48 = vpack.c.bf16 %v5163_v13, %v5163_v13  ;;  %v5377_v49 = vpop.permute.xlu0 %5376 }
0x185f   : > { %v5382_v47 = vsel %vm1756_vm4, %v5377_v49, 0 }
0x1860   : > { %7589 = vmatmul.mubr.msk.bf16.vlgmr.msra.gmra.mrb[144].mxu0 %vm1648_vm5, %v5171_v48  ;;  %v5172_v19 = vpack.c.bf16 %v5164_v4, %v5164_v4 }
0x1861   : > { %7599 = vmatpush3.bf16.msra.mxu0 %v5284_v6  ;;  %7600 = vmatprep.mubr.msk.bf16.mxu0 %vm8499_vm0, %v8498_v0 }
0x1862   : > { %7595 = vmatmul.mubr.msk.bf16.vlgmr.msra.gmra.mrb[148].mxu1 %vm1648_vm5, %v5172_v19  ;;  %7610 = vmatprep.subr.bf16.mxu0 %v8498_v0 }
0x1863   : > { %v8127_v35 = vpop.eup %8126  ;;  %7605 = vmatpush3.bf16.msra.mxu1 %v5333_v23  ;;  %7606 = vmatprep.mubr.msk.bf16.mxu1 %vm8499_vm0, %v8498_v0 }
0x1864   : > { %v5165_v3 = vmul.f32 %v8127_v35, %v10122_v39  ;;  %7616 = vmatprep.subr.bf16.mxu1 %v8498_v0  ;;  %v7949_v35 = vld [vmem:[%s10565_s6 + $0x38] sm:$0xff]  }
0x1866   : > { %v5173_v46 = vpack.c.bf16 %v5165_v3, %v5165_v3 }
0x1868   : > { %7601 = vmatmul.mubr.msk.bf16.vlgmr.msra.gmra.mrb[148].mxu0 %vm1648_vm5, %v5173_v46 }
0x1869   : > { %7611 = vmatpush3.bf16.msra.mxu0 %v5382_v47  ;;  %7612 = vmatprep.mubr.msk.bf16.mxu0 %vm8499_vm0, %v8498_v0 }
0x186a   : > { %7622 = vmatprep.subr.bf16.mxu0 %v8498_v0 }
0x1887   : > { %v5142_v11 = vpop.xlane.xlu1 %5141 }
0x1888   : > { %8128 = vrcp.f32 %v5142_v11 }
0x188b   : > { %v5148_v36 = vpop.xlane.xlu1 %5147 }
0x188c   : > { %8130 = vrcp.f32 %v5148_v36 }
0x188d   : > { %v5145_v39 = vpop.xlane.xlu0 %5144 }
0x188e   : > { %8132 = vrcp.f32 %v5145_v39 }
0x1891   : > { %v5151_v27 = vpop.xlane.xlu0 %5150 }
0x1892   : > { %v8129_v38 = vpop.eup %8128  ;;  %8134 = vrcp.f32 %v5151_v27 }
0x1893   : > { %v5166_v50 = vmul.f32 %v8129_v38, %v10137_v7 }
0x1895   : > { %v5174_v52 = vpack.c.bf16 %v5166_v50, %v5166_v50  ;;  %v5475_v25 = vpop.permute.xlu0 %5474 }
0x1896   : > { %v8131_v31 = vpop.eup %8130  ;;  %v5480_v58 = vsel %vm1756_vm4, %v5475_v25, 0 }
0x1897   : > { %7607 = vmatmul.mubr.msk.bf16.vlgmr.msra.gmra.mrb[152].mxu1 %vm1648_vm5, %v5174_v52  ;;  %v5168_v42 = vmul.f32 %v8131_v31, %v10141_v21 }
0x1898   : > { %v8133_v30 = vpop.eup %8132  ;;  %7617 = vmatpush3.bf16.msra.mxu1 %v5431_v28  ;;  %7618 = vmatprep.mubr.msk.bf16.mxu1 %vm8499_vm0, %v8498_v0 }
0x1899   : > { %v5167_v29 = vmul.f32 %v8133_v30, %v10143_v9  ;;  %7628 = vmatprep.subr.bf16.mxu1 %v8498_v0  ;;  %v5176_v2 = vpack.c.bf16 %v5168_v42, %v5168_v42 }
0x189b   : > { %v5154_v57 = vpop.xlane.xlu1 %5153  ;;  %v5175_v8 = vpack.c.bf16 %v5167_v29, %v5167_v29 }
0x189c   : > { %v8135_v7 = vpop.eup %8134  ;;  %8136 = vrcp.f32 %v5154_v57 }
0x189d   : > { %7613 = vmatmul.mubr.msk.bf16.vlgmr.msra.gmra.mrb[152].mxu0 %vm1648_vm5, %v5175_v8  ;;  %v5169_v21 = vmul.f32 %v8135_v7, %v10150_v61  ;;  %v7946_v61 = vld [vmem:[%s10565_s6 + $0x20] sm:$0xff]  }
0x189e   : > { %7623 = vmatpush3.bf16.msra.mxu0 %v5480_v58  ;;  %7624 = vmatprep.mubr.msk.bf16.mxu0 %vm8499_vm0, %v8498_v0 }
0x189f   : > { %7619 = vmatmul.mubr.msk.bf16.vlgmr.msra.gmra.mrb[156].mxu1 %vm1648_vm5, %v5176_v2  ;;  %v5524_v9 = vpop.permute.xlu1 %5523  ;;  %v5177_v60 = vpack.c.bf16 %v5169_v21, %v5169_v21  ;;  %7634 = vmatprep.subr.bf16.mxu0 %v7946_v61 }
0x18a0   : > { %v5529_v56 = vsel %vm1756_vm4, %v5524_v9, 0  ;;  %7630 = vmatprep.mubr.msk.bf16.mxu1 %vm8499_vm0, %v8498_v0 }
0x18a1   : > { %7629 = vmatpush3.bf16.msra.mxu1 %v5529_v56 }
0x18a5   : > { %7625 = vmatmul.mubr.msk.bf16.vlgmr.msra.gmra.mrb[156].mxu0 %vm1648_vm5, %v5177_v60 }
0x18a6   : > { %v8137_v26 = vpop.eup %8136  ;;  %7635 = vmatpush3.bf16.msra.mxu0 %v7946_v61 }
0x18a7   : > { %v5170_v59 = vmul.f32 %v8137_v26, %v10154_v1  ;;  %7636 = vmatprep.subr.bf16.mxu0 %v7947_v33  ;;  %v7948_v1 = vld [vmem:[%s10565_s6 + $0x30] sm:$0xff]  }
0x18a9   : > { %v5178_v45 = vpack.c.bf16 %v5170_v59, %v5170_v59 }
0x18aa   : > { %7637 = vmatpush3.bf16.msra.mxu0 %v7947_v33 }
0x18ab   : > { %7631 = vmatmul.mubr.msk.bf16.vlgmr.msra.gmra.mrb[160].mxu1 %vm1648_vm5, %v5178_v45  ;;  %7638 = vmatprep.subr.bf16.mxu0 %v7948_v1 }
0x18ae   : > { %7639 = vmatpush3.bf16.msra.mxu0 %v7948_v1 }
0x18af   : > { %7640 = vmatprep.subr.bf16.mxu0 %v7949_v35 }
0x18b2   : > { %7641 = vmatpush3.bf16.msra.mxu0 %v7949_v35 }
0x1933   : > { %v5222_v17 = vpop.f32.mrb[144].mxu0 }
0x1934   : > { %v7590_v53 = vpop.f32.mrb[145].mxu0 }
0x1935   : > { %v5225_v32 = vpop.f32.mrb[146].mxu0  ;;  %v5271_v24 = vpop.f32.mrb[148].mxu1 }
0x1936   : > { %v7876_v5 = vpack.i.bf16 %v5271_v24, %v5222_v17  ;;  %v7591_v37 = vpop.f32.mrb[147].mxu0  ;;  %v7596_v13 = vpop.f32.mrb[149].mxu1 }
0x1937   : > { %v5274_v43 = vpop.f32.mrb[150].mxu1 }
0x1938   : > { %v7597_v4 = vpop.f32.mrb[151].mxu1  ;;  %7877 = vrot.lane.b32.xlu0 %v7876_v5, %s8503_s21 }
0x193b   : > { %v5320_v48 = vpop.f32.mrb[148].mxu0 }
0x193c   : > { %v7602_v6 = vpop.f32.mrb[149].mxu0 }
0x193d   : > { %v5323_v19 = vpop.f32.mrb[150].mxu0  ;;  %v5624_v6 = vld [vmem:[#allocation14 + $0x20] ss:$0 sm:$0xff] }
0x193e   : > { %v7603_v23 = vpop.f32.mrb[151].mxu0 }
0x196a   : > { %v5369_v3 = vpop.f32.mrb[152].mxu1 }
0x196b   : > { %v7881_v49 = vpack.i.bf16 %v5369_v3, %v5320_v48  ;;  %v7608_v46 = vpop.f32.mrb[153].mxu1 }
0x196c   : > { %v5372_v47 = vpop.f32.mrb[154].mxu1 }
0x196d   : > { %v7609_v10 = vpop.f32.mrb[155].mxu1  ;;  %7882 = vrot.lane.b32.xlu1 %v7881_v49, %s8503_s21 }
0x1970   : > { %v5418_v11 = vpop.f32.mrb[152].mxu0 }
0x1971   : > { %v7614_v36 = vpop.f32.mrb[153].mxu0 }
0x1972   : > { %v5421_v39 = vpop.f32.mrb[154].mxu0  ;;  %v5467_v27 = vpop.f32.mrb[156].mxu1 }
0x1973   : > { %v7886_v38 = vpack.i.bf16 %v5467_v27, %v5418_v11  ;;  %v7615_v50 = vpop.f32.mrb[155].mxu0  ;;  %v7620_v52 = vpop.f32.mrb[157].mxu1 }
0x1974   : > { %v5470_v31 = vpop.f32.mrb[158].mxu1 }
0x1975   : > { %v7621_v28 = vpop.f32.mrb[159].mxu1  ;;  %7887 = vrot.lane.b32.xlu0 %v7886_v38, %s8503_s21 }
0x1978   : > { %v5516_v30 = vpop.f32.mrb[156].mxu0 }
0x1979   : > { %v7626_v42 = vpop.f32.mrb[157].mxu0 }
0x197a   : > { %v5519_v29 = vpop.f32.mrb[158].mxu0 }
0x197b   : > { %v7627_v25 = vpop.f32.mrb[159].mxu0 }
0x197e   : > { %v5565_v57 = vpop.f32.mrb[160].mxu1 }
0x197f   : > { %v7891_v8 = vpack.i.bf16 %v5565_v57, %v5516_v30  ;;  %v7632_v7 = vpop.f32.mrb[161].mxu1 }
0x1980   : > { %v5568_v58 = vpop.f32.mrb[162].mxu1 }
0x1981   : > { %v7633_v2 = vpop.f32.mrb[163].mxu1  ;;  %7892 = vrot.lane.b32.xlu1 %v7891_v8, %s8503_s21  ;;  %s10464_s21 = scalar_lea.hbm %s10568_s2, %s6950_s7 }
0x19aa   : > { %v7878_v21 = vpop.permute.xlu0 %7877 }
0x19ab   : > { %v7880_v9 = vunpack.i.h.bf16 %v7878_v21  ;;  %v7879_v56 = vunpack.i.l.bf16 %v7878_v21 }
0x19ad   : > { %v5604_v60 = vsel %vm1258_vm3, %v10064_v18, %v7880_v9  ;;  %v5603_v26 = vsel %vm1258_vm3, %v10062_v40, %v7879_v56 }
0x19ae   : > { %v5611_v59 = vpack.c.bf16 %v5604_v60, %v5603_v26 }
0x19b0   : > { %7642 = vmatprep.mubr.msk.bf16.mxu0 %vm805_vm2, %v5611_v59 }
0x19df   : > { %v7883_v45 = vpop.permute.xlu1 %7882 }
0x19e0   : > { %v7885_v61 = vunpack.i.h.bf16 %v7883_v45  ;;  %v7884_v33 = vunpack.i.l.bf16 %v7883_v45 }
0x19e2   : > { %v5606_v17 = vsel %vm1258_vm3, %v10068_v20, %v7885_v61  ;;  %v5605_v53 = vsel %vm1258_vm3, %v10066_v55, %v7884_v33 }
0x19e3   : > { %v5612_v1 = vpack.c.bf16 %v5606_v17, %v5605_v53 }
0x19e5   : > { %7643 = vmatmul.mubr.msk.bf16.vlgmr.msra.gmra.mrb[160].mxu0 %vm805_vm2, %v5612_v1 }
0x19e7   : > { %v7888_v32 = vpop.permute.xlu0 %7887 }
0x19e8   : > { %v7890_v18 = vunpack.i.h.bf16 %v7888_v32  ;;  %v7889_v24 = vunpack.i.l.bf16 %v7888_v32 }
0x19ea   : > { %v5608_v40 = vsel %vm1258_vm3, %v10072_v62, %v7890_v18  ;;  %v5607_v5 = vsel %vm1258_vm3, %v10070_v63, %v7889_v24 }
0x19eb   : > { %v5613_v37 = vpack.c.bf16 %v5608_v40, %v5607_v5 }
0x19ed   : > { %7646 = vmatprep.mubr.msk.bf16.mxu0 %vm805_vm2, %v5613_v37 }
0x19f3   : > { %v7893_v13 = vpop.permute.xlu1 %7892 }
0x19f4   : > { %v7895_v20 = vunpack.i.h.bf16 %v7893_v13  ;;  %v7894_v43 = vunpack.i.l.bf16 %v7893_v13 }
0x19f6   : > { %v5610_v55 = vsel %vm1258_vm3, %v10076_v54, %v7895_v20  ;;  %v5609_v4 = vsel %vm1258_vm3, %v10074_v51, %v7894_v43 }
0x19f7   : > { %v5614_v48 = vpack.c.bf16 %v5610_v55, %v5609_v4 }
0x19f9   : > { %7647 = vmatmul.mubr.msk.bf16.gmra.mrb[164].mxu0 %vm805_vm2, %v5614_v48 }
0x1ab8   : > { %v7644_v62 = vpop.f32.mrb[160].mxu0 }
0x1ab9   : > { %v5695_v19 = vpop.f32.mrb[161].mxu0  ;;  %v5704_v23 = vadd.f32 %v7644_v62, %v5624_v6 }
0x1aba   : > { %v5696_v63 = vadd.f32 %v5695_v19, %v5624_v6  ;;  %v7645_v35 = vpop.f32.mrb[162].mxu0 }
0x1abb   : > { %v5698_v3 = vpop.f32.mrb[163].mxu0  ;;  %v5728_v47 = vadd.f32 %v5704_v23, %v9722_v44  ;;  %v5707_v10 = vadd.f32 %v7645_v35, %v5624_v6 }
0x1abc   : > { %v5726_v49 = vadd.f32 %v5696_v63, %v9710_v22  ;;  %v5699_v46 = vadd.f32 %v5698_v3, %v5624_v6 }
0x1abd   : > { %v5729_v36 = vadd.f32 %v5707_v10, %v9720_v14  ;;  %v5742_v39 = vsel %vm805_vm2, %v5728_v47, 0.0  ;;  %v7950_v10 = vld [vmem:[%s10566_s11 + $0x20] sm:$0xff]  }
0x1abe   : > { %v5727_v54 = vadd.f32 %v5699_v46, %v9712_v34  ;;  %v5736_v51 = vsel %vm805_vm2, %v5726_v49, 0.0  ;;  %7650 = vmatprep.subr.bf16.mxu1 %v7950_v10 }
0x1abf   : > { %5737 = vadd.xlane.f32.xlu0 %v5736_v51  ;;  %v5745_v27 = vsel %vm805_vm2, %v5729_v36, 0.0  ;;  %7651 = vmatpush3.bf16.msra.mxu1 %v7950_v10  ;;  %v7952_v51 = vld [vmem:[%s10566_s11 + $0x30] sm:$0xff]  }
0x1ac0   : > { %v5739_v11 = vsel %vm805_vm2, %v5727_v54, 0.0 }
0x1ac1   : > { %5740 = vadd.xlane.f32.xlu1 %v5739_v11  ;;  %v7953_v11 = vld [vmem:[%s10566_s11 + $0x38] sm:$0xff]  }
0x1ac3   : > { %5743 = vadd.xlane.f32.xlu0 %v5742_v39  ;;  %v7955_v39 = vld [vmem:[#allocation13 + $0x28] sm:$0xff]  }
0x1ac7   : > { %5746 = vadd.xlane.f32.xlu0 %v5745_v27 }
0x1acc   : > { %v7648_v22 = vpop.f32.mrb[164].mxu0 }
0x1acd   : > { %v5711_v38 = vpop.f32.mrb[165].mxu0  ;;  %v5720_v44 = vadd.f32 %v7648_v22, %v5624_v6 }
0x1ace   : > { %v5712_v50 = vadd.f32 %v5711_v38, %v5624_v6  ;;  %v7649_v52 = vpop.f32.mrb[166].mxu0 }
0x1acf   : > { %v5714_v34 = vpop.f32.mrb[167].mxu0  ;;  %v5723_v28 = vadd.f32 %v7649_v52, %v5624_v6  ;;  %v5732_v42 = vadd.f32 %v5720_v44, %v9742_v12 }
0x1ad0   : > { %v5730_v31 = vadd.f32 %v5712_v50, %v9730_v41  ;;  %v5715_v30 = vadd.f32 %v5714_v34, %v5624_v6 }
0x1ad1   : > { %v5733_v25 = vadd.f32 %v5723_v28, %v9740_v15  ;;  %v5754_v8 = vsel %vm805_vm2, %v5732_v42, 0.0 }
0x1ad2   : > { %v5731_v14 = vadd.f32 %v5715_v30, %v9732_v16  ;;  %v5748_v29 = vsel %vm805_vm2, %v5730_v31, 0.0 }
0x1ad3   : > { %5749 = vadd.xlane.f32.xlu0 %v5748_v29  ;;  %v5757_v7 = vsel %vm805_vm2, %v5733_v25, 0.0 }
0x1ad4   : > { %v5751_v57 = vsel %vm805_vm2, %v5731_v14, 0.0 }
0x1ad5   : > { %5752 = vadd.xlane.f32.xlu1 %v5751_v57 }
0x1ad7   : > { %5755 = vadd.xlane.f32.xlu0 %v5754_v8 }
0x1ad9   : > { %5758 = vadd.xlane.f32.xlu1 %v5757_v7 }
0x1b4c   : > { %v5738_v41 = vpop.xlane.xlu0 %5737 }
0x1b4d   : > { %v5760_v58 = vmul.f32 0.015625, %v5738_v41 }
0x1b4e   : > { %v5741_v2 = vpop.xlane.xlu1 %5740 }
0x1b4f   : > { %v10252_v12 = vsub.f32 %v5726_v49, %v5760_v58  ;;  %v5761_v16 = vmul.f32 0.015625, %v5741_v2  ;;  %v5735_v2 = vld [vmem:[#allocation14 + $0x22] ss:$0 sm:$0xff] }
0x1b50   : > { %v5744_v21 = vpop.xlane.xlu0 %5743 }
0x1b51   : > { %v10254_v9 = vsub.f32 %v5727_v54, %v5761_v16  ;;  %v5762_v56 = vmul.f32 0.015625, %v5744_v21  ;;  %v5776_v15 = vmul.f32 %v10252_v12, %v10252_v12  ;;  %v7951_v54 = vld [vmem:[%s10566_s11 + $0x28] sm:$0xff]  }
0x1b52   : > { %7652 = vmatprep.subr.bf16.mxu1 %v7951_v54 }
0x1b53   : > { %v10258_v60 = vsub.f32 %v5728_v47, %v5762_v56  ;;  %v5784_v26 = vsel %vm805_vm2, %v5776_v15, 0.0  ;;  %v5777_v59 = vmul.f32 %v10254_v9, %v10254_v9  ;;  %7653 = vmatpush3.bf16.msra.mxu1 %v7951_v54 }
0x1b54   : > { %5785 = vadd.xlane.f32.xlu0 %v5784_v26  ;;  %v5747_v45 = vpop.xlane.xlu0 %5746  ;;  %7654 = vmatprep.subr.bf16.mxu1 %v7952_v51 }
0x1b55   : > { %v5763_v61 = vmul.f32 0.015625, %v5747_v45  ;;  %v5787_v33 = vsel %vm805_vm2, %v5777_v59, 0.0  ;;  %v5778_v17 = vmul.f32 %v10258_v60, %v10258_v60 }
0x1b56   : > { %5788 = vadd.xlane.f32.xlu1 %v5787_v33 }
0x1b57   : > { %v10266_v53 = vsub.f32 %v5729_v36, %v5763_v61  ;;  %v5790_v1 = vsel %vm805_vm2, %v5778_v17, 0.0  ;;  %7655 = vmatpush3.bf16.msra.mxu1 %v7952_v51  ;;  %v7954_v36 = vld [vmem:[#allocation13 + $0x20] sm:$0xff]  }
0x1b58   : > { %5791 = vadd.xlane.f32.xlu0 %v5790_v1  ;;  %7656 = vmatprep.subr.bf16.mxu1 %v7953_v11 }
0x1b59   : > { %v5779_v32 = vmul.f32 %v10266_v53, %v10266_v53  ;;  %7666 = vmatprep.subr.bf16.mxu0 %v7954_v36 }
0x1b5a   : > { %7667 = vmatpush3.bf16.msra.mxu0 %v7954_v36 }
0x1b5b   : > { %v5793_v18 = vsel %vm805_vm2, %v5779_v32, 0.0  ;;  %7657 = vmatpush3.bf16.msra.mxu1 %v7953_v11  ;;  %7668 = vmatprep.subr.bf16.mxu0 %v7955_v39 }
0x1b5c   : > { %5794 = vadd.xlane.f32.xlu1 %v5793_v18  ;;  %7682 = vmatprep.subr.bf16.mxu1 %v8498_v0 }
0x1b5e   : > { %7669 = vmatpush3.bf16.msra.mxu0 %v7955_v39 }
0x1b60   : > { %v5750_v24 = vpop.xlane.xlu0 %5749 }
0x1b61   : > { %v5764_v40 = vmul.f32 0.015625, %v5750_v24 }
0x1b62   : > { %v5753_v5 = vpop.xlane.xlu1 %5752 }
0x1b63   : > { %v10272_v37 = vsub.f32 %v5730_v31, %v5764_v40  ;;  %v5765_v13 = vmul.f32 0.015625, %v5753_v5 }
0x1b64   : > { %v5756_v20 = vpop.xlane.xlu0 %5755 }
0x1b65   : > { %v10274_v43 = vsub.f32 %v5731_v14, %v5765_v13  ;;  %v5766_v55 = vmul.f32 0.015625, %v5756_v20  ;;  %v5780_v4 = vmul.f32 %v10272_v37, %v10272_v37 }
0x1b66   : > { %v5759_v48 = vpop.xlane.xlu1 %5758 }
0x1b67   : > { %v10278_v6 = vsub.f32 %v5732_v42, %v5766_v55  ;;  %v5767_v62 = vmul.f32 0.015625, %v5759_v48  ;;  %v5796_v19 = vsel %vm805_vm2, %v5780_v4, 0.0  ;;  %v5781_v23 = vmul.f32 %v10274_v43, %v10274_v43 }
0x1b68   : > { %5797 = vadd.xlane.f32.xlu0 %v5796_v19 }
0x1b69   : > { %v10283_v63 = vsub.f32 %v5733_v25, %v5767_v62  ;;  %v5799_v35 = vsel %vm805_vm2, %v5781_v23, 0.0  ;;  %v5782_v3 = vmul.f32 %v10278_v6, %v10278_v6  ;;  %v5734_v25 = vld [vmem:[#allocation14 + $0x21] ss:$0 sm:$0xff] }
0x1b6a   : > { %5800 = vadd.xlane.f32.xlu1 %v5799_v35 }
0x1b6b   : > { %v5802_v49 = vsel %vm805_vm2, %v5782_v3, 0.0  ;;  %v5783_v46 = vmul.f32 %v10283_v63, %v10283_v63 }
0x1b6c   : > { %5803 = vadd.xlane.f32.xlu0 %v5802_v49 }
0x1b6d   : > { %v5805_v47 = vsel %vm805_vm2, %v5783_v46, 0.0 }
0x1b6e   : > { %5806 = vadd.xlane.f32.xlu1 %v5805_v47 }
0x1be1   : > { %v5786_v27 = vpop.xlane.xlu0 %5785 }
0x1be2   : > { %v5808_v22 = vmul.f32 0.015625, %v5786_v27  ;;  %v7957_v27 = vld [vmem:[#allocation13 + $0x38] sm:$0xff]  }
0x1be3   : > { %v5789_v38 = vpop.xlane.xlu1 %5788 }
0x1be4   : > { %v5816_v44 = vadd.f32 1e-05, %v5808_v22  ;;  %v5809_v50 = vmul.f32 0.015625, %v5789_v38  ;;  %v5869_v22 = vld [vmem:[#allocation14 + $0x23] ss:$0 sm:$0xff] }
0x1be5   : > { %v5792_v52 = vpop.xlane.xlu0 %5791 }
0x1be6   : > { %8138 = vrsqrt.f32 %v5816_v44  ;;  %v5817_v34 = vadd.f32 1e-05, %v5809_v50  ;;  %v5810_v31 = vmul.f32 0.015625, %v5792_v52 }
0x1be8   : > { %8140 = vrsqrt.f32 %v5817_v34  ;;  %v5818_v28 = vadd.f32 1e-05, %v5810_v31 }
0x1be9   : > { %v5795_v30 = vpop.xlane.xlu1 %5794 }
0x1bea   : > { %8142 = vrsqrt.f32 %v5818_v28  ;;  %v5811_v42 = vmul.f32 0.015625, %v5795_v30 }
0x1bec   : > { %v5819_v14 = vadd.f32 1e-05, %v5811_v42 }
0x1bee   : > { %8144 = vrsqrt.f32 %v5819_v14 }
0x1bf0   : > { %v8139_v29 = vpop.eup %8138 }
0x1bf1   : > { %v5832_v57 = vmul.f32 %v8139_v29, %v10252_v12 }
0x1bf2   : > { %v8141_v8 = vpop.eup %8140 }
0x1bf3   : > { %v5833_v7 = vmul.f32 %v8141_v8, %v10254_v9  ;;  %v5840_v41 = vmul.f32 %v5832_v57, %v5734_v25 }
0x1bf4   : > { %v8143_v58 = vpop.eup %8142 }
0x1bf5   : > { %v5834_v16 = vmul.f32 %v8143_v58, %v10258_v60  ;;  %v5798_v21 = vpop.xlane.xlu0 %5797  ;;  %v5841_v56 = vmul.f32 %v5833_v7, %v5734_v25  ;;  %v10308_v59 = vadd.f32 %v5840_v41, %v5735_v2 }
0x1bf6   : > { %v5812_v15 = vmul.f32 0.015625, %v5798_v21 }
0x1bf7   : > { %v5801_v26 = vpop.xlane.xlu1 %5800  ;;  %v10310_v45 = vadd.f32 %v5841_v56, %v5735_v2  ;;  %v5842_v12 = vmul.f32 %v5834_v16, %v5734_v25 }
0x1bf8   : > { %v8145_v61 = vpop.eup %8144  ;;  %v5820_v33 = vadd.f32 1e-05, %v5812_v15  ;;  %v5813_v17 = vmul.f32 0.015625, %v5801_v26 }
0x1bf9   : > { %v5835_v1 = vmul.f32 %v8145_v61, %v10266_v53  ;;  %v5804_v9 = vpop.xlane.xlu0 %5803  ;;  %v5856_v32 = vpack.c.bf16 %v10310_v45, %v10308_v59  ;;  %v10316_v20 = vadd.f32 %v5842_v12, %v5735_v2 }
0x1bfa   : > { %8146 = vrsqrt.f32 %v5820_v33  ;;  %v5821_v60 = vadd.f32 1e-05, %v5813_v17  ;;  %v5814_v18 = vmul.f32 0.015625, %v5804_v9  ;;  %v5992_v9 = vld [vmem:[#allocation14 + $0x24] ss:$0 sm:$0xff] }
0x1bfb   : > { %v5843_v24 = vmul.f32 %v5835_v1, %v5734_v25  ;;  %v5807_v40 = vpop.xlane.xlu1 %5806  ;;  %7658 = vmatprep.mubr.msk.bf16.mxu1 %vm805_vm2, %v5856_v32 }
0x1bfc   : > { %8148 = vrsqrt.f32 %v5821_v60  ;;  %v5822_v5 = vadd.f32 1e-05, %v5814_v18  ;;  %v5815_v13 = vmul.f32 0.015625, %v5807_v40 }
0x1bfd   : > { %v10318_v55 = vadd.f32 %v5843_v24, %v5735_v2 }
0x1bfe   : > { %8150 = vrsqrt.f32 %v5822_v5  ;;  %v5823_v53 = vadd.f32 1e-05, %v5815_v13 }
0x1bff   : > { %v5857_v4 = vpack.c.bf16 %v10318_v55, %v10316_v20 }
0x1c00   : > { %8152 = vrsqrt.f32 %v5823_v53 }
0x1c01   : > { %7659 = vmatmul.mubr.msk.bf16.vlgmr.msra.gmra.mrb[164].mxu1 %vm805_vm2, %v5857_v4 }
0x1c04   : > { %v8147_v48 = vpop.eup %8146 }
0x1c05   : > { %v5836_v62 = vmul.f32 %v8147_v48, %v10272_v37 }
0x1c06   : > { %v8149_v19 = vpop.eup %8148 }
0x1c07   : > { %v5837_v23 = vmul.f32 %v8149_v19, %v10274_v43  ;;  %v5844_v35 = vmul.f32 %v5836_v62, %v5734_v25 }
0x1c08   : > { %v8151_v3 = vpop.eup %8150 }
0x1c09   : > { %v5838_v49 = vmul.f32 %v8151_v3, %v10278_v6  ;;  %v5845_v46 = vmul.f32 %v5837_v23, %v5734_v25  ;;  %v10327_v54 = vadd.f32 %v5844_v35, %v5735_v2 }
0x1c0a   : > { %v8153_v47 = vpop.eup %8152 }
0x1c0b   : > { %v5839_v10 = vmul.f32 %v8153_v47, %v10283_v63  ;;  %v10329_v51 = vadd.f32 %v5845_v46, %v5735_v2  ;;  %v5846_v11 = vmul.f32 %v5838_v49, %v5734_v25  ;;  %v7956_v63 = vld [vmem:[#allocation13 + $0x30] sm:$0xff]  }
0x1c0c   : > { %7670 = vmatprep.subr.bf16.mxu0 %v7956_v63 }
0x1c0d   : > { %v5858_v36 = vpack.c.bf16 %v10329_v51, %v10327_v54  ;;  %v5847_v37 = vmul.f32 %v5839_v10, %v5734_v25  ;;  %v10334_v43 = vadd.f32 %v5846_v11, %v5735_v2  ;;  %7671 = vmatpush3.bf16.msra.mxu0 %v7956_v63 }
0x1c0e   : > { %7672 = vmatprep.subr.bf16.mxu0 %v7957_v27 }
0x1c0f   : > { %7662 = vmatprep.mubr.msk.bf16.mxu1 %vm805_vm2, %v5858_v36  ;;  %v10336_v39 = vadd.f32 %v5847_v37, %v5735_v2 }
0x1c11   : > { %v5859_v6 = vpack.c.bf16 %v10336_v39, %v10334_v43  ;;  %7673 = vmatpush3.bf16.msra.mxu0 %v7957_v27 }
0x1c12   : > { %7694 = vmatprep.subr.bf16.mxu0 %v8498_v0 }
0x1c13   : > { %7663 = vmatmul.mubr.msk.bf16.gmra.mrb[168].mxu1 %vm805_vm2, %v5859_v6 }
0x1c14   : > { %7690 = vmatprep.mubr.msk.bf16.mxu1 %vm8499_vm0, %v8498_v0 }
0x1cd4   : > { %v7660_v38 = vpop.f32.mrb[164].mxu1 }
0x1cd5   : > { %v5949_v44 = vadd.f32 %v7660_v38, %v5869_v22  ;;  %v5940_v50 = vpop.f32.mrb[165].mxu1 }
0x1cd6   : > { %v5941_v52 = vadd.f32 %v5940_v50, %v5869_v22  ;;  %v7661_v34 = vpop.f32.mrb[166].mxu1 }
0x1cd7   : > { %v5952_v31 = vadd.f32 %v7661_v34, %v5869_v22  ;;  %v5943_v28 = vpop.f32.mrb[167].mxu1  ;;  %v5973_v42 = vmax.f32 %v5949_v44, 0.0 }
0x1cd8   : > { %v5944_v30 = vadd.f32 %v5943_v28, %v5869_v22  ;;  %v5971_v29 = vmax.f32 %v5941_v52, 0.0 }
0x1cd9   : > { %v5974_v14 = vmax.f32 %v5952_v31, 0.0 }
0x1cda   : > { %v5972_v25 = vmax.f32 %v5944_v30, 0.0 }
0x1cdb   : > { %v5980_v57 = vpack.c.bf16 %v5974_v14, %v5973_v42 }
0x1cdc   : > { %v5979_v8 = vpack.c.bf16 %v5972_v25, %v5971_v29 }
0x1cde   : > { %7674 = vmatprep.mubr.msk.bf16.mxu0 %vm805_vm2, %v5979_v8 }
0x1cdf   : > { %7675 = vmatmul.mubr.msk.bf16.vlgmr.msra.gmra.mrb[168].mxu0 %vm805_vm2, %v5980_v57 }
0x1ce6   : > { %v7664_v7 = vpop.f32.mrb[168].mxu1 }
0x1ce7   : > { %v5965_v41 = vadd.f32 %v7664_v7, %v5869_v22  ;;  %v5956_v58 = vpop.f32.mrb[169].mxu1 }
0x1ce8   : > { %v5957_v2 = vadd.f32 %v5956_v58, %v5869_v22  ;;  %v7665_v16 = vpop.f32.mrb[170].mxu1 }
0x1ce9   : > { %v5968_v21 = vadd.f32 %v7665_v16, %v5869_v22  ;;  %v5959_v56 = vpop.f32.mrb[171].mxu1  ;;  %v5977_v26 = vmax.f32 %v5965_v41, 0.0 }
0x1cea   : > { %v5960_v15 = vadd.f32 %v5959_v56, %v5869_v22  ;;  %v5975_v33 = vmax.f32 %v5957_v2, 0.0 }
0x1ceb   : > { %v5978_v61 = vmax.f32 %v5968_v21, 0.0 }
0x1cec   : > { %v5976_v17 = vmax.f32 %v5960_v15, 0.0 }
0x1ced   : > { %v5982_v12 = vpack.c.bf16 %v5978_v61, %v5977_v26 }
0x1cee   : > { %v5981_v1 = vpack.c.bf16 %v5976_v17, %v5975_v33 }
0x1cf0   : > { %7678 = vmatprep.mubr.msk.bf16.mxu0 %vm805_vm2, %v5981_v1 }
0x1cf1   : > { %7679 = vmatmul.mubr.msk.bf16.gmra.mrb[172].mxu0 %vm805_vm2, %v5982_v12 }
0x1cf2   : > { %7710 = vmatprep.mubr.msk.bf16.mxu0 %vm8499_vm0, %v8498_v0 }
0x1db2   : > { %v7676_v32 = vpop.f32.mrb[168].mxu0 }
0x1db3   : > { %v6072_v60 = vadd.f32 %v7676_v32, %v5992_v9  ;;  %v6063_v18 = vpop.f32.mrb[169].mxu0 }
0x1db4   : > { %v6064_v24 = vadd.f32 %v6063_v18, %v5992_v9  ;;  %v7677_v40 = vpop.f32.mrb[170].mxu0 }
0x1db5   : > { %v6096_v5 = vadd.f32 %v6072_v60, %v10316_v20  ;;  %v6075_v13 = vadd.f32 %v7677_v40, %v5992_v9  ;;  %v6066_v53 = vpop.f32.mrb[171].mxu0 }
0x1db6   : > { %v6094_v4 = vadd.f32 %v6064_v24, %v10308_v59  ;;  %v6067_v48 = vadd.f32 %v6066_v53, %v5992_v9 }
0x1db7   : > { %v6097_v62 = vadd.f32 %v6075_v13, %v10318_v55  ;;  %v6110_v19 = vsel %vm805_vm2, %v6096_v5, 0.0 }
0x1db8   : > { %v6095_v23 = vadd.f32 %v6067_v48, %v10310_v45  ;;  %6111 = vadd.xlane.f32.xlu1 %v6110_v19  ;;  %v6104_v35 = vsel %vm805_vm2, %v6094_v4, 0.0  ;;  %v7958_v48 = vld [vmem:[#allocation8] sm:$0xff]   ;;  %v7960_v19 = vld [vmem:[#allocation8 + $0x10] sm:$0xff]  }
0x1db9   : > { %6105 = vadd.xlane.f32.xlu0 %v6104_v35  ;;  %v6113_v3 = vsel %vm805_vm2, %v6097_v62, 0.0  ;;  %7683 = vmatpush3.bf16.msra.mxu1 %v7958_v48 }
0x1dba   : > { %v6107_v20 = vsel %vm805_vm2, %v6095_v23, 0.0  ;;  %7684 = vmatprep.subr.bf16.mxu1 %v8498_v0 }
0x1dbc   : > { %6114 = vadd.xlane.f32.xlu1 %v6113_v3 }
0x1dbd   : > { %6108 = vadd.xlane.f32.xlu0 %v6107_v20 }
0x1dc4   : > { %v7680_v49 = vpop.f32.mrb[172].mxu0 }
0x1dc5   : > { %v6079_v46 = vpop.f32.mrb[173].mxu0  ;;  %v6088_v59 = vadd.f32 %v7680_v49, %v5992_v9 }
0x1dc6   : > { %v6080_v47 = vadd.f32 %v6079_v46, %v5992_v9  ;;  %v7681_v10 = vpop.f32.mrb[174].mxu0 }
0x1dc7   : > { %v6082_v55 = vpop.f32.mrb[175].mxu0  ;;  %v6091_v36 = vadd.f32 %v7681_v10, %v5992_v9  ;;  %v6100_v37 = vadd.f32 %v6088_v59, %v10334_v43 }
0x1dc8   : > { %v6098_v11 = vadd.f32 %v6080_v47, %v10327_v54  ;;  %v6083_v45 = vadd.f32 %v6082_v55, %v5992_v9 }
0x1dc9   : > { %v6101_v27 = vadd.f32 %v6091_v36, %v10336_v39  ;;  %v6122_v38 = vsel %vm805_vm2, %v6100_v37, 0.0 }
0x1dca   : > { %v6099_v6 = vadd.f32 %v6083_v45, %v10329_v51  ;;  %v6116_v63 = vsel %vm805_vm2, %v6098_v11, 0.0 }
0x1dcb   : > { %6117 = vadd.xlane.f32.xlu0 %v6116_v63  ;;  %v6125_v44 = vsel %vm805_vm2, %v6101_v27, 0.0 }
0x1dcc   : > { %v6119_v22 = vsel %vm805_vm2, %v6099_v6, 0.0 }
0x1dcd   : > { %6120 = vadd.xlane.f32.xlu1 %v6119_v22 }
0x1dcf   : > { %6123 = vadd.xlane.f32.xlu0 %v6122_v38 }
0x1dd1   : > { %6126 = vadd.xlane.f32.xlu1 %v6125_v44 }
0x1e45   : > { %v6112_v54 = vpop.xlane.xlu1 %6111 }
0x1e46   : > { %v6130_v50 = vmul.f32 0.015625, %v6112_v54  ;;  %v6106_v52 = vpop.xlane.xlu0 %6105 }
0x1e47   : > { %v6128_v43 = vmul.f32 0.015625, %v6106_v52  ;;  %v6102_v52 = vld [vmem:[#allocation14 + $0x25] ss:$0 sm:$0xff] }
0x1e48   : > { %v10366_v34 = vsub.f32 %v6096_v5, %v6130_v50 }
0x1e49   : > { %v10368_v51 = vsub.f32 %v6094_v4, %v6128_v43  ;;  %v6115_v31 = vpop.xlane.xlu1 %6114 }
0x1e4a   : > { %v6131_v28 = vmul.f32 0.015625, %v6115_v31  ;;  %v6109_v39 = vpop.xlane.xlu0 %6108  ;;  %v6146_v30 = vmul.f32 %v10366_v34, %v10366_v34 }
0x1e4b   : > { %v6129_v42 = vmul.f32 0.015625, %v6109_v39  ;;  %v6144_v14 = vmul.f32 %v10368_v51, %v10368_v51 }
0x1e4c   : > { %v10374_v29 = vsub.f32 %v6097_v62, %v6131_v28  ;;  %v6158_v25 = vsel %vm805_vm2, %v6146_v30, 0.0  ;;  %v7959_v62 = vld [vmem:[#allocation8 + $0x8] sm:$0xff]  }
0x1e4d   : > { %v10377_v57 = vsub.f32 %v6095_v23, %v6129_v42  ;;  %6159 = vadd.xlane.f32.xlu1 %v6158_v25  ;;  %v6152_v8 = vsel %vm805_vm2, %v6144_v14, 0.0  ;;  %7685 = vmatpush3.bf16.msra.mxu1 %v7959_v62  ;;  %v7961_v23 = vld [vmem:[#allocation8 + $0x18] sm:$0xff]   ;;  %v6103_v42 = vld [vmem:[#allocation14 + $0x26] ss:$0 sm:$0xff] }
0x1e4e   : > { %6153 = vadd.xlane.f32.xlu0 %v6152_v8  ;;  %v6147_v7 = vmul.f32 %v10374_v29, %v10374_v29  ;;  %7686 = vmatprep.subr.bf16.mxu1 %v8498_v0 }
0x1e4f   : > { %v6145_v41 = vmul.f32 %v10377_v57, %v10377_v57 }
0x1e50   : > { %v6161_v58 = vsel %vm805_vm2, %v6147_v7, 0.0 }
0x1e51   : > { %6162 = vadd.xlane.f32.xlu1 %v6161_v58  ;;  %v6155_v2 = vsel %vm805_vm2, %v6145_v41, 0.0  ;;  %7687 = vmatpush3.bf16.msra.mxu1 %v7960_v19 }
0x1e52   : > { %6156 = vadd.xlane.f32.xlu0 %v6155_v2  ;;  %7688 = vmatprep.subr.bf16.mxu1 %v8498_v0 }
0x1e55   : > { %7689 = vmatpush3.bf16.msra.mxu1 %v7961_v23 }
0x1e56   : > { %7714 = vmatprep.subr.bf16.mxu1 %v8498_v0 }
0x1e58   : > { %v6118_v16 = vpop.xlane.xlu0 %6117 }
0x1e59   : > { %v6132_v21 = vmul.f32 0.015625, %v6118_v16 }
0x1e5a   : > { %v6121_v56 = vpop.xlane.xlu1 %6120 }
0x1e5b   : > { %v10386_v15 = vsub.f32 %v6098_v11, %v6132_v21  ;;  %v6133_v26 = vmul.f32 0.015625, %v6121_v56 }
0x1e5c   : > { %v6124_v61 = vpop.xlane.xlu0 %6123 }
0x1e5d   : > { %v10388_v33 = vsub.f32 %v6099_v6, %v6133_v26  ;;  %v6134_v17 = vmul.f32 0.015625, %v6124_v61  ;;  %v6148_v12 = vmul.f32 %v10386_v15, %v10386_v15 }
0x1e5e   : > { %v6127_v1 = vpop.xlane.xlu1 %6126 }
0x1e5f   : > { %v10392_v9 = vsub.f32 %v6100_v37, %v6134_v17  ;;  %v6135_v32 = vmul.f32 0.015625, %v6127_v1  ;;  %v6164_v60 = vsel %vm805_vm2, %v6148_v12, 0.0  ;;  %v6149_v18 = vmul.f32 %v10388_v33, %v10388_v33 }
0x1e60   : > { %6165 = vadd.xlane.f32.xlu0 %v6164_v60 }
0x1e61   : > { %v10397_v24 = vsub.f32 %v6101_v27, %v6135_v32  ;;  %v6167_v40 = vsel %vm805_vm2, %v6149_v18, 0.0  ;;  %v6150_v5 = vmul.f32 %v10392_v9, %v10392_v9 }
0x1e62   : > { %6168 = vadd.xlane.f32.xlu1 %v6167_v40 }
0x1e63   : > { %v6170_v13 = vsel %vm805_vm2, %v6150_v5, 0.0  ;;  %v6151_v53 = vmul.f32 %v10397_v24, %v10397_v24 }
0x1e64   : > { %6171 = vadd.xlane.f32.xlu0 %v6170_v13 }
0x1e65   : > { %v6173_v4 = vsel %vm805_vm2, %v6151_v53, 0.0 }
0x1e66   : > { %6174 = vadd.xlane.f32.xlu1 %v6173_v4 }
0x1eda   : > { %v6160_v35 = vpop.xlane.xlu1 %6159 }
0x1edb   : > { %v6178_v3 = vmul.f32 0.015625, %v6160_v35  ;;  %v6154_v20 = vpop.xlane.xlu0 %6153 }
0x1edc   : > { %v6176_v49 = vmul.f32 0.015625, %v6154_v20 }
0x1edd   : > { %v6186_v46 = vadd.f32 1e-05, %v6178_v3 }
0x1ede   : > { %v6163_v59 = vpop.xlane.xlu1 %6162  ;;  %v6184_v47 = vadd.f32 1e-05, %v6176_v49 }
0x1edf   : > { %v6179_v10 = vmul.f32 0.015625, %v6163_v59  ;;  %v6157_v55 = vpop.xlane.xlu0 %6156  ;;  %8154 = vrsqrt.f32 %v6186_v46 }
0x1ee0   : > { %v6177_v11 = vmul.f32 0.015625, %v6157_v55  ;;  %8156 = vrsqrt.f32 %v6184_v47 }
0x1ee1   : > { %v6187_v36 = vadd.f32 1e-05, %v6179_v10 }
0x1ee2   : > { %v6185_v45 = vadd.f32 1e-05, %v6177_v11 }
0x1ee4   : > { %8158 = vrsqrt.f32 %v6185_v45 }
0x1ee5   : > { %8160 = vrsqrt.f32 %v6187_v36 }
0x1ee9   : > { %v8155_v37 = vpop.eup %8154 }
0x1eea   : > { %v8157_v6 = vpop.eup %8156  ;;  %v6202_v44 = vmul.f32 %v8155_v37, %v10366_v34 }
0x1eeb   : > { %v6200_v43 = vmul.f32 %v8157_v6, %v10368_v51 }
0x1eec   : > { %v6210_v8 = vmul.f32 %v6202_v44, %v6102_v52 }
0x1eed   : > { %v6166_v63 = vpop.xlane.xlu0 %6165  ;;  %v6208_v34 = vmul.f32 %v6200_v43, %v6102_v52 }
0x1eee   : > { %v8159_v27 = vpop.eup %8158  ;;  %v6180_v22 = vmul.f32 0.015625, %v6166_v63  ;;  %v6218_v56 = vadd.f32 %v6210_v8, %v6103_v42 }
0x1eef   : > { %v8161_v38 = vpop.eup %8160  ;;  %v6201_v54 = vmul.f32 %v8159_v27, %v10377_v57  ;;  %v6169_v50 = vpop.xlane.xlu1 %6168  ;;  %v6216_v26 = vadd.f32 %v6208_v34, %v6103_v42 }
0x1ef0   : > { %v6188_v31 = vadd.f32 1e-05, %v6180_v22  ;;  %v6181_v28 = vmul.f32 0.015625, %v6169_v50  ;;  %v6203_v14 = vmul.f32 %v8161_v38, %v10374_v29  ;;  %v6226_v29 = vpack.c.bf16 %v6218_v56, %v6218_v56  ;;  %v7966_v56 = vld [vmem:[%s10567_s10 + $0x20] sm:$0xff]  }
0x1ef1   : > { %v6209_v39 = vmul.f32 %v6201_v54, %v6102_v52  ;;  %v6172_v30 = vpop.xlane.xlu0 %6171  ;;  %v6224_v1 = vpack.c.bf16 %v6216_v26, %v6216_v26  ;;  %v7967_v26 = vld [vmem:[%s10567_s10 + $0x28] sm:$0xff]  }
0x1ef2   : > { %8162 = vrsqrt.f32 %v6188_v31  ;;  %v6189_v25 = vadd.f32 1e-05, %v6181_v28  ;;  %v6182_v41 = vmul.f32 0.015625, %v6172_v30  ;;  %v6211_v16 = vmul.f32 %v6203_v14, %v6102_v52  ;;  %v6240_v30 = vld [vmem:[#allocation14 + $0x27] ss:$0 sm:$0xff] }
0x1ef3   : > { %v6217_v7 = vadd.f32 %v6209_v39, %v6103_v42  ;;  %v6175_v58 = vpop.xlane.xlu1 %6174  ;;  %v6251_v5 = vunpack.c.l.b16 %v6226_v29  ;;  %v6249_v4 = vunpack.c.l.b16 %v6224_v1 }
0x1ef4   : > { %8164 = vrsqrt.f32 %v6189_v25  ;;  %v6183_v57 = vmul.f32 0.015625, %v6175_v58  ;;  %v6190_v2 = vadd.f32 1e-05, %v6182_v41  ;;  %v6219_v61 = vadd.f32 %v6211_v16, %v6103_v42  ;;  %v7962_v41 = vld [vmem:[%s10567_s10] sm:$0xff]   ;;  %v7963_v58 = vld [vmem:[%s10567_s10 + $0x8] sm:$0xff]  }
0x1ef5   : > { %v6225_v21 = vpack.c.bf16 %v6217_v7, %v6217_v7  ;;  %v6260_v49 = vrot.slane %v6251_v5, 6  ;;  %7695 = vmatpush3.bf16.msra.mxu0 %v7962_v41 }
0x1ef6   : > { %v6191_v51 = vadd.f32 1e-05, %v6183_v57  ;;  %8166 = vrsqrt.f32 %v6190_v2  ;;  %v6227_v18 = vpack.c.bf16 %v6219_v61, %v6219_v61  ;;  %7696 = vmatprep.subr.bf16.mxu0 %v8498_v0  ;;  %v7968_v61 = vld [vmem:[%s10567_s10 + $0x30] sm:$0xff]  }
0x1ef7   : > { %v6250_v17 = vunpack.c.l.b16 %v6225_v21  ;;  %v7964_v21 = vld [vmem:[%s10567_s10 + $0x10] sm:$0xff]  }
0x1ef8   : > { %8168 = vrsqrt.f32 %v6191_v51  ;;  %v6252_v35 = vunpack.c.l.b16 %v6227_v18  ;;  %v7965_v51 = vld [vmem:[%s10567_s10 + $0x18] sm:$0xff]  }
0x1ef9   : > { %v6257_v40 = vrot.slane %v6250_v17, 7  ;;  %7697 = vmatpush3.bf16.msra.mxu0 %v7963_v58  ;;  %v7969_v17 = vld [vmem:[%s10567_s10 + $0x38] sm:$0xff]  }
0x1efa   : > { %v6263_v36 = vrot.slane %v6252_v35, 5  ;;  %7698 = vmatprep.subr.bf16.mxu0 %v8498_v0 }
0x1efb   : > { %v6259_v3 = vsel %vm6258_vm6, %v6257_v40, %v6249_v4  ;;  %v6347_v40 = vld [vmem:[#allocation14 + $0x31] ss:$0 sm:$0xff] }
0x1efc   : > { %v8163_v12 = vpop.eup %8162  ;;  %v6262_v10 = vsel %vm6261_vm7, %v6260_v49, %v6259_v3 }
0x1efd   : > { %v6204_v32 = vmul.f32 %v8163_v12, %v10386_v15  ;;  %v6265_v27 = vsel %vm6264_vm8, %v6263_v36, %v6262_v10  ;;  %7699 = vmatpush3.bf16.msra.mxu0 %v7964_v21  ;;  %v7970_v10 = vld [vmem:[#allocation10] sm:$0xff]  }
0x1efe   : > { %v8165_v60 = vpop.eup %8164  ;;  %7700 = vmatprep.subr.bf16.mxu0 %v8498_v0 }
0x1eff   : > { %v6212_v13 = vmul.f32 %v6204_v32, %v6102_v52  ;;  %v6205_v53 = vmul.f32 %v8165_v60, %v10388_v33  ;;  %v6346_v60 = vld [vmem:[#allocation14 + $0x30] ss:$0 sm:$0xff] }
0x1f00   : > { %v8167_v48 = vpop.eup %8166 }
0x1f01   : > { %v6220_v62 = vadd.f32 %v6212_v13, %v6103_v42  ;;  %v6213_v19 = vmul.f32 %v6205_v53, %v6102_v52  ;;  %v6206_v20 = vmul.f32 %v8167_v48, %v10392_v9  ;;  %7701 = vmatpush3.bf16.msra.mxu0 %v7965_v51  ;;  %v6379_v48 = vld [vmem:[#allocation14 + $0x32] ss:$0 sm:$0xff] }
0x1f02   : > { %v8169_v23 = vpop.eup %8168  ;;  %7702 = vmatprep.subr.bf16.mxu0 %v8498_v0 }
0x1f03   : > { %v6228_v15 = vpack.c.bf16 %v6220_v62, %v6220_v62  ;;  %v6221_v46 = vadd.f32 %v6213_v19, %v6103_v42  ;;  %v6207_v59 = vmul.f32 %v8169_v23, %v10397_v24  ;;  %v6214_v47 = vmul.f32 %v6206_v20, %v6102_v52 }
0x1f05   : > { %v6253_v55 = vunpack.c.l.b16 %v6228_v15  ;;  %v6229_v33 = vpack.c.bf16 %v6221_v46, %v6221_v46  ;;  %v6215_v11 = vmul.f32 %v6207_v59, %v6102_v52  ;;  %v6222_v45 = vadd.f32 %v6214_v47, %v6103_v42  ;;  %7703 = vmatpush3.bf16.msra.mxu0 %v7966_v56 }
0x1f06   : > { %7704 = vmatprep.subr.bf16.mxu0 %v8498_v0 }
0x1f07   : > { %v6266_v37 = vrot.slane %v6253_v55, 4  ;;  %v6254_v6 = vunpack.c.l.b16 %v6229_v33  ;;  %v6223_v63 = vadd.f32 %v6215_v11, %v6103_v42  ;;  %v6230_v22 = vpack.c.bf16 %v6222_v45, %v6222_v45  ;;  %v7971_v55 = vld [vmem:[#allocation10 + $0x8] sm:$0xff]   ;;  %v7972_v33 = vld [vmem:[#allocation10 + $0x10] sm:$0xff]   ;;  %v7973_v11 = vld [vmem:[#allocation10 + $0x18] sm:$0xff]  }
0x1f09   : > { %v6268_v9 = vsel %vm6267_vm9, %v6266_v37, %v6265_v27  ;;  %v6269_v38 = vrot.slane %v6254_v6, 3  ;;  %v6231_v44 = vpack.c.bf16 %v6223_v63, %v6223_v63  ;;  %v6255_v54 = vunpack.c.l.b16 %v6230_v22  ;;  %7705 = vmatpush3.bf16.msra.mxu0 %v7967_v26  ;;  %v6468_v63 = vld [vmem:[#allocation14 + $0x33] ss:$0 sm:$0xff]  ;;  %v6469_v22 = vld [vmem:[#allocation14 + $0x34] ss:$0 sm:$0xff] }
0x1f0a   : > { %7706 = vmatprep.subr.bf16.mxu0 %v8498_v0 }
0x1f0b   : > { %v6256_v24 = vunpack.c.l.b16 %v6231_v44  ;;  %v6271_v50 = vsel %vm6270_vm10, %v6269_v38, %v6268_v9  ;;  %v6272_v43 = vrot.slane %v6255_v54, 2 }
0x1f0d   : > { %v6275_v31 = vrot.slane %v6256_v24, 1  ;;  %v6274_v52 = vsel %vm6273_vm11, %v6272_v43, %v6271_v50  ;;  %7707 = vmatpush3.bf16.msra.mxu0 %v7968_v61 }
0x1f0e   : > { %7708 = vmatprep.subr.bf16.mxu0 %v8498_v0 }
0x1f0f   : > { %v6277_v28 = vsel %vm6276_vm12, %v6275_v31, %v6274_v52 }
0x1f10   : > { %v6278_v39 = vpack.c.b16 %v6277_v28, %v6277_v28 }
0x1f11   : > { %7709 = vmatpush3.bf16.msra.mxu0 %v7969_v17 }
0x1f12   : > { %7691 = vmatmul.mubr.msk.bf16.vlgmr.msra.gmra.mrb[172].mxu1 %vm805_vm2, %v6278_v39 }
0x1f13   : > { %7722 = vmatprep.mubr.msk.bf16.mxu1 %vm8499_vm0, %v8498_v0  ;;  %7715 = vmatpush3.bf16.msra.mxu1 %v7970_v10 }
0x1f14   : > { %7716 = vmatprep.subr.bf16.mxu1 %v8498_v0 }
0x1f17   : > { %7717 = vmatpush3.bf16.msra.mxu1 %v7971_v55 }
0x1f18   : > { %7718 = vmatprep.subr.bf16.mxu1 %v8498_v0 }
0x1f1b   : > { %7719 = vmatpush3.bf16.msra.mxu1 %v7972_v33 }
0x1f1c   : > { %7720 = vmatprep.subr.bf16.mxu1 %v8498_v0  ;;  %v6495_v0 = vld [vmem:[#allocation14 + $0x35] ss:$0 sm:$0xff] }
0x1f1f   : > { %7721 = vmatpush3.bf16.msra.mxu1 %v7973_v11 }
0x1fe5   : > { %v6340_v42 = vpop.f32.mrb[172].mxu1 }
0x1fe6   : > { %v6341_v14 = vadd.f32 %v6340_v42, %v6240_v30  ;;  %v7692_v25 = vpop.f32.mrb[173].mxu1 }
0x1fe7   : > { %v6343_v8 = vpop.f32.mrb[174].mxu1 }
0x1fe8   : > { %6348 = vadd.xlane.f32.xlu0 %v6341_v14  ;;  %v7693_v7 = vpop.f32.mrb[175].mxu1 }
0x2075   : > { %v6349_v34 = vpop.xlane.xlu0 %6348 }
0x2076   : > { %v6350_v57 = vmul.f32 0.0078125, %v6349_v34 }
0x2078   : > { %v6351_v2 = vsub.f32 %v6341_v14, %v6350_v57 }
0x207a   : > { %v6352_v16 = vmul.f32 %v6351_v2, %v6351_v2 }
0x207c   : > { %6353 = vadd.xlane.f32.xlu1 %v6352_v16 }
0x2109   : > { %v6354_v29 = vpop.xlane.xlu1 %6353 }
0x210a   : > { %v6355_v12 = vmul.f32 0.0078125, %v6354_v29 }
0x210c   : > { %v6356_v1 = vadd.f32 1e-05, %v6355_v12 }
0x210e   : > { %8170 = vrsqrt.f32 %v6356_v1 }
0x2118   : > { %v8171_v32 = vpop.eup %8170 }
0x2119   : > { %v6358_v18 = vmul.f32 %v8171_v32, %v6351_v2 }
0x211b   : > { %v6359_v5 = vmul.f32 %v6358_v18, %v6346_v60 }
0x211d   : > { %v6360_v13 = vadd.f32 %v6359_v5, %v6347_v40 }
0x211f   : > { %v6361_v53 = vmax.f32 %v6360_v13, 0.0 }
0x2121   : > { %v6362_v4 = vpack.c.bf16 %v6361_v53, %v6361_v53 }
0x2123   : > { %7711 = vmatmul.mubr.bf16.vlgmr.msra.gmra.mrb[176].mxu0 %v6362_v4 }
0x21f6   : > { %v6462_v62 = vpop.f32.mrb[176].mxu0 }
0x21f7   : > { %v6463_v19 = vadd.f32 %v6462_v62, %v6379_v48  ;;  %v7712_v23 = vpop.f32.mrb[177].mxu0 }
0x21f8   : > { %v6465_v35 = vpop.f32.mrb[178].mxu0 }
0x21f9   : > { %v7713_v3 = vpop.f32.mrb[179].mxu0  ;;  %v6470_v20 = vsel %vm805_vm2, %v6463_v19, 0.0 }
0x21fa   : > { %6471 = vadd.xlane.f32.xlu0 %v6470_v20 }
0x2287   : > { %v6472_v49 = vpop.xlane.xlu0 %6471 }
0x2288   : > { %v6473_v15 = vmul.f32 0.015625, %v6472_v49 }
0x228a   : > { %v6474_v46 = vsub.f32 %v6463_v19, %v6473_v15 }
0x228c   : > { %v6475_v59 = vmul.f32 %v6474_v46, %v6474_v46 }
0x228e   : > { %v6476_v47 = vsel %vm805_vm2, %v6475_v59, 0.0 }
0x228f   : > { %6477 = vadd.xlane.f32.xlu1 %v6476_v47 }
0x231c   : > { %v6478_v36 = vpop.xlane.xlu1 %6477 }
0x231d   : > { %v6479_v45 = vmul.f32 0.015625, %v6478_v36 }
0x231f   : > { %v6480_v37 = vadd.f32 1e-05, %v6479_v45 }
0x2321   : > { %8172 = vrsqrt.f32 %v6480_v37 }
0x232b   : > { %v8173_v6 = vpop.eup %8172 }
0x232c   : > { %v6482_v27 = vmul.f32 %v8173_v6, %v6474_v46 }
0x232e   : > { %v6483_v9 = vmul.f32 %v6482_v27, %v6468_v63 }
0x2330   : > { %v6484_v38 = vadd.f32 %v6483_v9, %v6469_v22 }
0x2332   : > { %v6485_v44 = vmax.f32 %v6484_v38, 0.0 }
0x2334   : > { %v6486_v54 = vpack.c.bf16 %v6485_v44, %v6485_v44 }
0x2336   : > { %7723 = vmatmul.mubr.msk.bf16.vlgmr.msra.gmra.mrb[176].mxu1 %vm805_vm2, %v6486_v54 }
0x2409   : > { %v6557_v24 = vpop.f32.mrb[176].mxu1 }
0x240a   : > { %v6558_v50 = vadd.f32 %v6557_v24, %v6495_v0  ;;  %v7724_v43 = vpop.f32.mrb[177].mxu1 }
0x240b   : > { %v6560_v31 = vpop.f32.mrb[178].mxu1 }
0x240c   : > { %6563 = vst [vmem:[%s613_s24] sm:$0xff] %v6558_v50  ;;  %v7725_v52 = vpop.f32.mrb[179].mxu1 }
0x240d   : > { %8413 = shalt.err (!%p8410_p8)
}
0x240e   : > { %s8414_s14 = scalar_lea.hbm %s10464_s21, 128  ;;  %s8418_s28 = scalar_lea.hbm %s10568_s2, 256 }
0x240f   : > { %p8415_p5 = scmp.ne.s32.totalorder %s10464_s21, %s8414_s14  ;;  %p8419_p4 = scmp.lt.u32.totalorder %s10464_s21, %s10568_s2 }
0x2410   : > { %p8420_p12 = scmp.lt.u32.totalorder %s8418_s28, %s8414_s14  ;;  %p8422_p13 = scmp.lt.u32.totalorder %s8414_s14, %s10464_s21 }
0x2411   : > { %p8416_p9 = pnand %p8415_p5, %p10569_p0 }
0x2412   : > { %p8421_p1 = por %p8420_p12, %p8419_p4 }
0x2413   : > { %p8417_p7 = pneg %p8416_p9 }
0x2414   : > { %p8423_p2 = por %p8422_p13, %p8421_p1 }
0x2416   : > { %p8424_p3 = pnand %p8423_p2, %p8417_p7 }
0x2418   : > { %8427 = shalt.err (!%p8424_p3)
}
0x2419   : > { %7756 = dma.vmem_to_hbm [thread:$0]  (%p10569_p0), %s10466_s3, 128, %s10464_s21, %s6565_s19  }
0x241a PF: > { %s6590_s20 = sand.u32 1, %s8470_s29   ;;  %p10570_p6 = scmp.ne.s32.totalorder %s10552_s1, 0 }
0x241b   : > { %p10571_p10 = scmp.ge.s32.totalorder %s8482_s16, 2  ;;  %s6591_s23 = scalar_lea.sflag [#allocation4], %s6590_s20 }
0x241d   : > { %p7785_p11 = pnand %p10571_p10, %p10570_p6 }
0x241f   : > { %8465 = dma.done.wait (!%p7785_p11), %s6591_s23, 128  }
0x2420   : > { %8467 = vsyncadd (!%p7785_p11), %s6591_s23, 4294967168  ;;  %p31_p8 = scmp.ge.s32.totalorder %s8790_s17, 4   ;;  %s10572_s29 = smov %s8474_s30 }
0x2421   : > { %s10573_s30 = smov %s8478_s15  ;;  %s10574_s15 = smov %s8802_s25 }
0x2422   : > { %s10575_s16 = smov %s8790_s17  ;;  %33 = sbr.rel (!%p31_p8) target bundleno = 18 (0x12), region = 161 }
0x2429   :  { %6596 = vsyncpa [#allocation3], 1 }
0x242a   :  { %6598 = vsyncpa [#allocation3 + $0x1], 1 }
0x242b   :  { %6599 = vsyncpa [#allocation6], 1 }
0x242c   :  { %6600 = vsyncpa [#allocation9], 1 }
0x242d   :  { %6601 = vsyncpa [#allocation12], 1 }
0x242e   :  { %6602 = vsyncpa [#allocation15], 1 }
0x242f   :  { %6603 = vsyncpa [#allocation4], 1 }
0x2430   :  { %6605 = vsyncpa [#allocation4 + $0x1], 1 }

</bundles_post_ra>
